<compile_context>
chip_gen: v7x
topology: tpu7x:2x2x1
jax: 0.10.0
libtpu: 0.0.40
codegen_flags: <defaults>
</compile_context>

<pallas_src>
import jax
import jax.numpy as jnp
from jax import lax
from jax.experimental import pallas as pl
from jax.experimental.pallas import tpu as pltpu

EPS = 1e-5
LANES = 128

MATMUL_DTYPE = jnp.bfloat16   # bf16 MXU path, f32 accumulation
ACT_DTYPE = jnp.bfloat16      # inter-kernel activations (y1, y2) in HBM


def _round_up(x, m):
    return ((x + m - 1) // m) * m


# ----------------------------- kernel bodies --------------------------------

def _shift_w(xp, delta):
    """Zero-filled shift along W: out[:, w, :] = xp[:, w+delta, :] (delta=+-1).

    Built once per image so all nine matmul taps below are aligned slices.
    NOTE(perf): on large shapes replace with pltpu.roll(xp, shift, axis=1) +
    border mask so the shift runs on the XLU instead of a sublane-offset copy.
    """
    P, W, Cp = xp.shape
    zcol = jnp.zeros((P, 1, Cp), xp.dtype)
    if delta > 0:
        return jnp.concatenate([xp[:, delta:, :], zcol], axis=1)
    return jnp.concatenate([zcol, xp[:, :W + delta, :]], axis=1)


def _conv3x3(v, w_ref):
    """3x3 'SAME' cross-correlation of one (H, W, Cp) f32 image.

    Nine accumulated (H*W, Cp) x (Cp, Cp) bf16 MXU matmuls with f32
    accumulation; halo only along H, zero-fill shifts along W.  Conv bias is
    dropped: exactly cancelled by the following training-mode BatchNorm.
    Returns the (H*W, Cp) f32 conv output.
    """
    H, W, Cp = v.shape
    zrow = jnp.zeros((1, W, Cp), jnp.float32)
    xp = jnp.concatenate([zrow, v, zrow], axis=0)            # (H+2, W, Cp)
    taps = (_shift_w(xp, -1), xp, _shift_w(xp, 1))           # dw = 0, 1, 2

    acc = jnp.zeros((H * W, Cp), jnp.float32)
    for dh in range(3):
        for dw in range(3):
            t = taps[dw][dh:dh + H].reshape(H * W, Cp).astype(MATMUL_DTYPE)
            acc += jnp.dot(t, w_ref[3 * dh + dw],
                           preferred_element_type=jnp.float32)
    return acc


def _partial_stats(y, inv_rows):
    """Per-image (sum, sum of squared deviations about the per-image mean).

    Computed from the f32 accumulator before the bf16 downcast; combined
    across images with Chan's formula in the wrapper (numerically safe).
    """
    s = jnp.sum(y, axis=0, keepdims=True)                    # (1, Cp)
    d = y - s * inv_rows
    m2 = jnp.sum(d * d, axis=0, keepdims=True)               # (1, Cp)
    return jnp.concatenate([s, m2], axis=0)                  # (2, Cp)


def _conv1_kernel(x_ref, w_ref, y_ref, s_ref):
    # conv1 + fused per-image BN1 partial statistics.
    _, H, W, Cp = x_ref.shape
    y = _conv3x3(x_ref[0].astype(jnp.float32), w_ref)        # (H*W, Cp) f32
    s_ref[...] = _partial_stats(y, 1.0 / (H * W)).reshape(1, 2, Cp)
    y_ref[...] = y.reshape(1, H, W, Cp).astype(y_ref.dtype)


def _conv2_kernel(y1_ref, scale_ref, shift_ref, w_ref, y_ref, s_ref):
    # Fused: BN1-apply + ReLU (prologue) -> conv2 -> per-image BN2 partials.
    _, H, W, Cp = y1_ref.shape
    z = jnp.maximum(
        y1_ref[0].astype(jnp.float32) * scale_ref[...] + shift_ref[...], 0.0)
    y = _conv3x3(z, w_ref)
    s_ref[...] = _partial_stats(y, 1.0 / (H * W)).reshape(1, 2, Cp)
    y_ref[...] = y.reshape(1, H, W, Cp).astype(y_ref.dtype)


def _bn_add_relu_kernel(y_ref, x_ref, scale_ref, shift_ref, o_ref):
    # Fused epilogue on flattened rows: BN2-apply + residual add + ReLU.
    out = jnp.maximum(
        y_ref[...].astype(jnp.float32) * scale_ref[...] + shift_ref[...]
        + x_ref[...].astype(jnp.float32), 0.0)
    o_ref[...] = out.astype(o_ref.dtype)


# ------------------------------- wrappers ------------------------------------

def _pack_weight(w_hwio, C, Cp):
    """(3, 3, C, C) HWIO -> (9, Cp, Cp) per-tap matrices, bf16, zero-padded."""
    w = jnp.zeros((3, 3, Cp, Cp), jnp.float32)
    w = w.at[:, :, :C, :C].set(w_hwio.astype(jnp.float32))
    return w.reshape(9, Cp, Cp).astype(MATMUL_DTYPE)


def _bn_scale_shift(stats, gamma, beta, C, Cp, rows_per_img):
    """Combine per-image (sum, M2) partials -> per-channel BN scale/shift."""
    s = stats.astype(jnp.float32)                            # (N, 2, Cp)
    n_img = s.shape[0]
    count = n_img * rows_per_img
    sums, m2s = s[:, 0, :], s[:, 1, :]
    mean_i = sums / rows_per_img
    mean = jnp.sum(sums, axis=0) / count
    m2 = jnp.sum(m2s, axis=0) + rows_per_img * jnp.sum(
        (mean_i - mean) ** 2, axis=0)                        # Chan's combine
    var = m2 / count                                         # biased batch var
    gamma_p = jnp.pad(gamma.astype(jnp.float32), (0, Cp - C))
    beta_p = jnp.pad(beta.astype(jnp.float32), (0, Cp - C))
    scale = gamma_p * lax.rsqrt(var + EPS)                   # 0 on pad channels
    shift = beta_p - mean * scale
    return scale.reshape(1, Cp), shift.reshape(1, Cp)


def _row_tile(rows):
    """Row block for the flattened elementwise epilogue."""
    rt = rows
    if rt % 2 == 0 and (rt // 2) % 8 == 0:    # >= 2 steps: fills both v7x TCs
        rt //= 2
    while rt > 2048 and rt % 2 == 0 and (rt // 2) % 8 == 0:  # bound block VMEM
        rt //= 2
    return rt


def residual_block_nhwc(x_nhwc, params):
    """ResidualBlock forward on an NHWC input (preferred: no transposes)."""
    w1, _b1, g1, bt1, w2, _b2, g2, bt2 = params   # conv biases cancelled by BN
    N, H, W, C = x_nhwc.shape
    Cp = _round_up(C, LANES)                      # lane-dense channel axis
    # NOTE(perf): when C << 128 (as in the tiny demo) the pad wastes Cp/C in
    # FLOPs/bytes; such shapes should pack W (or several images) into lanes.
    x = x_nhwc if C == Cp else jnp.pad(
        x_nhwc, ((0, 0), (0, 0), (0, 0), (0, Cp - C)))       # dtype preserved
    w1m = _pack_weight(w1, C, Cp)
    w2m = _pack_weight(w2, C, Cp)

    img_spec = pl.BlockSpec((1, H, W, Cp), lambda i: (i, 0, 0, 0))
    stats_spec = pl.BlockSpec((1, 2, Cp), lambda i: (i, 0, 0))
    w_spec = pl.BlockSpec((9, Cp, Cp), lambda i: (0, 0, 0))
    vec_spec = pl.BlockSpec((1, Cp), lambda i: (0, 0))
    cparams = pltpu.CompilerParams(
        dimension_semantics=("parallel",),        # N even -> both v7x TCs busy
        vmem_limit_bytes=32 * 1024 * 1024)        # well under v5e..v7x limits
    conv_out_shape = (jax.ShapeDtypeStruct((N, H, W, Cp), ACT_DTYPE),
                      jax.ShapeDtypeStruct((N, 2, Cp), jnp.float32))
    # Further v7x knobs (not needed at these shapes): single-buffer the
    # grid-invariant w_spec via pipeline_mode=pl.Buffered(1), and tile H with
    # a 1-row halo once a whole (H, W, Cp) image no longer fits 64 MiB VMEM.

    # --- conv1 (+ per-image BN1 partial stats) ------------------------------
    y1, s1 = pl.pallas_call(
        _conv1_kernel,
        out_shape=conv_out_shape,
        grid=(N,),
        in_specs=[img_spec, w_spec],
        out_specs=(img_spec, stats_spec),
        compiler_params=cparams,
    )(x, w1m)
    scale1, shift1 = _bn_scale_shift(s1, g1, bt1, C, Cp, H * W)

    # --- BN1 + ReLU + conv2 (+ per-image BN2 partial stats) -----------------
    y2, s2 = pl.pallas_call(
        _conv2_kernel,
        out_shape=conv_out_shape,
        grid=(N,),
        in_specs=[img_spec, vec_spec, vec_spec, w_spec],
        out_specs=(img_spec, stats_spec),
        compiler_params=cparams,
    )(y1, scale1, shift1, w2m)
    scale2, shift2 = _bn_scale_shift(s2, g2, bt2, C, Cp, H * W)

    # --- BN2 + residual + ReLU on flattened (N*H*W, Cp) rows ----------------
    rows = N * H * W
    rt = _row_tile(rows)
    row_spec = pl.BlockSpec((rt, Cp), lambda i: (i, 0))
    out_flat = pl.pallas_call(
        _bn_add_relu_kernel,
        out_shape=jax.ShapeDtypeStruct((rows, Cp), x_nhwc.dtype),
        grid=(rows // rt,),
        in_specs=[row_spec, row_spec, vec_spec, vec_spec],
        out_specs=row_spec,
        compiler_params=cparams,
    )(y2.reshape(rows, Cp), x.reshape(rows, Cp), scale2, shift2)

    out = out_flat.reshape(N, H, W, Cp)
    return out if C == Cp else out[..., :C]


def residual_block(x_nchw, params):
    """PyTorch-layout (NCHW) adapter around the NHWC kernels."""
    out = residual_block_nhwc(jnp.transpose(x_nchw, (0, 2, 3, 1)), params)
    return jnp.transpose(out, (0, 3, 1, 2))


# ------------------------------- reference -----------------------------------

def _reference(x_nchw, params):
    """Pure-JAX f32 reference mirroring the PyTorch training-mode forward."""
    w1, b1, g1, bt1, w2, b2, g2, bt2 = params
    x = jnp.transpose(x_nchw, (0, 2, 3, 1)).astype(jnp.float32)

    def conv(v, w, b):
        y = lax.conv_general_dilated(
            v, w.astype(jnp.float32), (1, 1), 'SAME',
            dimension_numbers=('NHWC', 'HWIO', 'NHWC'))
        return y + b

    def bn(v, g, bt):
        mean = jnp.mean(v, axis=(0, 1, 2), keepdims=True)
        var = jnp.mean((v - mean) ** 2, axis=(0, 1, 2), keepdims=True)
        return (v - mean) * g * lax.rsqrt(var + EPS) + bt

    y = jax.nn.relu(bn(conv(x, w1, b1), g1, bt1))
    y = bn(conv(y, w2, b2), g2, bt2)
    y = jax.nn.relu(y + x)
    return jnp.transpose(y, (0, 3, 1, 2))


if __name__ == "__main__":
    N, C, H, W = 2, 4, 16, 16

    key = jax.random.PRNGKey(0)
    ks = jax.random.split(key, 9)
    x = jax.random.normal(ks[0], (N, C, H, W), jnp.float32)

    # Conv weights stored HWIO = (3, 3, Cin, Cout); equivalent to PyTorch's
    # (Cout, Cin, 3, 3) transposed (both frameworks do cross-correlation).
    w1 = 0.2 * jax.random.normal(ks[1], (3, 3, C, C), jnp.float32)
    b1 = 0.1 * jax.random.normal(ks[2], (C,), jnp.float32)
    w2 = 0.2 * jax.random.normal(ks[3], (3, 3, C, C), jnp.float32)
    b2 = 0.1 * jax.random.normal(ks[4], (C,), jnp.float32)
    g1 = 1.0 + 0.1 * jax.random.normal(ks[5], (C,), jnp.float32)   # bn1.weight
    bt1 = 0.1 * jax.random.normal(ks[6], (C,), jnp.float32)        # bn1.bias
    g2 = 1.0 + 0.1 * jax.random.normal(ks[7], (C,), jnp.float32)   # bn2.weight
    bt2 = 0.1 * jax.random.normal(ks[8], (C,), jnp.float32)        # bn2.bias
    params = (w1, b1, g1, bt1, w2, b2, g2, bt2)

    fwd = jax.jit(residual_block)
    out = jax.block_until_ready(fwd(x, params))
    ref = jax.block_until_ready(_reference(x, params))

    assert out.shape == (N, C, H, W), out.shape
    err = jnp.abs(out.astype(jnp.float32) - ref)
    max_err = float(jnp.max(err))
    mean_err = float(jnp.mean(err))
    # bf16 MXU path + bf16 inter-kernel activations vs an f32 reference:
    # loose absolute tolerance, but far below the O(1) errors any structural
    # bug (wrong stencil tap, wrong BN statistic) would produce.
    assert max_err < 2.5e-1 and mean_err < 5e-2, (max_err, mean_err)

    print("KERNEL_OK")
</pallas_src>

<mosaic_0001>
module attributes {stable_mosaic.version = 11 : i64} {
  func.func @_conv1_kernel(%arg0: i32, %arg1: memref<1x16x16x128xf32, #tpu.memory_space<vmem>>, %arg2: memref<9x128x128xbf16, #tpu.memory_space<vmem>>, %arg3: memref<1x16x16x128xbf16, #tpu.memory_space<vmem>>, %arg4: memref<1x2x128xf32, #tpu.memory_space<vmem>>) attributes {dimension_semantics = [#tpu.dimension_semantics<parallel>], iteration_bounds = array<i64: 2>, scalar_prefetch = 0 : i64, scratch_operands = 0 : i64, tpu.core_type = #tpu.core_type<tc>, window_params = [{transform_indices = @transform_0, window_bounds = array<i64: 1, 16, 16, 128>}, {pipeline_mode = #tpu.pipeline_mode<synchronous>, transform_indices = @transform_1, window_bounds = array<i64: 9, 128, 128>}, {transform_indices = @transform_2, window_bounds = array<i64: 1, 16, 16, 128>}, {transform_indices = @transform_3, window_bounds = array<i64: 1, 2, 128>}]} {
    %c0 = arith.constant 0 : index
    %c0_0 = arith.constant 0 : index
    %c0_1 = arith.constant 0 : index
    %c0_2 = arith.constant 0 : index
    %0 = vector.load %arg1[%c0, %c0_0, %c0_1, %c0_2] : memref<1x16x16x128xf32, #tpu.memory_space<vmem>>, vector<1x16x16x128xf32>
    %1 = vector.shape_cast %0 : vector<1x16x16x128xf32> to vector<16x16x128xf32>
    %cst = arith.constant 0.000000e+00 : f32
    %2 = vector.broadcast %cst : f32 to vector<1x16x128xf32>
    %3 = tpu.concatenate %2, %1, %2 in 0 : vector<1x16x128xf32>, vector<16x16x128xf32>, vector<1x16x128xf32> -> vector<18x16x128xf32>
    %cst_3 = arith.constant 0.000000e+00 : f32
    %4 = vector.broadcast %cst_3 : f32 to vector<18x1x128xf32>
    %5 = vector.extract_strided_slice %3 {offsets = [0, 0, 0], sizes = [18, 15, 128], strides = [1, 1, 1]} : vector<18x16x128xf32> to vector<18x15x128xf32>
    %6 = tpu.concatenate %4, %5 in 1 : vector<18x1x128xf32>, vector<18x15x128xf32> -> vector<18x16x128xf32>
    %cst_4 = arith.constant 0.000000e+00 : f32
    %7 = vector.broadcast %cst_4 : f32 to vector<18x1x128xf32>
    %8 = vector.extract_strided_slice %3 {offsets = [0, 1, 0], sizes = [18, 15, 128], strides = [1, 1, 1]} : vector<18x16x128xf32> to vector<18x15x128xf32>
    %9 = tpu.concatenate %8, %7 in 1 : vector<18x15x128xf32>, vector<18x1x128xf32> -> vector<18x16x128xf32>
    %cst_5 = arith.constant 0.000000e+00 : f32
    %10 = vector.broadcast %cst_5 : f32 to vector<256x128xf32>
    %11 = vector.extract_strided_slice %6 {offsets = [0, 0, 0], sizes = [16, 16, 128], strides = [1, 1, 1]} : vector<18x16x128xf32> to vector<16x16x128xf32>
    %12 = vector.shape_cast %11 : vector<16x16x128xf32> to vector<256x128xf32>
    %13 = arith.truncf %12 : vector<256x128xf32> to vector<256x128xbf16>
    %c0_6 = arith.constant 0 : index
    %c0_7 = arith.constant 0 : index
    %c0_8 = arith.constant 0 : index
    %14 = vector.load %arg2[%c0_6, %c0_7, %c0_8] : memref<9x128x128xbf16, #tpu.memory_space<vmem>>, vector<1x128x128xbf16>
    %15 = vector.shape_cast %14 : vector<1x128x128xbf16> to vector<128x128xbf16>
    %cst_9 = arith.constant dense<0.000000e+00> : vector<256x128xf32>
    %16 = tpu.matmul %13, %15, %cst_9 {dimension_numbers = #tpu.dot_dimension_numbers<[1], [0], [0], [1], [0, 0, 1, 1], [], []>} : vector<256x128xbf16>, vector<128x128xbf16>, vector<256x128xf32> -> vector<256x128xf32>
    %17 = arith.addf %10, %16 : vector<256x128xf32>
    %18 = vector.extract_strided_slice %3 {offsets = [0, 0, 0], sizes = [16, 16, 128], strides = [1, 1, 1]} : vector<18x16x128xf32> to vector<16x16x128xf32>
    %19 = vector.shape_cast %18 : vector<16x16x128xf32> to vector<256x128xf32>
    %20 = arith.truncf %19 : vector<256x128xf32> to vector<256x128xbf16>
    %c1 = arith.constant 1 : index
    %c0_10 = arith.constant 0 : index
    %c0_11 = arith.constant 0 : index
    %21 = vector.load %arg2[%c1, %c0_10, %c0_11] : memref<9x128x128xbf16, #tpu.memory_space<vmem>>, vector<1x128x128xbf16>
    %22 = vector.shape_cast %21 : vector<1x128x128xbf16> to vector<128x128xbf16>
    %cst_12 = arith.constant dense<0.000000e+00> : vector<256x128xf32>
    %23 = tpu.matmul %20, %22, %cst_12 {dimension_numbers = #tpu.dot_dimension_numbers<[1], [0], [0], [1], [0, 0, 1, 1], [], []>} : vector<256x128xbf16>, vector<128x128xbf16>, vector<256x128xf32> -> vector<256x128xf32>
    %24 = arith.addf %17, %23 : vector<256x128xf32>
    %25 = vector.extract_strided_slice %9 {offsets = [0, 0, 0], sizes = [16, 16, 128], strides = [1, 1, 1]} : vector<18x16x128xf32> to vector<16x16x128xf32>
    %26 = vector.shape_cast %25 : vector<16x16x128xf32> to vector<256x128xf32>
    %27 = arith.truncf %26 : vector<256x128xf32> to vector<256x128xbf16>
    %c2 = arith.constant 2 : index
    %c0_13 = arith.constant 0 : index
    %c0_14 = arith.constant 0 : index
    %28 = vector.load %arg2[%c2, %c0_13, %c0_14] : memref<9x128x128xbf16, #tpu.memory_space<vmem>>, vector<1x128x128xbf16>
    %29 = vector.shape_cast %28 : vector<1x128x128xbf16> to vector<128x128xbf16>
    %cst_15 = arith.constant dense<0.000000e+00> : vector<256x128xf32>
    %30 = tpu.matmul %27, %29, %cst_15 {dimension_numbers = #tpu.dot_dimension_numbers<[1], [0], [0], [1], [0, 0, 1, 1], [], []>} : vector<256x128xbf16>, vector<128x128xbf16>, vector<256x128xf32> -> vector<256x128xf32>
    %31 = arith.addf %24, %30 : vector<256x128xf32>
    %32 = vector.extract_strided_slice %6 {offsets = [1, 0, 0], sizes = [16, 16, 128], strides = [1, 1, 1]} : vector<18x16x128xf32> to vector<16x16x128xf32>
    %33 = vector.shape_cast %32 : vector<16x16x128xf32> to vector<256x128xf32>
    %34 = arith.truncf %33 : vector<256x128xf32> to vector<256x128xbf16>
    %c3 = arith.constant 3 : index
    %c0_16 = arith.constant 0 : index
    %c0_17 = arith.constant 0 : index
    %35 = vector.load %arg2[%c3, %c0_16, %c0_17] : memref<9x128x128xbf16, #tpu.memory_space<vmem>>, vector<1x128x128xbf16>
    %36 = vector.shape_cast %35 : vector<1x128x128xbf16> to vector<128x128xbf16>
    %cst_18 = arith.constant dense<0.000000e+00> : vector<256x128xf32>
    %37 = tpu.matmul %34, %36, %cst_18 {dimension_numbers = #tpu.dot_dimension_numbers<[1], [0], [0], [1], [0, 0, 1, 1], [], []>} : vector<256x128xbf16>, vector<128x128xbf16>, vector<256x128xf32> -> vector<256x128xf32>
    %38 = arith.addf %31, %37 : vector<256x128xf32>
    %39 = vector.extract_strided_slice %3 {offsets = [1, 0, 0], sizes = [16, 16, 128], strides = [1, 1, 1]} : vector<18x16x128xf32> to vector<16x16x128xf32>
    %40 = vector.shape_cast %39 : vector<16x16x128xf32> to vector<256x128xf32>
    %41 = arith.truncf %40 : vector<256x128xf32> to vector<256x128xbf16>
    %c4 = arith.constant 4 : index
    %c0_19 = arith.constant 0 : index
    %c0_20 = arith.constant 0 : index
    %42 = vector.load %arg2[%c4, %c0_19, %c0_20] : memref<9x128x128xbf16, #tpu.memory_space<vmem>>, vector<1x128x128xbf16>
    %43 = vector.shape_cast %42 : vector<1x128x128xbf16> to vector<128x128xbf16>
    %cst_21 = arith.constant dense<0.000000e+00> : vector<256x128xf32>
    %44 = tpu.matmul %41, %43, %cst_21 {dimension_numbers = #tpu.dot_dimension_numbers<[1], [0], [0], [1], [0, 0, 1, 1], [], []>} : vector<256x128xbf16>, vector<128x128xbf16>, vector<256x128xf32> -> vector<256x128xf32>
    %45 = arith.addf %38, %44 : vector<256x128xf32>
    %46 = vector.extract_strided_slice %9 {offsets = [1, 0, 0], sizes = [16, 16, 128], strides = [1, 1, 1]} : vector<18x16x128xf32> to vector<16x16x128xf32>
    %47 = vector.shape_cast %46 : vector<16x16x128xf32> to vector<256x128xf32>
    %48 = arith.truncf %47 : vector<256x128xf32> to vector<256x128xbf16>
    %c5 = arith.constant 5 : index
    %c0_22 = arith.constant 0 : index
    %c0_23 = arith.constant 0 : index
    %49 = vector.load %arg2[%c5, %c0_22, %c0_23] : memref<9x128x128xbf16, #tpu.memory_space<vmem>>, vector<1x128x128xbf16>
    %50 = vector.shape_cast %49 : vector<1x128x128xbf16> to vector<128x128xbf16>
    %cst_24 = arith.constant dense<0.000000e+00> : vector<256x128xf32>
    %51 = tpu.matmul %48, %50, %cst_24 {dimension_numbers = #tpu.dot_dimension_numbers<[1], [0], [0], [1], [0, 0, 1, 1], [], []>} : vector<256x128xbf16>, vector<128x128xbf16>, vector<256x128xf32> -> vector<256x128xf32>
    %52 = arith.addf %45, %51 : vector<256x128xf32>
    %53 = vector.extract_strided_slice %6 {offsets = [2, 0, 0], sizes = [16, 16, 128], strides = [1, 1, 1]} : vector<18x16x128xf32> to vector<16x16x128xf32>
    %54 = vector.shape_cast %53 : vector<16x16x128xf32> to vector<256x128xf32>
    %55 = arith.truncf %54 : vector<256x128xf32> to vector<256x128xbf16>
    %c6 = arith.constant 6 : index
    %c0_25 = arith.constant 0 : index
    %c0_26 = arith.constant 0 : index
    %56 = vector.load %arg2[%c6, %c0_25, %c0_26] : memref<9x128x128xbf16, #tpu.memory_space<vmem>>, vector<1x128x128xbf16>
    %57 = vector.shape_cast %56 : vector<1x128x128xbf16> to vector<128x128xbf16>
    %cst_27 = arith.constant dense<0.000000e+00> : vector<256x128xf32>
    %58 = tpu.matmul %55, %57, %cst_27 {dimension_numbers = #tpu.dot_dimension_numbers<[1], [0], [0], [1], [0, 0, 1, 1], [], []>} : vector<256x128xbf16>, vector<128x128xbf16>, vector<256x128xf32> -> vector<256x128xf32>
    %59 = arith.addf %52, %58 : vector<256x128xf32>
    %60 = vector.extract_strided_slice %3 {offsets = [2, 0, 0], sizes = [16, 16, 128], strides = [1, 1, 1]} : vector<18x16x128xf32> to vector<16x16x128xf32>
    %61 = vector.shape_cast %60 : vector<16x16x128xf32> to vector<256x128xf32>
    %62 = arith.truncf %61 : vector<256x128xf32> to vector<256x128xbf16>
    %c7 = arith.constant 7 : index
    %c0_28 = arith.constant 0 : index
    %c0_29 = arith.constant 0 : index
    %63 = vector.load %arg2[%c7, %c0_28, %c0_29] : memref<9x128x128xbf16, #tpu.memory_space<vmem>>, vector<1x128x128xbf16>
    %64 = vector.shape_cast %63 : vector<1x128x128xbf16> to vector<128x128xbf16>
    %cst_30 = arith.constant dense<0.000000e+00> : vector<256x128xf32>
    %65 = tpu.matmul %62, %64, %cst_30 {dimension_numbers = #tpu.dot_dimension_numbers<[1], [0], [0], [1], [0, 0, 1, 1], [], []>} : vector<256x128xbf16>, vector<128x128xbf16>, vector<256x128xf32> -> vector<256x128xf32>
    %66 = arith.addf %59, %65 : vector<256x128xf32>
    %67 = vector.extract_strided_slice %9 {offsets = [2, 0, 0], sizes = [16, 16, 128], strides = [1, 1, 1]} : vector<18x16x128xf32> to vector<16x16x128xf32>
    %68 = vector.shape_cast %67 : vector<16x16x128xf32> to vector<256x128xf32>
    %69 = arith.truncf %68 : vector<256x128xf32> to vector<256x128xbf16>
    %c8 = arith.constant 8 : index
    %c0_31 = arith.constant 0 : index
    %c0_32 = arith.constant 0 : index
    %70 = vector.load %arg2[%c8, %c0_31, %c0_32] : memref<9x128x128xbf16, #tpu.memory_space<vmem>>, vector<1x128x128xbf16>
    %71 = vector.shape_cast %70 : vector<1x128x128xbf16> to vector<128x128xbf16>
    %cst_33 = arith.constant dense<0.000000e+00> : vector<256x128xf32>
    %72 = tpu.matmul %69, %71, %cst_33 {dimension_numbers = #tpu.dot_dimension_numbers<[1], [0], [0], [1], [0, 0, 1, 1], [], []>} : vector<256x128xbf16>, vector<128x128xbf16>, vector<256x128xf32> -> vector<256x128xf32>
    %73 = arith.addf %66, %72 : vector<256x128xf32>
    %cst_34 = arith.constant dense<0.000000e+00> : vector<128xf32>
    %74 = vector.multi_reduction <add>, %73, %cst_34 [0] : vector<256x128xf32> to vector<128xf32>
    %75 = vector.shape_cast %74 : vector<128xf32> to vector<1x128xf32>
    %cst_35 = arith.constant 3.906250e-03 : f32
    %76 = vector.broadcast %cst_35 : f32 to vector<1x128xf32>
    %77 = arith.mulf %75, %76 : vector<1x128xf32>
    %78 = vector.broadcast %77 : vector<1x128xf32> to vector<256x128xf32>
    %79 = arith.subf %73, %78 : vector<256x128xf32>
    %80 = arith.mulf %79, %79 : vector<256x128xf32>
    %cst_36 = arith.constant dense<0.000000e+00> : vector<128xf32>
    %81 = vector.multi_reduction <add>, %80, %cst_36 [0] : vector<256x128xf32> to vector<128xf32>
    %82 = vector.shape_cast %81 : vector<128xf32> to vector<1x128xf32>
    %83 = tpu.concatenate %75, %82 in 0 : vector<1x128xf32>, vector<1x128xf32> -> vector<2x128xf32>
    %84 = vector.shape_cast %83 : vector<2x128xf32> to vector<1x2x128xf32>
    %c0_37 = arith.constant 0 : index
    %c0_38 = arith.constant 0 : index
    %c0_39 = arith.constant 0 : index
    %85 = vector.load %arg4[%c0_37, %c0_38, %c0_39] : memref<1x2x128xf32, #tpu.memory_space<vmem>>, vector<1x2x128xf32>
    tpu.vector_store %arg4[%c0_37, %c0_38, %c0_39], %84 {strides = array<i32>} : memref<1x2x128xf32, #tpu.memory_space<vmem>>, vector<1x2x128xf32>,
    %86 = vector.shape_cast %73 : vector<256x128xf32> to vector<1x16x16x128xf32>
    %87 = arith.truncf %86 : vector<1x16x16x128xf32> to vector<1x16x16x128xbf16>
    %c0_40 = arith.constant 0 : index
    %c0_41 = arith.constant 0 : index
    %c0_42 = arith.constant 0 : index
    %c0_43 = arith.constant 0 : index
    %88 = vector.load %arg3[%c0_40, %c0_41, %c0_42, %c0_43] : memref<1x16x16x128xbf16, #tpu.memory_space<vmem>>, vector<1x16x16x128xbf16>
    tpu.vector_store %arg3[%c0_40, %c0_41, %c0_42, %c0_43], %87 {strides = array<i32>} : memref<1x16x16x128xbf16, #tpu.memory_space<vmem>>, vector<1x16x16x128xbf16>,
    return
  }
  func.func @transform_0(%arg0: i32) -> (i32, i32, i32, i32) {
    %c0_i32 = arith.constant 0 : i32
    %c0_i32_0 = arith.constant 0 : i32
    %c0_i32_1 = arith.constant 0 : i32
    %c0_i32_2 = arith.constant 0 : i32
    return %arg0, %c0_i32, %c0_i32_0, %c0_i32_1 : i32, i32, i32, i32
  }
  func.func @transform_1(%arg0: i32) -> (i32, i32, i32) {
    %c0_i32 = arith.constant 0 : i32
    %c0_i32_0 = arith.constant 0 : i32
    %c0_i32_1 = arith.constant 0 : i32
    %c0_i32_2 = arith.constant 0 : i32
    return %c0_i32, %c0_i32_0, %c0_i32_1 : i32, i32, i32
  }
  func.func @transform_2(%arg0: i32) -> (i32, i32, i32, i32) {
    %c0_i32 = arith.constant 0 : i32
    %c0_i32_0 = arith.constant 0 : i32
    %c0_i32_1 = arith.constant 0 : i32
    %c0_i32_2 = arith.constant 0 : i32
    return %arg0, %c0_i32, %c0_i32_0, %c0_i32_1 : i32, i32, i32, i32
  }
  func.func @transform_3(%arg0: i32) -> (i32, i32, i32) {
    %c0_i32 = arith.constant 0 : i32
    %c0_i32_0 = arith.constant 0 : i32
    %c0_i32_1 = arith.constant 0 : i32
    return %arg0, %c0_i32, %c0_i32_0 : i32, i32, i32
  }
}

module attributes {stable_mosaic.version = 11 : i64} {
  func.func @_bn_add_relu_kernel(%arg0: i32, %arg1: memref<256x128xbf16, #tpu.memory_space<vmem>>, %arg2: memref<256x128xf32, #tpu.memory_space<vmem>>, %arg3: memref<1x128xf32, #tpu.memory_space<vmem>>, %arg4: memref<1x128xf32, #tpu.memory_space<vmem>>, %arg5: memref<256x128xf32, #tpu.memory_space<vmem>>) attributes {dimension_semantics = [#tpu.dimension_semantics<parallel>], iteration_bounds = array<i64: 2>, scalar_prefetch = 0 : i64, scratch_operands = 0 : i64, tpu.core_type = #tpu.core_type<tc>, window_params = [{transform_indices = @transform_0, window_bounds = array<i64: 256, 128>}, {transform_indices = @transform_1, window_bounds = array<i64: 256, 128>}, {pipeline_mode = #tpu.pipeline_mode<synchronous>, transform_indices = @transform_2, window_bounds = array<i64: 1, 128>}, {pipeline_mode = #tpu.pipeline_mode<synchronous>, transform_indices = @transform_3, window_bounds = array<i64: 1, 128>}, {transform_indices = @transform_4, window_bounds = array<i64: 256, 128>}]} {
    %c0 = arith.constant 0 : index
    %c0_0 = arith.constant 0 : index
    %0 = vector.load %arg1[%c0, %c0_0] : memref<256x128xbf16, #tpu.memory_space<vmem>>, vector<256x128xbf16>
    %1 = arith.extf %0 : vector<256x128xbf16> to vector<256x128xf32>
    %c0_1 = arith.constant 0 : index
    %c0_2 = arith.constant 0 : index
    %2 = vector.load %arg3[%c0_1, %c0_2] : memref<1x128xf32, #tpu.memory_space<vmem>>, vector<1x128xf32>
    %3 = vector.broadcast %2 : vector<1x128xf32> to vector<256x128xf32>
    %4 = arith.mulf %1, %3 : vector<256x128xf32>
    %c0_3 = arith.constant 0 : index
    %c0_4 = arith.constant 0 : index
    %5 = vector.load %arg4[%c0_3, %c0_4] : memref<1x128xf32, #tpu.memory_space<vmem>>, vector<1x128xf32>
    %6 = vector.broadcast %5 : vector<1x128xf32> to vector<256x128xf32>
    %7 = arith.addf %4, %6 : vector<256x128xf32>
    %c0_5 = arith.constant 0 : index
    %c0_6 = arith.constant 0 : index
    %8 = vector.load %arg2[%c0_5, %c0_6] : memref<256x128xf32, #tpu.memory_space<vmem>>, vector<256x128xf32>
    %9 = arith.addf %7, %8 : vector<256x128xf32>
    %cst = arith.constant 0.000000e+00 : f32
    %10 = vector.broadcast %cst : f32 to vector<256x128xf32>
    %11 = arith.maximumf %9, %10 : vector<256x128xf32>
    %c0_7 = arith.constant 0 : index
    %c0_8 = arith.constant 0 : index
    %12 = vector.load %arg5[%c0_7, %c0_8] : memref<256x128xf32, #tpu.memory_space<vmem>>, vector<256x128xf32>
    tpu.vector_store %arg5[%c0_7, %c0_8], %11 {strides = array<i32>} : memref<256x128xf32, #tpu.memory_space<vmem>>, vector<256x128xf32>,
    return
  }
  func.func @transform_0(%arg0: i32) -> (i32, i32) {
    %c0_i32 = arith.constant 0 : i32
    %c0_i32_0 = arith.constant 0 : i32
    return %arg0, %c0_i32 : i32, i32
  }
  func.func @transform_1(%arg0: i32) -> (i32, i32) {
    %c0_i32 = arith.constant 0 : i32
    %c0_i32_0 = arith.constant 0 : i32
    return %arg0, %c0_i32 : i32, i32
  }
  func.func @transform_2(%arg0: i32) -> (i32, i32) {
    %c0_i32 = arith.constant 0 : i32
    %c0_i32_0 = arith.constant 0 : i32
    %c0_i32_1 = arith.constant 0 : i32
    return %c0_i32, %c0_i32_0 : i32, i32
  }
  func.func @transform_3(%arg0: i32) -> (i32, i32) {
    %c0_i32 = arith.constant 0 : i32
    %c0_i32_0 = arith.constant 0 : i32
    %c0_i32_1 = arith.constant 0 : i32
    return %c0_i32, %c0_i32_0 : i32, i32
  }
  func.func @transform_4(%arg0: i32) -> (i32, i32) {
    %c0_i32 = arith.constant 0 : i32
    %c0_i32_0 = arith.constant 0 : i32
    return %arg0, %c0_i32 : i32, i32
  }
}

module attributes {stable_mosaic.version = 11 : i64} {
  func.func @_conv2_kernel(%arg0: i32, %arg1: memref<1x16x16x128xbf16, #tpu.memory_space<vmem>>, %arg2: memref<1x128xf32, #tpu.memory_space<vmem>>, %arg3: memref<1x128xf32, #tpu.memory_space<vmem>>, %arg4: memref<9x128x128xbf16, #tpu.memory_space<vmem>>, %arg5: memref<1x16x16x128xbf16, #tpu.memory_space<vmem>>, %arg6: memref<1x2x128xf32, #tpu.memory_space<vmem>>) attributes {dimension_semantics = [#tpu.dimension_semantics<parallel>], iteration_bounds = array<i64: 2>, scalar_prefetch = 0 : i64, scratch_operands = 0 : i64, tpu.core_type = #tpu.core_type<tc>, window_params = [{transform_indices = @transform_0, window_bounds = array<i64: 1, 16, 16, 128>}, {pipeline_mode = #tpu.pipeline_mode<synchronous>, transform_indices = @transform_1, window_bounds = array<i64: 1, 128>}, {pipeline_mode = #tpu.pipeline_mode<synchronous>, transform_indices = @transform_2, window_bounds = array<i64: 1, 128>}, {pipeline_mode = #tpu.pipeline_mode<synchronous>, transform_indices = @transform_3, window_bounds = array<i64: 9, 128, 128>}, {transform_indices = @transform_4, window_bounds = array<i64: 1, 16, 16, 128>}, {transform_indices = @transform_5, window_bounds = array<i64: 1, 2, 128>}]} {
    %c0 = arith.constant 0 : index
    %c0_0 = arith.constant 0 : index
    %c0_1 = arith.constant 0 : index
    %c0_2 = arith.constant 0 : index
    %0 = vector.load %arg1[%c0, %c0_0, %c0_1, %c0_2] : memref<1x16x16x128xbf16, #tpu.memory_space<vmem>>, vector<1x16x16x128xbf16>
    %1 = vector.shape_cast %0 : vector<1x16x16x128xbf16> to vector<16x16x128xbf16>
    %2 = arith.extf %1 : vector<16x16x128xbf16> to vector<16x16x128xf32>
    %c0_3 = arith.constant 0 : index
    %c0_4 = arith.constant 0 : index
    %3 = vector.load %arg2[%c0_3, %c0_4] : memref<1x128xf32, #tpu.memory_space<vmem>>, vector<1x128xf32>
    %4 = vector.shape_cast %3 : vector<1x128xf32> to vector<1x1x128xf32>
    %5 = vector.broadcast %4 : vector<1x1x128xf32> to vector<16x16x128xf32>
    %6 = arith.mulf %2, %5 : vector<16x16x128xf32>
    %c0_5 = arith.constant 0 : index
    %c0_6 = arith.constant 0 : index
    %7 = vector.load %arg3[%c0_5, %c0_6] : memref<1x128xf32, #tpu.memory_space<vmem>>, vector<1x128xf32>
    %8 = vector.shape_cast %7 : vector<1x128xf32> to vector<1x1x128xf32>
    %9 = vector.broadcast %8 : vector<1x1x128xf32> to vector<16x16x128xf32>
    %10 = arith.addf %6, %9 : vector<16x16x128xf32>
    %cst = arith.constant 0.000000e+00 : f32
    %11 = vector.broadcast %cst : f32 to vector<16x16x128xf32>
    %12 = arith.maximumf %10, %11 : vector<16x16x128xf32>
    %cst_7 = arith.constant 0.000000e+00 : f32
    %13 = vector.broadcast %cst_7 : f32 to vector<1x16x128xf32>
    %14 = tpu.concatenate %13, %12, %13 in 0 : vector<1x16x128xf32>, vector<16x16x128xf32>, vector<1x16x128xf32> -> vector<18x16x128xf32>
    %cst_8 = arith.constant 0.000000e+00 : f32
    %15 = vector.broadcast %cst_8 : f32 to vector<18x1x128xf32>
    %16 = vector.extract_strided_slice %14 {offsets = [0, 0, 0], sizes = [18, 15, 128], strides = [1, 1, 1]} : vector<18x16x128xf32> to vector<18x15x128xf32>
    %17 = tpu.concatenate %15, %16 in 1 : vector<18x1x128xf32>, vector<18x15x128xf32> -> vector<18x16x128xf32>
    %cst_9 = arith.constant 0.000000e+00 : f32
    %18 = vector.broadcast %cst_9 : f32 to vector<18x1x128xf32>
    %19 = vector.extract_strided_slice %14 {offsets = [0, 1, 0], sizes = [18, 15, 128], strides = [1, 1, 1]} : vector<18x16x128xf32> to vector<18x15x128xf32>
    %20 = tpu.concatenate %19, %18 in 1 : vector<18x15x128xf32>, vector<18x1x128xf32> -> vector<18x16x128xf32>
    %cst_10 = arith.constant 0.000000e+00 : f32
    %21 = vector.broadcast %cst_10 : f32 to vector<256x128xf32>
    %22 = vector.extract_strided_slice %17 {offsets = [0, 0, 0], sizes = [16, 16, 128], strides = [1, 1, 1]} : vector<18x16x128xf32> to vector<16x16x128xf32>
    %23 = vector.shape_cast %22 : vector<16x16x128xf32> to vector<256x128xf32>
    %24 = arith.truncf %23 : vector<256x128xf32> to vector<256x128xbf16>
    %c0_11 = arith.constant 0 : index
    %c0_12 = arith.constant 0 : index
    %c0_13 = arith.constant 0 : index
    %25 = vector.load %arg4[%c0_11, %c0_12, %c0_13] : memref<9x128x128xbf16, #tpu.memory_space<vmem>>, vector<1x128x128xbf16>
    %26 = vector.shape_cast %25 : vector<1x128x128xbf16> to vector<128x128xbf16>
    %cst_14 = arith.constant dense<0.000000e+00> : vector<256x128xf32>
    %27 = tpu.matmul %24, %26, %cst_14 {dimension_numbers = #tpu.dot_dimension_numbers<[1], [0], [0], [1], [0, 0, 1, 1], [], []>} : vector<256x128xbf16>, vector<128x128xbf16>, vector<256x128xf32> -> vector<256x128xf32>
    %28 = arith.addf %21, %27 : vector<256x128xf32>
    %29 = vector.extract_strided_slice %14 {offsets = [0, 0, 0], sizes = [16, 16, 128], strides = [1, 1, 1]} : vector<18x16x128xf32> to vector<16x16x128xf32>
    %30 = vector.shape_cast %29 : vector<16x16x128xf32> to vector<256x128xf32>
    %31 = arith.truncf %30 : vector<256x128xf32> to vector<256x128xbf16>
    %c1 = arith.constant 1 : index
    %c0_15 = arith.constant 0 : index
    %c0_16 = arith.constant 0 : index
    %32 = vector.load %arg4[%c1, %c0_15, %c0_16] : memref<9x128x128xbf16, #tpu.memory_space<vmem>>, vector<1x128x128xbf16>
    %33 = vector.shape_cast %32 : vector<1x128x128xbf16> to vector<128x128xbf16>
    %cst_17 = arith.constant dense<0.000000e+00> : vector<256x128xf32>
    %34 = tpu.matmul %31, %33, %cst_17 {dimension_numbers = #tpu.dot_dimension_numbers<[1], [0], [0], [1], [0, 0, 1, 1], [], []>} : vector<256x128xbf16>, vector<128x128xbf16>, vector<256x128xf32> -> vector<256x128xf32>
    %35 = arith.addf %28, %34 : vector<256x128xf32>
    %36 = vector.extract_strided_slice %20 {offsets = [0, 0, 0], sizes = [16, 16, 128], strides = [1, 1, 1]} : vector<18x16x128xf32> to vector<16x16x128xf32>
    %37 = vector.shape_cast %36 : vector<16x16x128xf32> to vector<256x128xf32>
    %38 = arith.truncf %37 : vector<256x128xf32> to vector<256x128xbf16>
    %c2 = arith.constant 2 : index
    %c0_18 = arith.constant 0 : index
    %c0_19 = arith.constant 0 : index
    %39 = vector.load %arg4[%c2, %c0_18, %c0_19] : memref<9x128x128xbf16, #tpu.memory_space<vmem>>, vector<1x128x128xbf16>
    %40 = vector.shape_cast %39 : vector<1x128x128xbf16> to vector<128x128xbf16>
    %cst_20 = arith.constant dense<0.000000e+00> : vector<256x128xf32>
    %41 = tpu.matmul %38, %40, %cst_20 {dimension_numbers = #tpu.dot_dimension_numbers<[1], [0], [0], [1], [0, 0, 1, 1], [], []>} : vector<256x128xbf16>, vector<128x128xbf16>, vector<256x128xf32> -> vector<256x128xf32>
    %42 = arith.addf %35, %41 : vector<256x128xf32>
    %43 = vector.extract_strided_slice %17 {offsets = [1, 0, 0], sizes = [16, 16, 128], strides = [1, 1, 1]} : vector<18x16x128xf32> to vector<16x16x128xf32>
    %44 = vector.shape_cast %43 : vector<16x16x128xf32> to vector<256x128xf32>
    %45 = arith.truncf %44 : vector<256x128xf32> to vector<256x128xbf16>
    %c3 = arith.constant 3 : index
    %c0_21 = arith.constant 0 : index
    %c0_22 = arith.constant 0 : index
    %46 = vector.load %arg4[%c3, %c0_21, %c0_22] : memref<9x128x128xbf16, #tpu.memory_space<vmem>>, vector<1x128x128xbf16>
    %47 = vector.shape_cast %46 : vector<1x128x128xbf16> to vector<128x128xbf16>
    %cst_23 = arith.constant dense<0.000000e+00> : vector<256x128xf32>
    %48 = tpu.matmul %45, %47, %cst_23 {dimension_numbers = #tpu.dot_dimension_numbers<[1], [0], [0], [1], [0, 0, 1, 1], [], []>} : vector<256x128xbf16>, vector<128x128xbf16>, vector<256x128xf32> -> vector<256x128xf32>
    %49 = arith.addf %42, %48 : vector<256x128xf32>
    %50 = vector.extract_strided_slice %14 {offsets = [1, 0, 0], sizes = [16, 16, 128], strides = [1, 1, 1]} : vector<18x16x128xf32> to vector<16x16x128xf32>
    %51 = vector.shape_cast %50 : vector<16x16x128xf32> to vector<256x128xf32>
    %52 = arith.truncf %51 : vector<256x128xf32> to vector<256x128xbf16>
    %c4 = arith.constant 4 : index
    %c0_24 = arith.constant 0 : index
    %c0_25 = arith.constant 0 : index
    %53 = vector.load %arg4[%c4, %c0_24, %c0_25] : memref<9x128x128xbf16, #tpu.memory_space<vmem>>, vector<1x128x128xbf16>
    %54 = vector.shape_cast %53 : vector<1x128x128xbf16> to vector<128x128xbf16>
    %cst_26 = arith.constant dense<0.000000e+00> : vector<256x128xf32>
    %55 = tpu.matmul %52, %54, %cst_26 {dimension_numbers = #tpu.dot_dimension_numbers<[1], [0], [0], [1], [0, 0, 1, 1], [], []>} : vector<256x128xbf16>, vector<128x128xbf16>, vector<256x128xf32> -> vector<256x128xf32>
    %56 = arith.addf %49, %55 : vector<256x128xf32>
    %57 = vector.extract_strided_slice %20 {offsets = [1, 0, 0], sizes = [16, 16, 128], strides = [1, 1, 1]} : vector<18x16x128xf32> to vector<16x16x128xf32>
    %58 = vector.shape_cast %57 : vector<16x16x128xf32> to vector<256x128xf32>
    %59 = arith.truncf %58 : vector<256x128xf32> to vector<256x128xbf16>
    %c5 = arith.constant 5 : index
    %c0_27 = arith.constant 0 : index
    %c0_28 = arith.constant 0 : index
    %60 = vector.load %arg4[%c5, %c0_27, %c0_28] : memref<9x128x128xbf16, #tpu.memory_space<vmem>>, vector<1x128x128xbf16>
    %61 = vector.shape_cast %60 : vector<1x128x128xbf16> to vector<128x128xbf16>
    %cst_29 = arith.constant dense<0.000000e+00> : vector<256x128xf32>
    %62 = tpu.matmul %59, %61, %cst_29 {dimension_numbers = #tpu.dot_dimension_numbers<[1], [0], [0], [1], [0, 0, 1, 1], [], []>} : vector<256x128xbf16>, vector<128x128xbf16>, vector<256x128xf32> -> vector<256x128xf32>
    %63 = arith.addf %56, %62 : vector<256x128xf32>
    %64 = vector.extract_strided_slice %17 {offsets = [2, 0, 0], sizes = [16, 16, 128], strides = [1, 1, 1]} : vector<18x16x128xf32> to vector<16x16x128xf32>
    %65 = vector.shape_cast %64 : vector<16x16x128xf32> to vector<256x128xf32>
    %66 = arith.truncf %65 : vector<256x128xf32> to vector<256x128xbf16>
    %c6 = arith.constant 6 : index
    %c0_30 = arith.constant 0 : index
    %c0_31 = arith.constant 0 : index
    %67 = vector.load %arg4[%c6, %c0_30, %c0_31] : memref<9x128x128xbf16, #tpu.memory_space<vmem>>, vector<1x128x128xbf16>
    %68 = vector.shape_cast %67 : vector<1x128x128xbf16> to vector<128x128xbf16>
    %cst_32 = arith.constant dense<0.000000e+00> : vector<256x128xf32>
    %69 = tpu.matmul %66, %68, %cst_32 {dimension_numbers = #tpu.dot_dimension_numbers<[1], [0], [0], [1], [0, 0, 1, 1], [], []>} : vector<256x128xbf16>, vector<128x128xbf16>, vector<256x128xf32> -> vector<256x128xf32>
    %70 = arith.addf %63, %69 : vector<256x128xf32>
    %71 = vector.extract_strided_slice %14 {offsets = [2, 0, 0], sizes = [16, 16, 128], strides = [1, 1, 1]} : vector<18x16x128xf32> to vector<16x16x128xf32>
    %72 = vector.shape_cast %71 : vector<16x16x128xf32> to vector<256x128xf32>
    %73 = arith.truncf %72 : vector<256x128xf32> to vector<256x128xbf16>
    %c7 = arith.constant 7 : index
    %c0_33 = arith.constant 0 : index
    %c0_34 = arith.constant 0 : index
    %74 = vector.load %arg4[%c7, %c0_33, %c0_34] : memref<9x128x128xbf16, #tpu.memory_space<vmem>>, vector<1x128x128xbf16>
    %75 = vector.shape_cast %74 : vector<1x128x128xbf16> to vector<128x128xbf16>
    %cst_35 = arith.constant dense<0.000000e+00> : vector<256x128xf32>
    %76 = tpu.matmul %73, %75, %cst_35 {dimension_numbers = #tpu.dot_dimension_numbers<[1], [0], [0], [1], [0, 0, 1, 1], [], []>} : vector<256x128xbf16>, vector<128x128xbf16>, vector<256x128xf32> -> vector<256x128xf32>
    %77 = arith.addf %70, %76 : vector<256x128xf32>
    %78 = vector.extract_strided_slice %20 {offsets = [2, 0, 0], sizes = [16, 16, 128], strides = [1, 1, 1]} : vector<18x16x128xf32> to vector<16x16x128xf32>
    %79 = vector.shape_cast %78 : vector<16x16x128xf32> to vector<256x128xf32>
    %80 = arith.truncf %79 : vector<256x128xf32> to vector<256x128xbf16>
    %c8 = arith.constant 8 : index
    %c0_36 = arith.constant 0 : index
    %c0_37 = arith.constant 0 : index
    %81 = vector.load %arg4[%c8, %c0_36, %c0_37] : memref<9x128x128xbf16, #tpu.memory_space<vmem>>, vector<1x128x128xbf16>
    %82 = vector.shape_cast %81 : vector<1x128x128xbf16> to vector<128x128xbf16>
    %cst_38 = arith.constant dense<0.000000e+00> : vector<256x128xf32>
    %83 = tpu.matmul %80, %82, %cst_38 {dimension_numbers = #tpu.dot_dimension_numbers<[1], [0], [0], [1], [0, 0, 1, 1], [], []>} : vector<256x128xbf16>, vector<128x128xbf16>, vector<256x128xf32> -> vector<256x128xf32>
    %84 = arith.addf %77, %83 : vector<256x128xf32>
    %cst_39 = arith.constant dense<0.000000e+00> : vector<128xf32>
    %85 = vector.multi_reduction <add>, %84, %cst_39 [0] : vector<256x128xf32> to vector<128xf32>
    %86 = vector.shape_cast %85 : vector<128xf32> to vector<1x128xf32>
    %cst_40 = arith.constant 3.906250e-03 : f32
    %87 = vector.broadcast %cst_40 : f32 to vector<1x128xf32>
    %88 = arith.mulf %86, %87 : vector<1x128xf32>
    %89 = vector.broadcast %88 : vector<1x128xf32> to vector<256x128xf32>
    %90 = arith.subf %84, %89 : vector<256x128xf32>
    %91 = arith.mulf %90, %90 : vector<256x128xf32>
    %cst_41 = arith.constant dense<0.000000e+00> : vector<128xf32>
    %92 = vector.multi_reduction <add>, %91, %cst_41 [0] : vector<256x128xf32> to vector<128xf32>
    %93 = vector.shape_cast %92 : vector<128xf32> to vector<1x128xf32>
    %94 = tpu.concatenate %86, %93 in 0 : vector<1x128xf32>, vector<1x128xf32> -> vector<2x128xf32>
    %95 = vector.shape_cast %94 : vector<2x128xf32> to vector<1x2x128xf32>
    %c0_42 = arith.constant 0 : index
    %c0_43 = arith.constant 0 : index
    %c0_44 = arith.constant 0 : index
    %96 = vector.load %arg6[%c0_42, %c0_43, %c0_44] : memref<1x2x128xf32, #tpu.memory_space<vmem>>, vector<1x2x128xf32>
    tpu.vector_store %arg6[%c0_42, %c0_43, %c0_44], %95 {strides = array<i32>} : memref<1x2x128xf32, #tpu.memory_space<vmem>>, vector<1x2x128xf32>,
    %97 = vector.shape_cast %84 : vector<256x128xf32> to vector<1x16x16x128xf32>
    %98 = arith.truncf %97 : vector<1x16x16x128xf32> to vector<1x16x16x128xbf16>
    %c0_45 = arith.constant 0 : index
    %c0_46 = arith.constant 0 : index
    %c0_47 = arith.constant 0 : index
    %c0_48 = arith.constant 0 : index
    %99 = vector.load %arg5[%c0_45, %c0_46, %c0_47, %c0_48] : memref<1x16x16x128xbf16, #tpu.memory_space<vmem>>, vector<1x16x16x128xbf16>
    tpu.vector_store %arg5[%c0_45, %c0_46, %c0_47, %c0_48], %98 {strides = array<i32>} : memref<1x16x16x128xbf16, #tpu.memory_space<vmem>>, vector<1x16x16x128xbf16>,
    return
  }
  func.func @transform_0(%arg0: i32) -> (i32, i32, i32, i32) {
    %c0_i32 = arith.constant 0 : i32
    %c0_i32_0 = arith.constant 0 : i32
    %c0_i32_1 = arith.constant 0 : i32
    %c0_i32_2 = arith.constant 0 : i32
    return %arg0, %c0_i32, %c0_i32_0, %c0_i32_1 : i32, i32, i32, i32
  }
  func.func @transform_1(%arg0: i32) -> (i32, i32) {
    %c0_i32 = arith.constant 0 : i32
    %c0_i32_0 = arith.constant 0 : i32
    %c0_i32_1 = arith.constant 0 : i32
    return %c0_i32, %c0_i32_0 : i32, i32
  }
  func.func @transform_2(%arg0: i32) -> (i32, i32) {
    %c0_i32 = arith.constant 0 : i32
    %c0_i32_0 = arith.constant 0 : i32
    %c0_i32_1 = arith.constant 0 : i32
    return %c0_i32, %c0_i32_0 : i32, i32
  }
  func.func @transform_3(%arg0: i32) -> (i32, i32, i32) {
    %c0_i32 = arith.constant 0 : i32
    %c0_i32_0 = arith.constant 0 : i32
    %c0_i32_1 = arith.constant 0 : i32
    %c0_i32_2 = arith.constant 0 : i32
    return %c0_i32, %c0_i32_0, %c0_i32_1 : i32, i32, i32
  }
  func.func @transform_4(%arg0: i32) -> (i32, i32, i32, i32) {
    %c0_i32 = arith.constant 0 : i32
    %c0_i32_0 = arith.constant 0 : i32
    %c0_i32_1 = arith.constant 0 : i32
    %c0_i32_2 = arith.constant 0 : i32
    return %arg0, %c0_i32, %c0_i32_0, %c0_i32_1 : i32, i32, i32, i32
  }
  func.func @transform_5(%arg0: i32) -> (i32, i32, i32) {
    %c0_i32 = arith.constant 0 : i32
    %c0_i32_0 = arith.constant 0 : i32
    %c0_i32_1 = arith.constant 0 : i32
    return %arg0, %c0_i32, %c0_i32_0 : i32, i32, i32
  }
}

</mosaic_0001>

<bundles_post_ra>
// kernel: residual_block.5
= control target key start
LH: loop header
LB: loop body
LE: loop exit
PB: predicated region body
PF: predicated region fallthrough
CT: control target
= control target key end

     0   :  { %s696_s15 = smov 0   ;;  %s884_s0 = inlined_call_operand.vmem [shape: bf16[512,128], index: 0, kind: input, shape index: {}]   ;;  %s885_s1 = inlined_call_operand.vmem [shape: f32[512,128], index: 1, kind: input, shape index: {}]   ;;  %s886_s2 = inlined_call_operand.vmem [shape: f32[1,128], index: 2, kind: input, shape index: {}]   ;;  %s887_s3 = inlined_call_operand.vmem [shape: f32[1,128], index: 3, kind: input, shape index: {}]   ;;  %s888_s4 = inlined_call_operand.vmem [shape: f32[512,128], index: 4, kind: output, shape index: {}]  }
   0x1 LB: > { %s561_s16 = sadd.s32 4294967295, %s669_s15   ;;  %p565_p0 = scmp.ge.s32.totalorder %s669_s15, 1  ;;  %s669_s15 = sphi %s696_s15, %s14_s15  }
   0x2   : > { %p174_p1 = scmp.lt.s32.totalorder %s669_s15, 3 }
   0x4   : > { %p175_p2 = pnand %p565_p0, %p174_p1 }
   0x5   : > { %s566_s17 = sshll.u32 (!%p175_p2), %s561_s16, 5  ;;  %v717_v1 = vld [vmem:[%s886_s2] ss:$0 sm:$0xff] (!%p175_p2) }
   0x6   : > { %178 = sbr.rel (%p175_p2) target bundleno = 60 (0x3c), region = 36  ;;  %p206_p3 = scmp.lt.s32.totalorder (!%p175_p2), %s566_s17, 63  ;;  %v730_v5 = vld [vmem:[%s887_s3] ss:$0 sm:$0xff] (!%p175_p2) }
   0xd   : > { %s890_s17 = smov (!%p206_p3, %s566_s17), 63 }
   0xe   : > { %s567_s18 = sshll.u32 %s890_s17, 2  ;;  %s569_s19 = sshll.u32 %s890_s17, 3 }
   0xf   : > { %s711_s22 = scalar_lea.vmem %s884_s0, %s567_s18  ;;  %s724_s27 = scalar_lea.vmem %s885_s1, %s569_s19 }
  0x10   : > { %v577_v0 = vld [vmem:[%s711_s22] sm:$0xff]   ;;  %v640_v4 = vld [vmem:[%s711_s22 + $0x8] sm:$0xff]   ;;  %v641_v8 = vld [vmem:[%s711_s22 + $0x10] sm:$0xff]   ;;  %s761_s6 = scalar_lea.vmem %s888_s4, %s569_s19 }
  0x11   : > { %v578_v2 = vunpack.c.l.bf16 %v577_v0  ;;  %v579_v3 = vunpack.c.h.bf16 %v577_v0  ;;  %v582_v6 = vunpack.c.l.bf16 %v640_v4  ;;  %v583_v7 = vunpack.c.h.bf16 %v640_v4  ;;  %v642_v13 = vld [vmem:[%s711_s22 + $0x18] sm:$0xff]   ;;  %v365_v14 = vld [vmem:[%s724_s27] sm:$0xff]  ;;  %v366_v15 = vld [vmem:[%s724_s27 + $0x8] sm:$0xff] }
  0x12   : > { %v586_v11 = vunpack.c.l.bf16 %v641_v8  ;;  %v587_v12 = vunpack.c.h.bf16 %v641_v8  ;;  %v590_v18 = vunpack.c.l.bf16 %v642_v13  ;;  %v591_v19 = vunpack.c.h.bf16 %v642_v13  ;;  %v367_v22 = vld [vmem:[%s724_s27 + $0x10] sm:$0xff]  ;;  %v368_v23 = vld [vmem:[%s724_s27 + $0x18] sm:$0xff]  ;;  %v369_v28 = vld [vmem:[%s724_s27 + $0x20] sm:$0xff] }
  0x13   : > { %v294_v9 = vmul.f32 %v578_v2, %v717_v1  ;;  %v295_v10 = vmul.f32 %v579_v3, %v717_v1  ;;  %v296_v16 = vmul.f32 %v582_v6, %v717_v1  ;;  %v297_v17 = vmul.f32 %v583_v7, %v717_v1  ;;  %v370_v29 = vld [vmem:[%s724_s27 + $0x28] sm:$0xff]  ;;  %v371_v36 = vld [vmem:[%s724_s27 + $0x30] sm:$0xff]  ;;  %v372_v37 = vld [vmem:[%s724_s27 + $0x38] sm:$0xff] }
  0x14   : > { %v298_v24 = vmul.f32 %v586_v11, %v717_v1  ;;  %v299_v25 = vmul.f32 %v587_v12, %v717_v1  ;;  %v300_v30 = vmul.f32 %v590_v18, %v717_v1  ;;  %v301_v31 = vmul.f32 %v591_v19, %v717_v1  ;;  %v643_v42 = vld [vmem:[%s711_s22 + $0x20] sm:$0xff]   ;;  %v644_v47 = vld [vmem:[%s711_s22 + $0x28] sm:$0xff]   ;;  %v645_v52 = vld [vmem:[%s711_s22 + $0x30] sm:$0xff]  }
  0x15   : > { %v333_v20 = vadd.f32 %v730_v5, %v294_v9  ;;  %v334_v21 = vadd.f32 %v730_v5, %v295_v10  ;;  %v335_v26 = vadd.f32 %v730_v5, %v296_v16  ;;  %v336_v27 = vadd.f32 %v730_v5, %v297_v17  ;;  %v646_v57 = vld [vmem:[%s711_s22 + $0x38] sm:$0xff]   ;;  %v373_v3 = vld [vmem:[%s724_s27 + $0x40] sm:$0xff]  ;;  %v374_v4 = vld [vmem:[%s724_s27 + $0x48] sm:$0xff] }
  0x16   : > { %v337_v34 = vadd.f32 %v730_v5, %v298_v24  ;;  %v338_v35 = vadd.f32 %v730_v5, %v299_v25  ;;  %v339_v40 = vadd.f32 %v730_v5, %v300_v30  ;;  %v340_v41 = vadd.f32 %v730_v5, %v301_v31  ;;  %v375_v12 = vld [vmem:[%s724_s27 + $0x50] sm:$0xff]  ;;  %v376_v13 = vld [vmem:[%s724_s27 + $0x58] sm:$0xff]  ;;  %v377_v18 = vld [vmem:[%s724_s27 + $0x60] sm:$0xff] }
  0x17   : > { %v397_v32 = vadd.f32 %v365_v14, %v333_v20  ;;  %v398_v33 = vadd.f32 %v366_v15, %v334_v21  ;;  %v399_v38 = vadd.f32 %v367_v22, %v335_v26  ;;  %v400_v39 = vadd.f32 %v368_v23, %v336_v27  ;;  %v378_v19 = vld [vmem:[%s724_s27 + $0x68] sm:$0xff]  ;;  %v379_v26 = vld [vmem:[%s724_s27 + $0x70] sm:$0xff]  ;;  %v380_v27 = vld [vmem:[%s724_s27 + $0x78] sm:$0xff] }
  0x18   : > { %v401_v45 = vadd.f32 %v369_v28, %v337_v34  ;;  %v402_v46 = vadd.f32 %v370_v29, %v338_v35  ;;  %v403_v50 = vadd.f32 %v371_v36, %v339_v40  ;;  %v404_v51 = vadd.f32 %v372_v37, %v340_v41  ;;  %v648_v37 = vld [vmem:[%s711_s22 + $0x48] sm:$0xff]  }
  0x19   : > { %v429_v43 = vmax.f32 %v397_v32, 0.0  ;;  %v430_v44 = vmax.f32 %v398_v33, 0.0  ;;  %v431_v48 = vmax.f32 %v399_v38, 0.0  ;;  %v432_v49 = vmax.f32 %v400_v39, 0.0  ;;  %v647_v32 = vld [vmem:[%s711_s22 + $0x40] sm:$0xff]  }
  0x1a   : > { %v433_v53 = vmax.f32 %v401_v45, 0.0  ;;  %v434_v54 = vmax.f32 %v402_v46, 0.0  ;;  %v594_v55 = vunpack.c.l.bf16 %v643_v42  ;;  %v595_v56 = vunpack.c.h.bf16 %v643_v42  ;;  %v649_v42 = vld [vmem:[%s711_s22 + $0x50] sm:$0xff]  }
  0x1b   : > { %461 = vst [vmem:[%s761_s6] sm:$0xff] %v429_v43  ;;  %462 = vst [vmem:[%s761_s6 + $0x8] sm:$0xff] %v430_v44  ;;  %v435_v58 = vmax.f32 %v403_v50, 0.0  ;;  %v436_v59 = vmax.f32 %v404_v51, 0.0  ;;  %v598_v60 = vunpack.c.l.bf16 %v644_v47  ;;  %v599_v61 = vunpack.c.h.bf16 %v644_v47  ;;  %v650_v47 = vld [vmem:[%s711_s22 + $0x58] sm:$0xff]  }
  0x1c   : > { %463 = vst [vmem:[%s761_s6 + $0x10] sm:$0xff] %v431_v48  ;;  %464 = vst [vmem:[%s761_s6 + $0x18] sm:$0xff] %v432_v49  ;;  %v302_v62 = vmul.f32 %v594_v55, %v717_v1  ;;  %v303_v63 = vmul.f32 %v595_v56, %v717_v1  ;;  %v602_v0 = vunpack.c.l.bf16 %v645_v52  ;;  %v603_v2 = vunpack.c.h.bf16 %v645_v52  ;;  %v381_v56 = vld [vmem:[%s724_s27 + $0x80] sm:$0xff] }
  0x1d   : > { %465 = vst [vmem:[%s761_s6 + $0x20] sm:$0xff] %v433_v53  ;;  %466 = vst [vmem:[%s761_s6 + $0x28] sm:$0xff] %v434_v54  ;;  %v304_v6 = vmul.f32 %v598_v60, %v717_v1  ;;  %v305_v7 = vmul.f32 %v599_v61, %v717_v1  ;;  %v606_v8 = vunpack.c.l.bf16 %v646_v57  ;;  %v607_v9 = vunpack.c.h.bf16 %v646_v57  ;;  %v382_v57 = vld [vmem:[%s724_s27 + $0x88] sm:$0xff] }
  0x1e   : > { %467 = vst [vmem:[%s761_s6 + $0x30] sm:$0xff] %v435_v58  ;;  %468 = vst [vmem:[%s761_s6 + $0x38] sm:$0xff] %v436_v59  ;;  %v341_v10 = vadd.f32 %v730_v5, %v302_v62  ;;  %v342_v11 = vadd.f32 %v730_v5, %v303_v63  ;;  %v306_v14 = vmul.f32 %v602_v0, %v717_v1  ;;  %v610_v45 = vunpack.c.l.bf16 %v647_v32  ;;  %v383_v0 = vld [vmem:[%s724_s27 + $0x90] sm:$0xff] }
  0x1f   : > { %v307_v15 = vmul.f32 %v603_v2, %v717_v1  ;;  %v343_v16 = vadd.f32 %v730_v5, %v304_v6  ;;  %v344_v17 = vadd.f32 %v730_v5, %v305_v7  ;;  %v308_v20 = vmul.f32 %v606_v8, %v717_v1  ;;  %v384_v2 = vld [vmem:[%s724_s27 + $0x98] sm:$0xff]  ;;  %v385_v8 = vld [vmem:[%s724_s27 + $0xa0] sm:$0xff] }
  0x20   : > { %v309_v21 = vmul.f32 %v607_v9, %v717_v1  ;;  %v405_v22 = vadd.f32 %v373_v3, %v341_v10  ;;  %v406_v23 = vadd.f32 %v374_v4, %v342_v11  ;;  %v345_v24 = vadd.f32 %v730_v5, %v306_v14  ;;  %v386_v9 = vld [vmem:[%s724_s27 + $0xa8] sm:$0xff] }
  0x21   : > { %v346_v25 = vadd.f32 %v730_v5, %v307_v15  ;;  %v407_v28 = vadd.f32 %v375_v12, %v343_v16  ;;  %v408_v29 = vadd.f32 %v376_v13, %v344_v17  ;;  %v347_v30 = vadd.f32 %v730_v5, %v308_v20  ;;  %v387_v16 = vld [vmem:[%s724_s27 + $0xb0] sm:$0xff]  ;;  %v388_v17 = vld [vmem:[%s724_s27 + $0xb8] sm:$0xff] }
  0x22   : > { %v348_v31 = vadd.f32 %v730_v5, %v309_v21  ;;  %v437_v33 = vmax.f32 %v405_v22, 0.0  ;;  %v438_v34 = vmax.f32 %v406_v23, 0.0  ;;  %v409_v35 = vadd.f32 %v377_v18, %v345_v24  ;;  %v651_v22 = vld [vmem:[%s711_s22 + $0x60] sm:$0xff]  }
  0x23   : > { %v410_v36 = vadd.f32 %v378_v19, %v346_v25  ;;  %v439_v38 = vmax.f32 %v407_v28, 0.0  ;;  %v440_v39 = vmax.f32 %v408_v29, 0.0  ;;  %v411_v40 = vadd.f32 %v379_v26, %v347_v30 }
  0x24   : > { %v412_v41 = vadd.f32 %v380_v27, %v348_v31  ;;  %469 = vst [vmem:[%s761_s6 + $0x40] sm:$0xff] %v437_v33  ;;  %470 = vst [vmem:[%s761_s6 + $0x48] sm:$0xff] %v438_v34  ;;  %v441_v43 = vmax.f32 %v409_v35, 0.0  ;;  %v611_v46 = vunpack.c.h.bf16 %v647_v32  ;;  %v614_v50 = vunpack.c.l.bf16 %v648_v37  ;;  %v652_v27 = vld [vmem:[%s711_s22 + $0x68] sm:$0xff]   ;;  %v653_v32 = vld [vmem:[%s711_s22 + $0x70] sm:$0xff]  }
  0x25   : > { %v442_v44 = vmax.f32 %v410_v36, 0.0  ;;  %471 = vst [vmem:[%s761_s6 + $0x50] sm:$0xff] %v439_v38  ;;  %472 = vst [vmem:[%s761_s6 + $0x58] sm:$0xff] %v440_v39  ;;  %v443_v48 = vmax.f32 %v411_v40, 0.0  ;;  %v615_v51 = vunpack.c.h.bf16 %v648_v37  ;;  %v310_v52 = vmul.f32 %v610_v45, %v717_v1  ;;  %v654_v37 = vld [vmem:[%s711_s22 + $0x78] sm:$0xff]  }
  0x26   : > { %v444_v49 = vmax.f32 %v412_v41, 0.0  ;;  %473 = vst [vmem:[%s761_s6 + $0x60] sm:$0xff] %v441_v43  ;;  %v311_v53 = vmul.f32 %v611_v46, %v717_v1  ;;  %v618_v54 = vunpack.c.l.bf16 %v649_v42  ;;  %v619_v55 = vunpack.c.h.bf16 %v649_v42  ;;  %v389_v46 = vld [vmem:[%s724_s27 + $0xc0] sm:$0xff] }
  0x27   : > { %474 = vst [vmem:[%s761_s6 + $0x68] sm:$0xff] %v442_v44  ;;  %475 = vst [vmem:[%s761_s6 + $0x70] sm:$0xff] %v443_v48  ;;  %v312_v58 = vmul.f32 %v614_v50, %v717_v1  ;;  %v313_v59 = vmul.f32 %v615_v51, %v717_v1  ;;  %v622_v60 = vunpack.c.l.bf16 %v650_v47  ;;  %v623_v61 = vunpack.c.h.bf16 %v650_v47  ;;  %v390_v47 = vld [vmem:[%s724_s27 + $0xc8] sm:$0xff] }
  0x28   : > { %476 = vst [vmem:[%s761_s6 + $0x78] sm:$0xff] %v444_v49  ;;  %v349_v62 = vadd.f32 %v730_v5, %v310_v52  ;;  %v350_v63 = vadd.f32 %v730_v5, %v311_v53  ;;  %v314_v3 = vmul.f32 %v618_v54, %v717_v1  ;;  %v315_v4 = vmul.f32 %v619_v55, %v717_v1  ;;  %v391_v54 = vld [vmem:[%s724_s27 + $0xd0] sm:$0xff]  ;;  %v392_v55 = vld [vmem:[%s724_s27 + $0xd8] sm:$0xff] }
  0x29   : > { %v351_v6 = vadd.f32 %v730_v5, %v312_v58  ;;  %v352_v7 = vadd.f32 %v730_v5, %v313_v59  ;;  %v316_v10 = vmul.f32 %v622_v60, %v717_v1  ;;  %v317_v11 = vmul.f32 %v623_v61, %v717_v1  ;;  %v393_v60 = vld [vmem:[%s724_s27 + $0xe0] sm:$0xff]  ;;  %v394_v61 = vld [vmem:[%s724_s27 + $0xe8] sm:$0xff] }
  0x2a   : > { %v413_v12 = vadd.f32 %v381_v56, %v349_v62  ;;  %v414_v13 = vadd.f32 %v382_v57, %v350_v63  ;;  %v353_v14 = vadd.f32 %v730_v5, %v314_v3  ;;  %v354_v15 = vadd.f32 %v730_v5, %v315_v4 }
  0x2b   : > { %v415_v18 = vadd.f32 %v383_v0, %v351_v6  ;;  %v416_v19 = vadd.f32 %v384_v2, %v352_v7  ;;  %v355_v20 = vadd.f32 %v730_v5, %v316_v10  ;;  %v356_v21 = vadd.f32 %v730_v5, %v317_v11  ;;  %v395_v6 = vld [vmem:[%s724_s27 + $0xf0] sm:$0xff]  ;;  %v396_v7 = vld [vmem:[%s724_s27 + $0xf8] sm:$0xff] }
  0x2c   : > { %v445_v23 = vmax.f32 %v413_v12, 0.0  ;;  %v446_v24 = vmax.f32 %v414_v13, 0.0  ;;  %v417_v25 = vadd.f32 %v385_v8, %v353_v14  ;;  %v418_v26 = vadd.f32 %v386_v9, %v354_v15 }
  0x2d   : > { %v447_v28 = vmax.f32 %v415_v18, 0.0  ;;  %v448_v29 = vmax.f32 %v416_v19, 0.0  ;;  %v419_v30 = vadd.f32 %v387_v16, %v355_v20  ;;  %v420_v31 = vadd.f32 %v388_v17, %v356_v21 }
  0x2e   : > { %477 = vst [vmem:[%s761_s6 + $0x80] sm:$0xff] %v445_v23  ;;  %478 = vst [vmem:[%s761_s6 + $0x88] sm:$0xff] %v446_v24  ;;  %v449_v33 = vmax.f32 %v417_v25, 0.0  ;;  %v450_v34 = vmax.f32 %v418_v26, 0.0  ;;  %v626_v35 = vunpack.c.l.bf16 %v651_v22  ;;  %v627_v36 = vunpack.c.h.bf16 %v651_v22 }
  0x2f   : > { %479 = vst [vmem:[%s761_s6 + $0x90] sm:$0xff] %v447_v28  ;;  %480 = vst [vmem:[%s761_s6 + $0x98] sm:$0xff] %v448_v29  ;;  %v451_v38 = vmax.f32 %v419_v30, 0.0  ;;  %v452_v39 = vmax.f32 %v420_v31, 0.0  ;;  %v630_v40 = vunpack.c.l.bf16 %v652_v27  ;;  %v631_v41 = vunpack.c.h.bf16 %v652_v27 }
  0x30   : > { %481 = vst [vmem:[%s761_s6 + $0xa0] sm:$0xff] %v449_v33  ;;  %482 = vst [vmem:[%s761_s6 + $0xa8] sm:$0xff] %v450_v34  ;;  %v318_v42 = vmul.f32 %v626_v35, %v717_v1  ;;  %v319_v43 = vmul.f32 %v627_v36, %v717_v1  ;;  %v634_v44 = vunpack.c.l.bf16 %v653_v32  ;;  %v635_v45 = vunpack.c.h.bf16 %v653_v32 }
  0x31   : > { %483 = vst [vmem:[%s761_s6 + $0xb0] sm:$0xff] %v451_v38  ;;  %484 = vst [vmem:[%s761_s6 + $0xb8] sm:$0xff] %v452_v39  ;;  %v320_v48 = vmul.f32 %v630_v40, %v717_v1  ;;  %v321_v49 = vmul.f32 %v631_v41, %v717_v1  ;;  %v638_v50 = vunpack.c.l.bf16 %v654_v37  ;;  %v639_v51 = vunpack.c.h.bf16 %v654_v37 }
  0x32   : > { %v357_v52 = vadd.f32 %v730_v5, %v318_v42  ;;  %v358_v53 = vadd.f32 %v730_v5, %v319_v43  ;;  %v322_v56 = vmul.f32 %v634_v44, %v717_v1  ;;  %v323_v57 = vmul.f32 %v635_v45, %v717_v1 }
  0x33   : > { %v359_v58 = vadd.f32 %v730_v5, %v320_v48  ;;  %v360_v59 = vadd.f32 %v730_v5, %v321_v49  ;;  %v324_v62 = vmul.f32 %v638_v50, %v717_v1  ;;  %v325_v63 = vmul.f32 %v639_v51, %v717_v1 }
  0x34   : > { %v421_v0 = vadd.f32 %v389_v46, %v357_v52  ;;  %v422_v2 = vadd.f32 %v390_v47, %v358_v53  ;;  %v361_v3 = vadd.f32 %v730_v5, %v322_v56  ;;  %v362_v4 = vadd.f32 %v730_v5, %v323_v57 }
  0x35   : > { %v423_v8 = vadd.f32 %v391_v54, %v359_v58  ;;  %v424_v9 = vadd.f32 %v392_v55, %v360_v59  ;;  %v363_v10 = vadd.f32 %v730_v5, %v324_v62  ;;  %v364_v11 = vadd.f32 %v730_v5, %v325_v63 }
  0x36   : > { %v453_v12 = vmax.f32 %v421_v0, 0.0  ;;  %v454_v1 = vmax.f32 %v422_v2, 0.0  ;;  %v425_v13 = vadd.f32 %v393_v60, %v361_v3  ;;  %v426_v14 = vadd.f32 %v394_v61, %v362_v4 }
  0x37   : > { %v455_v15 = vmax.f32 %v423_v8, 0.0  ;;  %v456_v16 = vmax.f32 %v424_v9, 0.0  ;;  %v427_v17 = vadd.f32 %v395_v6, %v363_v10  ;;  %v428_v18 = vadd.f32 %v396_v7, %v364_v11 }
  0x38   : > { %485 = vst [vmem:[%s761_s6 + $0xc0] sm:$0xff] %v453_v12  ;;  %486 = vst [vmem:[%s761_s6 + $0xc8] sm:$0xff] %v454_v1  ;;  %v457_v19 = vmax.f32 %v425_v13, 0.0  ;;  %v458_v20 = vmax.f32 %v426_v14, 0.0 }
  0x39   : > { %487 = vst [vmem:[%s761_s6 + $0xd0] sm:$0xff] %v455_v15  ;;  %488 = vst [vmem:[%s761_s6 + $0xd8] sm:$0xff] %v456_v16  ;;  %v459_v21 = vmax.f32 %v427_v17, 0.0  ;;  %v460_v5 = vmax.f32 %v428_v18, 0.0 }
  0x3a   : > { %489 = vst [vmem:[%s761_s6 + $0xe0] sm:$0xff] %v457_v19  ;;  %490 = vst [vmem:[%s761_s6 + $0xe8] sm:$0xff] %v458_v20 }
  0x3b   : > { %491 = vst [vmem:[%s761_s6 + $0xf0] sm:$0xff] %v459_v21  ;;  %492 = vst [vmem:[%s761_s6 + $0xf8] sm:$0xff] %v460_v5 }
  0x3c PF: > { %s14_s15 = sadd.s32 1, %s669_s15  }
  0x3d   : > { %p11_p4 = scmp.ge.s32.totalorder %s14_s15, 4  }
  0x3f   :  { %13 = sbr.rel (!%p11_p4) target bundleno = 1 (0x1), region = 69 }

// kernel: residual_block.3
= control target key start
LH: loop header
LB: loop body
LE: loop exit
PB: predicated region body
PF: predicated region fallthrough
CT: control target
= control target key end

     0   :  { %s4898_s12 = smov 0   ;;  %s6070_s0 = inlined_call_operand.vmem [shape: f32[2,16,16,128], index: 0, kind: input, shape index: {}]   ;;  %s6071_s1 = inlined_call_operand.vmem [shape: bf16[9,128,128], index: 1, kind: input, shape index: {}]   ;;  %s6072_s2 = inlined_call_operand.vmem [shape: bf16[2,16,16,128], index: 2, kind: output, shape index: {0}]   ;;  %s6073_s3 = inlined_call_operand.vmem [shape: f32[2,2,128], index: 3, kind: output, shape index: {1}]  }
   0x1 LB: > { %s3147_s13 = sadd.s32 4294967295, %s4873_s12   ;;  %p3151_p0 = scmp.ge.s32.totalorder %s4873_s12, 1  ;;  %s4873_s12 = sphi %s4898_s12, %s14_s12  }
   0x2   : > { %p140_p1 = scmp.lt.s32.totalorder %s4873_s12, 3 }
   0x4   : > { %p141_p2 = pnand %p3151_p0, %p140_p1 }
   0x6   : > { %144 = sbr.rel (%p141_p2) target bundleno = 644 (0x284), region = 28 }
   0xd   : > { %v4787_v0 = vld [vmem:[%s6071_s1 + $0x40] sm:$0xff]   ;;  %v6074_v2 = vmov 0.0|0.0   ;;  %v4789_v3 = vld [vmem:[%s6071_s1 + $0x48] sm:$0xff]   ;;  %p168_p3 = scmp.lt.s32.totalorder %s3147_s13, 1  ;;  %v4791_v5 = vld [vmem:[%s6071_s1 + $0x50] sm:$0xff]   ;;  %vm248_vm0 = vcmask 1040384  }
   0xe   : > { %v4788_v1 = vld [vmem:[%s6071_s1 + $0x100] sm:$0xff]   ;;  %4088 = vmatprep.mubr.bf16.mxu1 %v6074_v2  ;;  %4072 = vmatprep.subr.bf16.mxu1 %v4787_v0  ;;  %v4790_v4 = vld [vmem:[%s6071_s1 + $0x108] sm:$0xff]   ;;  %v4792_v6 = vld [vmem:[%s6071_s1 + $0x110] sm:$0xff]   ;;  %vm350_vm1 = vcmask 1046528   ;;  %vm4876_vm2 = vmmov 1  }
   0xf   : > { %4264 = vmatprep.subr.bf16.mxu0 %v4788_v1  ;;  %4073 = vmatpush3.bf16.msra.mxu1 %v4787_v0  ;;  %s6112_s13 = smov (!%p168_p3, %s3147_s13), 1  ;;  %v4793_v7 = vld [vmem:[%s6071_s1 + $0x58] sm:$0xff]   ;;  %v4795_v9 = vld [vmem:[%s6071_s1 + $0x60] sm:$0xff]   ;;  %v4797_v11 = vld [vmem:[%s6071_s1 + $0x68] sm:$0xff]  }
  0x10   : > { %4265 = vmatpush3.bf16.msra.mxu0 %v4788_v1  ;;  %4074 = vmatprep.subr.bf16.mxu1 %v4789_v3  ;;  %v4794_v8 = vld [vmem:[%s6071_s1 + $0x118] sm:$0xff]   ;;  %s3727_s30 = sshll.u32 %s6112_s13, 8  ;;  %v4796_v10 = vld [vmem:[%s6071_s1 + $0x120] sm:$0xff]   ;;  %v4798_v14 = vld [vmem:[%s6071_s1 + $0x128] sm:$0xff]   ;;  %s3156_s7 = sshll.u32 %s6112_s13, 1 }
  0x11   : > { %4266 = vmatprep.subr.bf16.mxu0 %v4790_v4  ;;  %s4943_s10 = scalar_lea.vmem %s6070_s0, %s3727_s30  ;;  %v4799_v19 = vld [vmem:[%s6071_s1 + $0x70] sm:$0xff]   ;;  %v4801_v26 = vld [vmem:[%s6071_s1 + $0x78] sm:$0xff]   ;;  %v4803_v31 = vld [vmem:[%s6071_s1] sm:$0xff]   ;;  %s3728_s30 = sshll.u32 %s6112_s13, 7 }
  0x12   : > { %v4949_v12 = vld [vmem:[%s4943_s10] sm:$0xff]  ;;  %v4952_v13 = vld [vmem:[%s4943_s10 + $0x8] sm:$0xff]  ;;  %v4800_v20 = vld [vmem:[%s6071_s1 + $0x130] sm:$0xff]   ;;  %s5852_s6 = scalar_lea.vmem %s6072_s2, %s3728_s30 }
  0x13   : > { %4075 = vmatpush3.bf16.msra.mxu1 %v4789_v3  ;;  %v251_v15 = vrot.slane %v4949_v12, 7  ;;  %v252_v16 = vrot.slane %v4952_v13, 7  ;;  %v485_v17 = vpack.c.bf16 %v4952_v13, %v4949_v12  ;;  %v4971_v22 = vld [vmem:[%s4943_s10 + $0x20] sm:$0xff]  ;;  %v4974_v23 = vld [vmem:[%s4943_s10 + $0x28] sm:$0xff]  ;;  %v4802_v27 = vld [vmem:[%s6071_s1 + $0x138] sm:$0xff]   ;;  %v353_v0 = vrot.slane %v4949_v12, 1 }
  0x14   : > { %4267 = vmatpush3.bf16.msra.mxu0 %v4790_v4  ;;  %4076 = vmatprep.subr.bf16.mxu1 %v4791_v5  ;;  %v257_v24 = vrot.slane %v4971_v22, 7  ;;  %v258_v25 = vrot.slane %v4974_v23, 7  ;;  %v4986_v29 = vld [vmem:[%s4943_s10 + $0x40] sm:$0xff]  ;;  %v4994_v32 = vld [vmem:[%s4943_s10 + $0x48] sm:$0xff]  ;;  %v4998_v34 = vld [vmem:[%s4943_s10 + $0x10] sm:$0xff]  ;;  %v5026_v45 = vpack.c.bf16 %v4974_v23, %v4971_v22  ;;  %v354_v1 = vrot.slane %v4952_v13, 1 }
  0x15   : > { %4268 = vmatprep.subr.bf16.mxu0 %v4792_v6  ;;  %v253_v18 = vsel %vm248_vm0, %v251_v15, %v252_v16  ;;  %4280 = vmatprep.mubr.bf16.mxu0 %v485_v17  ;;  %v263_v33 = vrot.slane %v4986_v29, 7  ;;  %v5001_v35 = vld [vmem:[%s4943_s10 + $0x18] sm:$0xff]  ;;  %v264_v36 = vrot.slane %v4994_v32, 7  ;;  %v4804_v37 = vld [vmem:[%s6071_s1 + $0x140] sm:$0xff]   ;;  %v5018_v42 = vld [vmem:[%s4943_s10 + $0x68] sm:$0xff]  ;;  %v5056_v55 = vpack.c.bf16 %v4994_v32, %v4986_v29 }
  0x16   : > { %v4968_v21 = vpack.c.bf16 %v253_v18, %v251_v15  ;;  %v259_v28 = vsel %vm248_vm0, %v257_v24, %v258_v25  ;;  %v5010_v39 = vpack.c.bf16 %v5001_v35, %v4998_v34  ;;  %v5013_v40 = vld [vmem:[%s4943_s10 + $0x60] sm:$0xff]  ;;  %v4805_v44 = vld [vmem:[%s6071_s1 + $0x148] sm:$0xff]   ;;  %v270_v46 = vrot.slane %v5018_v42, 7  ;;  %v5034_v48 = vld [vmem:[%s4943_s10 + $0x30] sm:$0xff] }
  0x17   : > { %4077 = vmatpush3.bf16.msra.mxu1 %v4791_v5  ;;  %v4988_v30 = vpack.c.bf16 %v259_v28, %v257_v24  ;;  %v265_v38 = vsel %vm248_vm0, %v263_v33, %v264_v36  ;;  %v269_v43 = vrot.slane %v5013_v40, 7  ;;  %v4806_v47 = vld [vmem:[%s6071_s1 + $0x8] sm:$0xff]   ;;  %v5039_v50 = vld [vmem:[%s4943_s10 + $0x38] sm:$0xff]  ;;  %v4809_v51 = vld [vmem:[%s6071_s1 + $0x10] sm:$0xff]   ;;  %v5086_v63 = vpack.c.bf16 %v5018_v42, %v5013_v40 }
  0x18   : > { %4269 = vmatpush3.bf16.msra.mxu0 %v4792_v6  ;;  %4078 = vmatprep.subr.bf16.mxu1 %v4793_v7  ;;  %6089 = vst [vmem:[#allocation2_spill] sm:$0xff] %v4968_v21  ;;  %v5015_v41 = vpack.c.bf16 %v265_v38, %v263_v33  ;;  %v4807_v53 = vld [vmem:[%s6071_s1 + $0x150] sm:$0xff]   ;;  %v5052_v54 = vpack.c.bf16 %v5039_v50, %v5034_v48  ;;  %v4808_v56 = vld [vmem:[%s6071_s1 + $0x158] sm:$0xff]   ;;  %v4810_v60 = vld [vmem:[%s6071_s1 + $0x160] sm:$0xff]   ;;  %v362_v33 = vrot.slane %v5034_v48, 1  ;;  %v365_v38 = vrot.slane %v4986_v29, 1 }
  0x19   : > { %4270 = vmatprep.subr.bf16.mxu0 %v4794_v8  ;;  %v271_v49 = vsel %vm248_vm0, %v269_v43, %v270_v46  ;;  %v4812_v57 = vld [vmem:[%s6071_s1 + $0x18] sm:$0xff]   ;;  %v5069_v58 = vld [vmem:[%s4943_s10 + $0x50] sm:$0xff]  ;;  %v4815_v61 = vld [vmem:[%s6071_s1 + $0x20] sm:$0xff]  }
  0x1a   : > { %v5044_v52 = vpack.c.bf16 %v271_v49, %v269_v43  ;;  %v5072_v59 = vld [vmem:[%s4943_s10 + $0x58] sm:$0xff]  ;;  %v4811_v3 = vld [vmem:[%s6071_s1 + $0x168] sm:$0xff]   ;;  %v5095_v4 = vld [vmem:[%s4943_s10 + $0x70] sm:$0xff] }
  0x1b   : > { %4079 = vmatpush3.bf16.msra.mxu1 %v4793_v7  ;;  %v5082_v62 = vpack.c.bf16 %v5072_v59, %v5069_v58  ;;  %v4817_v5 = vld [vmem:[%s6071_s1 + $0x28] sm:$0xff]   ;;  %v5104_v6 = vld [vmem:[%s4943_s10 + $0x78] sm:$0xff]  ;;  %v4813_v7 = vld [vmem:[%s6071_s1 + $0x170] sm:$0xff]  }
  0x1c   : > { %4271 = vmatpush3.bf16.msra.mxu0 %v4794_v8  ;;  %4080 = vmatprep.subr.bf16.mxu1 %v4795_v9  ;;  %v355_v8 = vsel %vm350_vm1, %v353_v0, %v354_v1  ;;  %vm5117_vm3 = vmpackc.low %vm350_vm1, %vm4876_vm2  ;;  %v5123_v13 = vpack.c.bf16 %v5104_v6, %v5095_v4  ;;  %v4814_v15 = vld [vmem:[%s6071_s1 + $0x178] sm:$0xff]   ;;  %v5133_v18 = vld [vmem:[%s4943_s10 + $0x80] sm:$0xff] }
  0x1d   : > { %4272 = vmatprep.subr.bf16.mxu0 %v4796_v10  ;;  %v5129_v16 = vpack.c.bf16 %v354_v1, %v355_v8  ;;  %v5152_v24 = vld [vmem:[%s4943_s10 + $0x98] sm:$0xff]  ;;  %v4816_v25 = vld [vmem:[%s6071_s1 + $0x180] sm:$0xff]   ;;  %v5187_v49 = vld [vmem:[%s4943_s10 + $0xa8] sm:$0xff]  ;;  %v369_v1 = vrot.slane %v5072_v59, 1 }
  0x1e   : > { %v5165_v28 = vld [vmem:[%s6071_s1 + $0x80] sm:$0xff]   ;;  %v5195_v29 = vld [vmem:[%s4943_s10 + $0xb0] sm:$0xff]  ;;  %vm5258_vm4 = vmneg %vm248_vm0 }
  0x1f   : > { %4081 = vmatpush3.bf16.msra.mxu1 %v4795_v9  ;;  %v4819_v9 = vld [vmem:[%s6071_s1 + $0x30] sm:$0xff]   ;;  %v5180_v46 = vld [vmem:[%s4943_s10 + $0xa0] sm:$0xff]  ;;  %vm5307_vm5 = vmpackc.low %vm4876_vm2, %vm5258_vm4 }
  0x20   : > { %4273 = vmatpush3.bf16.msra.mxu0 %v4796_v10  ;;  %4082 = vmatprep.subr.bf16.mxu1 %v4797_v11  ;;  %v356_v10 = vrot.slane %v4998_v34, 1  ;;  %v5225_v8 = vld [vmem:[%s4943_s10 + $0xc0] sm:$0xff] }
  0x21   : > { %4274 = vmatprep.subr.bf16.mxu0 %v4798_v14 }
  0x23   : > { %4083 = vmatpush3.bf16.msra.mxu1 %v4797_v11  ;;  %v357_v11 = vrot.slane %v5001_v35, 1 }
  0x24   : > { %4275 = vmatpush3.bf16.msra.mxu0 %v4798_v14  ;;  %4084 = vmatprep.subr.bf16.mxu1 %v4799_v19  ;;  %v359_v14 = vrot.slane %v4971_v22, 1  ;;  %v5145_v22 = vld [vmem:[%s4943_s10 + $0x90] sm:$0xff] }
  0x25   : > { %4276 = vmatprep.subr.bf16.mxu0 %v4800_v20  ;;  %v5172_v36 = vpack.c.bf16 %v5152_v24, %v5145_v22 }
  0x27   : > { %4085 = vmatpush3.bf16.msra.mxu1 %v4799_v19  ;;  %v5137_v19 = vld [vmem:[%s4943_s10 + $0x88] sm:$0xff]  ;;  %6092 = vst [vmem:[#allocation3_spill] sm:$0xff] %v5172_v36 }
  0x28   : > { %4277 = vmatpush3.bf16.msra.mxu0 %v4800_v20  ;;  %4086 = vmatprep.subr.bf16.mxu1 %v4801_v26  ;;  %v4821_v20 = vld [vmem:[%s6071_s1 + $0x38] sm:$0xff]  }
  0x29   : > { %4278 = vmatprep.subr.bf16.mxu0 %v4802_v27 }
  0x2b   : > { %4087 = vmatpush3.bf16.msra.mxu1 %v4801_v26 }
  0x2c   : > { %4279 = vmatpush3.bf16.msra.mxu0 %v4802_v27  ;;  %4120 = vmatprep.subr.bf16.mxu1 %v4803_v31  ;;  %v5160_v27 = vpack.c.bf16 %v5137_v19, %v5133_v18 }
  0x2d   : > { %4312 = vmatprep.subr.bf16.mxu0 %v4804_v37 }
  0x2e   : > { %4089 = vmatmul.mubr.bf16.vlgmr.msra.gmra.mrb[0].mxu1 %v485_v17  ;;  %v360_v17 = vrot.slane %v4974_v23, 1  ;;  %v358_v23 = vsel %vm350_vm1, %v356_v10, %v357_v11  ;;  %v5232_v10 = vld [vmem:[%s4943_s10 + $0xc8] sm:$0xff] }
  0x2f   : > { %4281 = vmatmul.mubr.bf16.vlgmr.msra.gmra.mrb[0].mxu0 %v5010_v39  ;;  %4121 = vmatpush3.bf16.msra.mxu1 %v4803_v31  ;;  %v5167_v31 = vpack.c.bf16 %v357_v11, %v358_v23  ;;  %v5246_v11 = vld [vmem:[%s4943_s10 + $0xd8] sm:$0xff]  ;;  %v384_v23 = vrot.slane %v5187_v49, 1 }
  0x30   : > { %4313 = vmatpush3.bf16.msra.mxu0 %v4804_v37  ;;  %4092 = vmatprep.mubr.bf16.mxu1 %v5010_v39  ;;  %v361_v26 = vsel %vm350_vm1, %v359_v14, %v360_v17  ;;  %v363_v37 = vrot.slane %v5039_v50, 1 }
  0x31   : > { %4314 = vmatprep.subr.bf16.mxu0 %v4805_v44  ;;  %4284 = vmatprep.mubr.bf16.mxu0 %v5026_v45  ;;  %v5176_v43 = vpack.c.bf16 %v360_v17, %v361_v26  ;;  %v374_v17 = vrot.slane %v5095_v4, 1  ;;  %v377_v26 = vrot.slane %v5133_v18, 1 }
  0x32   : > { %4122 = vmatprep.subr.bf16.mxu1 %v4806_v47 }
  0x33   : > { %4123 = vmatpush3.bf16.msra.mxu1 %v4806_v47  ;;  %v4818_v47 = vld [vmem:[%s6071_s1 + $0x188] sm:$0xff]  }
  0x34   : > { %4315 = vmatpush3.bf16.msra.mxu0 %v4805_v44  ;;  %4124 = vmatprep.subr.bf16.mxu1 %v4809_v51  ;;  %v366_v44 = vrot.slane %v4994_v32, 1  ;;  %v364_v32 = vsel %vm350_vm1, %v362_v33, %v363_v37 }
  0x35   : > { %4316 = vmatprep.subr.bf16.mxu0 %v4807_v53 }
  0x36   : > { %4093 = vmatmul.mubr.bf16.gmra.mrb[4].mxu1 %v5026_v45 }
  0x37   : > { %4285 = vmatmul.mubr.bf16.gmra.mrb[4].mxu0 %v5052_v54  ;;  %4096 = vmatprep.mubr.bf16.mxu1 %v5052_v54 }
  0x38   : > { %4317 = vmatpush3.bf16.msra.mxu0 %v4807_v53  ;;  %4288 = vmatprep.mubr.bf16.mxu0 %v5056_v55  ;;  %v367_v53 = vsel %vm350_vm1, %v365_v38, %v366_v44  ;;  %v378_v38 = vrot.slane %v5137_v19, 1 }
  0x39   : > { %4318 = vmatprep.subr.bf16.mxu0 %v4808_v56  ;;  %4125 = vmatpush3.bf16.msra.mxu1 %v4809_v51  ;;  %v5202_v51 = vld [vmem:[%s4943_s10 + $0xb8] sm:$0xff] }
  0x3a   : > { %4126 = vmatprep.subr.bf16.mxu1 %v4812_v57  ;;  %v5217_v0 = vpack.c.bf16 %v5202_v51, %v5195_v29 }
  0x3c   : > { %4319 = vmatpush3.bf16.msra.mxu0 %v4808_v56  ;;  %v4820_v56 = vld [vmem:[%s6071_s1 + $0x190] sm:$0xff]   ;;  %6094 = vst [vmem:[#allocation5_spill] sm:$0xff] %v5217_v0 }
  0x3d   : > { %4320 = vmatprep.subr.bf16.mxu0 %v4810_v60  ;;  %4127 = vmatpush3.bf16.msra.mxu1 %v4812_v57  ;;  %v5210_v57 = vpack.c.bf16 %v5187_v49, %v5180_v46 }
  0x3e   : > { %4097 = vmatmul.mubr.bf16.gmra.mrb[8].mxu1 %v5056_v55  ;;  %4128 = vmatprep.subr.bf16.mxu1 %v4815_v61 }
  0x3f   : > { %4289 = vmatmul.mubr.bf16.gmra.mrb[8].mxu0 %v5082_v62  ;;  %4100 = vmatprep.mubr.bf16.mxu1 %v5082_v62  ;;  %6093 = vst [vmem:[#allocation4_spill] sm:$0xff] %v5210_v57 }
  0x40   : > { %4321 = vmatpush3.bf16.msra.mxu0 %v4810_v60  ;;  %4292 = vmatprep.mubr.bf16.mxu0 %v5086_v63  ;;  %v368_v60 = vrot.slane %v5069_v58, 1 }
  0x41   : > { %4322 = vmatprep.subr.bf16.mxu0 %v4811_v3  ;;  %4129 = vmatpush3.bf16.msra.mxu1 %v4815_v61  ;;  %v5213_v61 = vpack.c.bf16 %v363_v37, %v364_v32  ;;  %v5277_v32 = vld [vmem:[%s4943_s10 + $0xe0] sm:$0xff] }
  0x42   : > { %4130 = vmatprep.subr.bf16.mxu1 %v4817_v5 }
  0x44   : > { %4323 = vmatpush3.bf16.msra.mxu0 %v4811_v3  ;;  %v371_v3 = vrot.slane %v5013_v40, 1  ;;  %v5239_v40 = vld [vmem:[%s4943_s10 + $0xd0] sm:$0xff] }
  0x45   : > { %4324 = vmatprep.subr.bf16.mxu0 %v4813_v7  ;;  %4131 = vmatpush3.bf16.msra.mxu1 %v4817_v5  ;;  %v5221_v5 = vpack.c.bf16 %v366_v44, %v367_v53  ;;  %v5268_v37 = vpack.c.bf16 %v5246_v11, %v5239_v40  ;;  %v5281_v53 = vld [vmem:[%s4943_s10 + $0xe8] sm:$0xff] }
  0x46   : > { %4101 = vmatmul.mubr.bf16.gmra.mrb[12].mxu1 %v5086_v63  ;;  %4132 = vmatprep.subr.bf16.mxu1 %v4819_v9 }
  0x47   : > { %4293 = vmatmul.mubr.bf16.gmra.mrb[12].mxu0 %v5123_v13  ;;  %4104 = vmatprep.mubr.bf16.mxu1 %v5123_v13  ;;  %6098 = vst [vmem:[#allocation7_spill] sm:$0xff] %v5268_v37 }
  0x48   : > { %4325 = vmatpush3.bf16.msra.mxu0 %v4813_v7  ;;  %4328 = vmatprep.mubr.msk.bf16.mxu0 %vm5117_vm3, %v5129_v16  ;;  %v372_v7 = vrot.slane %v5018_v42, 1  ;;  %v370_v42 = vsel %vm350_vm1, %v368_v60, %v369_v1 }
  0x49   : > { %4326 = vmatprep.subr.bf16.mxu0 %v4814_v15  ;;  %4133 = vmatpush3.bf16.msra.mxu1 %v4819_v9  ;;  %v4822_v9 = vld [vmem:[%s6071_s1 + $0x198] sm:$0xff]   ;;  %v5264_v33 = vpack.c.bf16 %v369_v1, %v370_v42  ;;  %v4828_v1 = vld [vmem:[%s6071_s1 + $0x1b0] sm:$0xff]  }
  0x4a   : > { %4134 = vmatprep.subr.bf16.mxu1 %v4821_v20  ;;  %v373_v14 = vsel %vm350_vm1, %v371_v3, %v372_v7 }
  0x4b   : > { %v5271_v44 = vpack.c.bf16 %v372_v7, %v373_v14  ;;  %v379_v7 = vsel %vm350_vm1, %v377_v26, %v378_v38 }
  0x4c   : > { %4327 = vmatpush3.bf16.msra.mxu0 %v4814_v15  ;;  %v4824_v15 = vld [vmem:[%s6071_s1 + $0x1a0] sm:$0xff]   ;;  %v5313_v26 = vpack.c.bf16 %v378_v38, %v379_v7  ;;  %v260_v7 = vrot.slane %v5034_v48, 7  ;;  %v4825_v48 = vld [vmem:[%s6071_s1 + $0x88] sm:$0xff]  }
  0x4d   : > { %4360 = vmatprep.subr.bf16.mxu0 %v4816_v25  ;;  %4135 = vmatpush3.bf16.msra.mxu1 %v4821_v20  ;;  %v5255_v20 = vpack.c.bf16 %v5232_v10, %v5225_v8 }
  0x4e   : > { %4105 = vmatmul.mubr.bf16.gmra.mrb[16].mxu1 %v5160_v27  ;;  %4168 = vmatprep.subr.bf16.mxu1 %v5165_v28 }
  0x4f   : > { %4329 = vmatmul.mubr.msk.bf16.vlgmr.msra.gmra.mrb[0].mxu0 %vm5117_vm3, %v5167_v31  ;;  %4108 = vmatprep.mubr.bf16.mxu1 %v5172_v36  ;;  %6095 = vst [vmem:[#allocation6_spill] sm:$0xff] %v5255_v20 }
  0x50   : > { %4361 = vmatpush3.bf16.msra.mxu0 %v4816_v25  ;;  %4332 = vmatprep.mubr.msk.bf16.mxu0 %vm5117_vm3, %v5176_v43  ;;  %v375_v25 = vrot.slane %v5104_v6, 1 }
  0x51   : > { %4362 = vmatprep.subr.bf16.mxu0 %v4818_v47 }
  0x52   : > { %v376_v3 = vsel %vm350_vm1, %v374_v17, %v375_v25  ;;  %v381_v17 = vrot.slane %v5152_v24, 1 }
  0x53   : > { %v5300_v42 = vpack.c.bf16 %v375_v25, %v376_v3  ;;  %v255_v25 = vrot.slane %v5001_v35, 7  ;;  %v4830_v3 = vld [vmem:[%s6071_s1 + $0x1b8] sm:$0xff]  }
  0x54   : > { %4363 = vmatpush3.bf16.msra.mxu0 %v4818_v47  ;;  %v4826_v47 = vld [vmem:[%s6071_s1 + $0x1a8] sm:$0xff]  }
  0x55   : > { %4364 = vmatprep.subr.bf16.mxu0 %v4820_v56 }
  0x56   : > { %4109 = vmatmul.mubr.bf16.gmra.mrb[20].mxu1 %v5210_v57 }
  0x57   : > { %4333 = vmatmul.mubr.msk.bf16.gmra.mrb[4].mxu0 %vm5117_vm3, %v5213_v61  ;;  %4112 = vmatprep.mubr.bf16.mxu1 %v5217_v0  ;;  %v390_v0 = vrot.slane %v5232_v10, 1 }
  0x58   : > { %4336 = vmatprep.mubr.msk.bf16.mxu0 %vm5117_vm3, %v5221_v5  ;;  %4365 = vmatpush3.bf16.msra.mxu0 %v4820_v56  ;;  %v6075_v56 = vmov 0.0  }
  0x59   : > { %4366 = vmatprep.subr.bf16.mxu0 %v4822_v9  ;;  %v249_v60 = vrot.slane %v6075_v56, 7  ;;  %v254_v56 = vrot.slane %v4998_v34, 7 }
  0x5b   : > { %v5302_v14 = vpack.c.bf16 %v249_v60, %v249_v60  ;;  %v383_v60 = vrot.slane %v5180_v46, 1  ;;  %v256_v35 = vsel %vm248_vm0, %v254_v56, %v255_v25 }
  0x5c   : > { %4367 = vmatpush3.bf16.msra.mxu0 %v4822_v9  ;;  %v5298_v9 = vpack.c.bf16 %v5281_v53, %v5277_v32 }
  0x5d   : > { %4368 = vmatprep.subr.bf16.mxu0 %v4824_v15  ;;  %v385_v38 = vsel %vm350_vm1, %v383_v60, %v384_v23  ;;  %v389_v60 = vrot.slane %v5225_v8, 1 }
  0x5e   : > { %4113 = vmatmul.mubr.bf16.gmra.mrb[24].mxu1 %v5255_v20  ;;  %6099 = vst [vmem:[#allocation8_spill] sm:$0xff] %v5298_v9  ;;  %v386_v20 = vrot.slane %v5195_v29, 1  ;;  %v5348_v25 = vpack.c.bf16 %v384_v23, %v385_v38 }
  0x5f   : > { %4337 = vmatmul.mubr.msk.bf16.gmra.mrb[8].mxu0 %vm5117_vm3, %v5264_v33  ;;  %4116 = vmatprep.mubr.bf16.mxu1 %v5268_v37  ;;  %v391_v23 = vsel %vm350_vm1, %v389_v60, %v390_v0  ;;  %v395_v60 = vrot.slane %v5277_v32, 1 }
  0x60   : > { %4340 = vmatprep.mubr.msk.bf16.mxu0 %vm5117_vm3, %v5271_v44  ;;  %4369 = vmatpush3.bf16.msra.mxu0 %v4824_v15  ;;  %v380_v15 = vrot.slane %v5145_v22, 1  ;;  %v5383_v38 = vpack.c.bf16 %v390_v0, %v391_v23  ;;  %v272_v23 = vrot.slane %v5095_v4, 7 }
  0x61   : > { %4370 = vmatprep.subr.bf16.mxu0 %v4826_v47 }
  0x62   : > { %v382_v34 = vsel %vm350_vm1, %v380_v15, %v381_v17  ;;  %v5346_v15 = vpack.c.bf16 %v256_v35, %v254_v56  ;;  %v267_v35 = vrot.slane %v5072_v59, 7 }
  0x63   : > { %v5342_v37 = vpack.c.bf16 %v381_v17, %v382_v34  ;;  %v4827_v17 = vld [vmem:[%s6071_s1 + $0x90] sm:$0xff]  }
  0x64   : > { %4371 = vmatpush3.bf16.msra.mxu0 %v4826_v47  ;;  %v5338_v47 = vld [vmem:[%s6071_s1 + $0x1c0] sm:$0xff]  }
  0x65   : > { %4372 = vmatprep.subr.bf16.mxu0 %v4828_v1 }
  0x66   : > { %4117 = vmatmul.mubr.bf16.gmra.mrb[28].mxu1 %v5298_v9  ;;  %v261_v9 = vrot.slane %v5039_v50, 7 }
  0x67   : > { %4341 = vmatmul.mubr.msk.bf16.gmra.mrb[12].mxu0 %vm5117_vm3, %v5300_v42  ;;  %4136 = vmatprep.mubr.msk.bf16.mxu1 %vm5307_vm5, %v5302_v14 }
  0x68   : > { %4344 = vmatprep.mubr.msk.bf16.mxu0 %vm5117_vm3, %v5313_v26  ;;  %4373 = vmatpush3.bf16.msra.mxu0 %v4828_v1  ;;  %v387_v1 = vrot.slane %v5202_v51, 1  ;;  %v262_v56 = vsel %vm248_vm0, %v260_v7, %v261_v9  ;;  %v393_v9 = vrot.slane %v5246_v11, 1 }
  0x69   : > { %4374 = vmatprep.subr.bf16.mxu0 %v4830_v3  ;;  %v5378_v34 = vpack.c.bf16 %v262_v56, %v260_v7  ;;  %v4829_v7 = vld [vmem:[%s6071_s1 + $0x98] sm:$0xff]   ;;  %v4831_v56 = vld [vmem:[%s6071_s1 + $0xa0] sm:$0xff]  }
  0x6a   : > { %v388_v50 = vsel %vm350_vm1, %v386_v20, %v387_v1  ;;  %v392_v20 = vrot.slane %v5239_v40, 1 }
  0x6c   : > { %4375 = vmatpush3.bf16.msra.mxu0 %v4830_v3  ;;  %v5376_v3 = vpack.c.bf16 %v387_v1, %v388_v50  ;;  %v394_v59 = vsel %vm350_vm1, %v392_v20, %v393_v9  ;;  %v5409_v50 = vld [vmem:[%s4943_s10 + $0xf8] sm:$0xff] }
  0x6d   : > { %4408 = vmatprep.subr.bf16.mxu0 %v5338_v47  ;;  %v5415_v57 = vpack.c.bf16 %v393_v9, %v394_v59  ;;  %v4835_v9 = vld [vmem:[%s6071_s1 + $0xb0] sm:$0xff]  }
  0x6e   : > { %4137 = vmatmul.mubr.msk.bf16.vlgmr.msra.gmra.mrb[0].mxu1 %vm5307_vm5, %v4968_v21  ;;  %v4833_v21 = vld [vmem:[%s6071_s1 + $0xa8] sm:$0xff]  }
  0x6f   : > { %4345 = vmatmul.mubr.msk.bf16.gmra.mrb[16].mxu0 %vm5117_vm3, %v5342_v37  ;;  %4169 = vmatpush3.bf16.msra.mxu1 %v5165_v28  ;;  %v266_v28 = vrot.slane %v5069_v58, 7  ;;  %v396_v58 = vrot.slane %v5281_v53, 1 }
  0x70   : > { %4140 = vmatprep.mubr.msk.bf16.mxu1 %vm5307_vm5, %v5346_v15  ;;  %4348 = vmatprep.mubr.msk.bf16.mxu0 %vm5117_vm3, %v5348_v25 }
  0x71   : > { %4170 = vmatprep.subr.bf16.mxu1 %v4825_v48  ;;  %v268_v0 = vsel %vm248_vm0, %v266_v28, %v267_v35  ;;  %v397_v1 = vsel %vm350_vm1, %v395_v60, %v396_v58  ;;  %v399_v60 = vrot.slane %v5409_v50, 1 }
  0x72   : > { %v5417_v36 = vpack.c.bf16 %v268_v0, %v266_v28  ;;  %v5420_v35 = vpack.c.bf16 %v396_v58, %v397_v1  ;;  %v275_v58 = vrot.slane %v5133_v18, 7  ;;  %v278_v1 = vrot.slane %v5145_v22, 7 }
  0x73   : > { %4171 = vmatpush3.bf16.msra.mxu1 %v4825_v48  ;;  %v5406_v48 = vld [vmem:[%s4943_s10 + $0xf0] sm:$0xff]  ;;  %s181_s10 = scalar_lea.vmem %s6073_s3, %s3156_s7 }
  0x74   : > { %4172 = vmatprep.subr.bf16.mxu1 %v4827_v17  ;;  %v398_v20 = vrot.slane %v5406_v48, 1  ;;  %v5438_v4 = vpack.c.bf16 %v5409_v50, %v5406_v48 }
  0x76   : > { %4141 = vmatmul.mubr.msk.bf16.gmra.mrb[4].mxu1 %vm5307_vm5, %v4988_v30 }
  0x77   : > { %4349 = vmatmul.mubr.msk.bf16.gmra.mrb[20].mxu0 %vm5117_vm3, %v5376_v3  ;;  %4144 = vmatprep.mubr.msk.bf16.mxu1 %vm5307_vm5, %v5378_v34 }
  0x78   : > { %4352 = vmatprep.mubr.msk.bf16.mxu0 %vm5117_vm3, %v5383_v38  ;;  %4173 = vmatpush3.bf16.msra.mxu1 %v4827_v17  ;;  %v273_v17 = vrot.slane %v5104_v6, 7  ;;  %v400_v6 = vsel %vm350_vm1, %v398_v20, %v399_v60  ;;  %v279_v20 = vrot.slane %v5152_v24, 7  ;;  %v281_v24 = vrot.slane %v5180_v46, 7 }
  0x79   : > { %4174 = vmatprep.subr.bf16.mxu1 %v4829_v7  ;;  %v5450_v59 = vpack.c.bf16 %v399_v60, %v400_v6  ;;  %v284_v60 = vrot.slane %v5195_v29, 7  ;;  %v285_v6 = vrot.slane %v5202_v51, 7  ;;  %v4836_v29 = vld [vmem:[%s6071_s1 + $0x1d0] sm:$0xff]  }
  0x7a   : > { %v274_v28 = vsel %vm248_vm0, %v272_v23, %v273_v17 }
  0x7b   : > { %v5452_v0 = vpack.c.bf16 %v274_v28, %v272_v23  ;;  %v282_v23 = vrot.slane %v5187_v49, 7  ;;  %v4834_v28 = vld [vmem:[%s6071_s1 + $0x1c8] sm:$0xff]   ;;  %v286_v49 = vsel %vm248_vm0, %v284_v60, %v285_v6 }
  0x7c   : > { %4175 = vmatpush3.bf16.msra.mxu1 %v4829_v7  ;;  %v276_v7 = vrot.slane %v5137_v19, 7  ;;  %v5476_v19 = vld [vmem:[%s6071_s1 + $0xc0] sm:$0xff]  }
  0x7d   : > { %4176 = vmatprep.subr.bf16.mxu1 %v4831_v56  ;;  %v283_v46 = vsel %vm248_vm0, %v281_v24, %v282_v23 }
  0x7e   : > { %4145 = vmatmul.mubr.msk.bf16.gmra.mrb[8].mxu1 %vm5307_vm5, %v5015_v41  ;;  %v277_v18 = vsel %vm248_vm0, %v275_v58, %v276_v7  ;;  %v5508_v51 = vpack.c.bf16 %v283_v46, %v281_v24  ;;  %v5512_v7 = vpack.c.bf16 %v286_v49, %v284_v60  ;;  %v4842_v24 = vld [vmem:[%s6071_s1 + $0x1e8] sm:$0xff]   ;;  %v4844_v60 = vld [vmem:[%s6071_s1 + $0x1f0] sm:$0xff]   ;;  %v4846_v46 = vld [vmem:[%s6071_s1 + $0x1f8] sm:$0xff]  }
  0x7f   : > { %4353 = vmatmul.mubr.msk.bf16.gmra.mrb[24].mxu0 %vm5117_vm3, %v5415_v57  ;;  %4148 = vmatprep.mubr.msk.bf16.mxu1 %vm5307_vm5, %v5417_v36  ;;  %v5478_v22 = vpack.c.bf16 %v277_v18, %v275_v58  ;;  %v288_v58 = vrot.slane %v5232_v10, 7  ;;  %v294_v18 = vrot.slane %v5281_v53, 7  ;;  %v6102_v53 = vmov 0.0   ;;  %v4848_v49 = vld [vmem:[%s6071_s1 + $0x200] sm:$0xff]  }
  0x80   : > { %4356 = vmatprep.mubr.msk.bf16.mxu0 %vm5117_vm3, %v5420_v35  ;;  %4177 = vmatpush3.bf16.msra.mxu1 %v4831_v56  ;;  %v4837_v56 = vld [vmem:[%s6071_s1 + $0xb8] sm:$0xff]   ;;  %v351_v23 = vrot.slane %v6102_v53, 1 }
  0x81   : > { %4178 = vmatprep.subr.bf16.mxu1 %v4833_v21  ;;  %v4862_v53 = vld [vmem:[%s6071_s1 + $0x118] sm:$0xff]  }
  0x84   : > { %4179 = vmatpush3.bf16.msra.mxu1 %v4833_v21  ;;  %v280_v21 = vsel %vm248_vm0, %v278_v1, %v279_v20  ;;  %v4838_v20 = vld [vmem:[%s6071_s1 + $0x1d8] sm:$0xff]  }
  0x85   : > { %4180 = vmatprep.subr.bf16.mxu1 %v4835_v9  ;;  %v5482_v17 = vpack.c.bf16 %v280_v21, %v278_v1  ;;  %v291_v1 = vrot.slane %v5246_v11, 7 }
  0x86   : > { %4149 = vmatmul.mubr.msk.bf16.gmra.mrb[12].mxu1 %vm5307_vm5, %v5044_v52 }
  0x87   : > { %4357 = vmatmul.mubr.msk.bf16.gmra.mrb[28].mxu0 %vm5117_vm3, %v5450_v59  ;;  %4152 = vmatprep.mubr.msk.bf16.mxu1 %vm5307_vm5, %v5452_v0 }
  0x88   : > { %4376 = vmatprep.mubr.msk.bf16.mxu0 %vm5307_vm5, %v5346_v15  ;;  %4181 = vmatpush3.bf16.msra.mxu1 %v4835_v9  ;;  %v287_v9 = vrot.slane %v5225_v8, 7 }
  0x89   : > { %4182 = vmatprep.subr.bf16.mxu1 %v4837_v56 }
  0x8a   : > { %v289_v8 = vsel %vm248_vm0, %v287_v9, %v288_v58  ;;  %v297_v58 = vrot.slane %v5409_v50, 7  ;;  %v4847_v50 = vld [vmem:[%s6071_s1 + $0xe0] sm:$0xff]  }
  0x8b   : > { %v5536_v11 = vpack.c.bf16 %v289_v8, %v287_v9  ;;  %v4843_v9 = vld [vmem:[%s6071_s1 + $0xd0] sm:$0xff]   ;;  %v4853_v8 = vld [vmem:[%s6071_s1 + $0xf8] sm:$0xff]  }
  0x8c   : > { %4183 = vmatpush3.bf16.msra.mxu1 %v4837_v56  ;;  %v293_v56 = vrot.slane %v5277_v32, 7 }
  0x8d   : > { %4216 = vmatprep.subr.bf16.mxu1 %v5476_v19 }
  0x8e   : > { %4153 = vmatmul.mubr.msk.bf16.gmra.mrb[16].mxu1 %vm5307_vm5, %v5478_v22  ;;  %v295_v32 = vsel %vm248_vm0, %v293_v56, %v294_v18  ;;  %v6106_v18 = vld [vmem:[#allocation5_spill] sm:$0xff] }
  0x8f   : > { %4377 = vmatmul.mubr.msk.bf16.vlgmr.msra.gmra.mrb[0].mxu0 %vm5307_vm5, %v4988_v30  ;;  %4156 = vmatprep.mubr.msk.bf16.mxu1 %vm5307_vm5, %v5482_v17  ;;  %v5562_v6 = vpack.c.bf16 %v295_v32, %v293_v56  ;;  %v6105_v56 = vld [vmem:[#allocation4_spill] sm:$0xff] }
  0x90   : > { %4409 = vmatpush3.bf16.msra.mxu0 %v5338_v47  ;;  %4380 = vmatprep.mubr.msk.bf16.mxu0 %vm5307_vm5, %v5378_v34  ;;  %v290_v47 = vrot.slane %v5239_v40, 7  ;;  %v4840_v40 = vld [vmem:[%s6071_s1 + $0x1e0] sm:$0xff]   ;;  %v4861_v32 = vld [vmem:[%s6071_s1 + $0x110] sm:$0xff]  }
  0x91   : > { %4410 = vmatprep.subr.bf16.mxu0 %v4834_v28 }
  0x92   : > { %v292_v10 = vsel %vm248_vm0, %v290_v47, %v291_v1  ;;  %v4849_v1 = vld [vmem:[%s6071_s1 + $0xe8] sm:$0xff]  }
  0x93   : > { %v5540_v21 = vpack.c.bf16 %v292_v10, %v290_v47  ;;  %v4850_v10 = vld [vmem:[%s6071_s1 + $0x208] sm:$0xff]  }
  0x94   : > { %4411 = vmatpush3.bf16.msra.mxu0 %v4834_v28  ;;  %v5564_v28 = vpack.c.bf16 %v351_v23, %v351_v23  ;;  %v4863_v23 = vld [vmem:[%s6071_s1 + $0x120] sm:$0xff]  }
  0x95   : > { %4412 = vmatprep.subr.bf16.mxu0 %v4836_v29 }
  0x96   : > { %4157 = vmatmul.mubr.msk.bf16.gmra.mrb[20].mxu1 %vm5307_vm5, %v5508_v51 }
  0x97   : > { %4381 = vmatmul.mubr.msk.bf16.gmra.mrb[4].mxu0 %vm5307_vm5, %v5015_v41  ;;  %4160 = vmatprep.mubr.msk.bf16.mxu1 %vm5307_vm5, %v5512_v7 }
  0x98   : > { %4384 = vmatprep.mubr.msk.bf16.mxu0 %vm5307_vm5, %v5417_v36  ;;  %4413 = vmatpush3.bf16.msra.mxu0 %v4836_v29  ;;  %v4841_v29 = vld [vmem:[%s6071_s1 + $0xc8] sm:$0xff]  }
  0x99   : > { %4414 = vmatprep.subr.bf16.mxu0 %v4838_v20 }
  0x9c   : > { %4415 = vmatpush3.bf16.msra.mxu0 %v4838_v20  ;;  %v4851_v20 = vld [vmem:[%s6071_s1 + $0xf0] sm:$0xff]  }
  0x9d   : > { %4416 = vmatprep.subr.bf16.mxu0 %v4840_v40 }
  0x9e   : > { %4161 = vmatmul.mubr.msk.bf16.gmra.mrb[24].mxu1 %vm5307_vm5, %v5536_v11 }
  0x9f   : > { %4385 = vmatmul.mubr.msk.bf16.gmra.mrb[8].mxu0 %vm5307_vm5, %v5044_v52  ;;  %4164 = vmatprep.mubr.msk.bf16.mxu1 %vm5307_vm5, %v5540_v21 }
  0xa0   : > { %4388 = vmatprep.mubr.msk.bf16.mxu0 %vm5307_vm5, %v5452_v0  ;;  %4417 = vmatpush3.bf16.msra.mxu0 %v4840_v40  ;;  %v4859_v40 = vld [vmem:[%s6071_s1 + $0x100] sm:$0xff]  }
  0xa1   : > { %4418 = vmatprep.subr.bf16.mxu0 %v4842_v24 }
  0xa4   : > { %4419 = vmatpush3.bf16.msra.mxu0 %v4842_v24  ;;  %v4860_v24 = vld [vmem:[%s6071_s1 + $0x108] sm:$0xff]  }
  0xa5   : > { %4420 = vmatprep.subr.bf16.mxu0 %v4844_v60 }
  0xa6   : > { %4165 = vmatmul.mubr.msk.bf16.gmra.mrb[28].mxu1 %vm5307_vm5, %v5562_v6 }
  0xa7   : > { %4389 = vmatmul.mubr.msk.bf16.gmra.mrb[12].mxu0 %vm5307_vm5, %v5478_v22  ;;  %4184 = vmatprep.mubr.msk.bf16.mxu1 %vm5117_vm3, %v5564_v28 }
  0xa8   : > { %4392 = vmatprep.mubr.msk.bf16.mxu0 %vm5307_vm5, %v5482_v17  ;;  %4421 = vmatpush3.bf16.msra.mxu0 %v4844_v60  ;;  %v4865_v60 = vld [vmem:[%s6071_s1 + $0x130] sm:$0xff]  }
  0xa9   : > { %4422 = vmatprep.subr.bf16.mxu0 %v4846_v46 }
  0xac   : > { %4423 = vmatpush3.bf16.msra.mxu0 %v4846_v46 }
  0xad   : > { %4456 = vmatprep.subr.bf16.mxu0 %v4848_v49 }
  0xae   : > { %4185 = vmatmul.mubr.msk.bf16.vlgmr.msra.gmra.mrb[0].mxu1 %vm5117_vm3, %v5129_v16  ;;  %v296_v16 = vrot.slane %v5406_v48, 7 }
  0xaf   : > { %4393 = vmatmul.mubr.msk.bf16.gmra.mrb[16].mxu0 %vm5307_vm5, %v5508_v51  ;;  %4217 = vmatpush3.bf16.msra.mxu1 %v5476_v19  ;;  %v4845_v19 = vld [vmem:[%s6071_s1 + $0xd8] sm:$0xff]  }
  0xb0   : > { %4188 = vmatprep.mubr.msk.bf16.mxu1 %vm5117_vm3, %v5167_v31  ;;  %4396 = vmatprep.mubr.msk.bf16.mxu0 %vm5307_vm5, %v5512_v7  ;;  %v298_v48 = vsel %vm248_vm0, %v296_v16, %v297_v58 }
  0xb1   : > { %4218 = vmatprep.subr.bf16.mxu1 %v4841_v29  ;;  %v5624_v47 = vpack.c.bf16 %v298_v48, %v296_v16 }
  0xb3   : > { %4219 = vmatpush3.bf16.msra.mxu1 %v4841_v29 }
  0xb4   : > { %4220 = vmatprep.subr.bf16.mxu1 %v4843_v9 }
  0xb6   : > { %4189 = vmatmul.mubr.msk.bf16.gmra.mrb[4].mxu1 %vm5117_vm3, %v5176_v43 }
  0xb7   : > { %4397 = vmatmul.mubr.msk.bf16.gmra.mrb[20].mxu0 %vm5307_vm5, %v5536_v11  ;;  %4192 = vmatprep.mubr.msk.bf16.mxu1 %vm5117_vm3, %v5213_v61 }
  0xb8   : > { %4400 = vmatprep.mubr.msk.bf16.mxu0 %vm5307_vm5, %v5540_v21  ;;  %4221 = vmatpush3.bf16.msra.mxu1 %v4843_v9 }
  0xb9   : > { %4222 = vmatprep.subr.bf16.mxu1 %v4845_v19 }
  0xbc   : > { %4223 = vmatpush3.bf16.msra.mxu1 %v4845_v19 }
  0xbd   : > { %4224 = vmatprep.subr.bf16.mxu1 %v4847_v50 }
  0xbe   : > { %4193 = vmatmul.mubr.msk.bf16.gmra.mrb[8].mxu1 %vm5117_vm3, %v5221_v5 }
  0xbf   : > { %4401 = vmatmul.mubr.msk.bf16.gmra.mrb[24].mxu0 %vm5307_vm5, %v5562_v6  ;;  %4196 = vmatprep.mubr.msk.bf16.mxu1 %vm5117_vm3, %v5264_v33 }
  0xc0   : > { %4404 = vmatprep.mubr.msk.bf16.mxu0 %vm5307_vm5, %v5624_v47  ;;  %4225 = vmatpush3.bf16.msra.mxu1 %v4847_v50 }
  0xc1   : > { %4226 = vmatprep.subr.bf16.mxu1 %v4849_v1 }
  0xc4   : > { %4227 = vmatpush3.bf16.msra.mxu1 %v4849_v1 }
  0xc5   : > { %4228 = vmatprep.subr.bf16.mxu1 %v4851_v20 }
  0xc6   : > { %4197 = vmatmul.mubr.msk.bf16.gmra.mrb[12].mxu1 %vm5117_vm3, %v5271_v44 }
  0xc7   : > { %4405 = vmatmul.mubr.msk.bf16.gmra.mrb[28].mxu0 %vm5307_vm5, %v5302_v14  ;;  %4200 = vmatprep.mubr.msk.bf16.mxu1 %vm5117_vm3, %v5300_v42  ;;  %v4854_v14 = vld [vmem:[%s6071_s1 + $0x218] sm:$0xff]  }
  0xc8   : > { %4424 = vmatprep.mubr.bf16.mxu0 %v5010_v39  ;;  %4229 = vmatpush3.bf16.msra.mxu1 %v4851_v20  ;;  %v4852_v39 = vld [vmem:[%s6071_s1 + $0x210] sm:$0xff]  }
  0xc9   : > { %4230 = vmatprep.subr.bf16.mxu1 %v4853_v8 }
  0xcc   : > { %4231 = vmatpush3.bf16.msra.mxu1 %v4853_v8 }
  0xcd   : > { %4504 = vmatprep.subr.bf16.mxu1 %v4859_v40 }
  0xce   : > { %4201 = vmatmul.mubr.msk.bf16.gmra.mrb[16].mxu1 %vm5117_vm3, %v5313_v26 }
  0xcf   : > { %4425 = vmatmul.mubr.bf16.vlgmr.msra.gmra.mrb[0].mxu0 %v5026_v45  ;;  %4204 = vmatprep.mubr.msk.bf16.mxu1 %vm5117_vm3, %v5342_v37  ;;  %v4855_v45 = vld [vmem:[%s6071_s1 + $0x220] sm:$0xff]  }
  0xd0   : > { %4457 = vmatpush3.bf16.msra.mxu0 %v4848_v49  ;;  %4428 = vmatprep.mubr.bf16.mxu0 %v5052_v54  ;;  %v4856_v54 = vld [vmem:[%s6071_s1 + $0x228] sm:$0xff]  }
  0xd1   : > { %4458 = vmatprep.subr.bf16.mxu0 %v4850_v10 }
  0xd4   : > { %4459 = vmatpush3.bf16.msra.mxu0 %v4850_v10 }
  0xd5   : > { %4460 = vmatprep.subr.bf16.mxu0 %v4852_v39 }
  0xd6   : > { %4205 = vmatmul.mubr.msk.bf16.gmra.mrb[20].mxu1 %vm5117_vm3, %v5348_v25 }
  0xd7   : > { %4429 = vmatmul.mubr.bf16.gmra.mrb[4].mxu0 %v5056_v55  ;;  %4208 = vmatprep.mubr.msk.bf16.mxu1 %vm5117_vm3, %v5376_v3  ;;  %v4857_v55 = vld [vmem:[%s6071_s1 + $0x230] sm:$0xff]  }
  0xd8   : > { %4432 = vmatprep.mubr.bf16.mxu0 %v5082_v62  ;;  %4461 = vmatpush3.bf16.msra.mxu0 %v4852_v39  ;;  %v4858_v62 = vld [vmem:[%s6071_s1 + $0x238] sm:$0xff]  }
  0xd9   : > { %4462 = vmatprep.subr.bf16.mxu0 %v4854_v14 }
  0xdc   : > { %4463 = vmatpush3.bf16.msra.mxu0 %v4854_v14 }
  0xdd   : > { %4464 = vmatprep.subr.bf16.mxu0 %v4855_v45 }
  0xde   : > { %4209 = vmatmul.mubr.msk.bf16.gmra.mrb[24].mxu1 %vm5117_vm3, %v5383_v38 }
  0xdf   : > { %4433 = vmatmul.mubr.bf16.gmra.mrb[8].mxu0 %v5086_v63  ;;  %4212 = vmatprep.mubr.msk.bf16.mxu1 %vm5117_vm3, %v5415_v57  ;;  %v6103_v63 = vld [vmem:[#allocation2_spill] sm:$0xff] }
  0xe0   : > { %4436 = vmatprep.mubr.bf16.mxu0 %v5123_v13  ;;  %4465 = vmatpush3.bf16.msra.mxu0 %v4855_v45  ;;  %v6104_v13 = vld [vmem:[#allocation3_spill] sm:$0xff] }
  0xe1   : > { %4466 = vmatprep.subr.bf16.mxu0 %v4856_v54 }
  0xe4   : > { %4467 = vmatpush3.bf16.msra.mxu0 %v4856_v54 }
  0xe5   : > { %4468 = vmatprep.subr.bf16.mxu0 %v4857_v55 }
  0xe6   : > { %4213 = vmatmul.mubr.msk.bf16.gmra.mrb[28].mxu1 %vm5117_vm3, %v5420_v35 }
  0xe7   : > { %4437 = vmatmul.mubr.bf16.gmra.mrb[12].mxu0 %v5160_v27  ;;  %4232 = vmatprep.mubr.msk.bf16.mxu1 %vm5307_vm5, %v6103_v63 }
  0xe8   : > { %4440 = vmatprep.mubr.bf16.mxu0 %v6104_v13  ;;  %4469 = vmatpush3.bf16.msra.mxu0 %v4857_v55 }
  0xe9   : > { %4470 = vmatprep.subr.bf16.mxu0 %v4858_v62 }
  0xec   : > { %4471 = vmatpush3.bf16.msra.mxu0 %v4858_v62 }
  0xee   : > { %4233 = vmatmul.mubr.msk.bf16.vlgmr.msra.gmra.mrb[0].mxu1 %vm5307_vm5, %v5346_v15  ;;  %v6107_v15 = vld [vmem:[#allocation6_spill] sm:$0xff] }
  0xef   : > { %4441 = vmatmul.mubr.bf16.gmra.mrb[16].mxu0 %v6105_v56  ;;  %4512 = vmatpush3.bf16.msra.mxu1 %v4859_v40 }
  0xf0   : > { %4236 = vmatprep.mubr.msk.bf16.mxu1 %vm5307_vm5, %v4988_v30  ;;  %4444 = vmatprep.mubr.bf16.mxu0 %v6106_v18  ;;  %v6108_v30 = vld [vmem:[#allocation7_spill] sm:$0xff] }
  0xf1   : > { %4505 = vmatprep.subr.bf16.mxu1 %v4860_v24 }
  0xf3   : > { %4513 = vmatpush3.bf16.msra.mxu1 %v4860_v24 }
  0xf4   : > { %4506 = vmatprep.subr.bf16.mxu1 %v4861_v32 }
  0xf6   : > { %4237 = vmatmul.mubr.msk.bf16.gmra.mrb[4].mxu1 %vm5307_vm5, %v5378_v34  ;;  %v6109_v34 = vld [vmem:[#allocation8_spill] sm:$0xff] }
  0xf7   : > { %4445 = vmatmul.mubr.bf16.gmra.mrb[20].mxu0 %v6107_v15  ;;  %4240 = vmatprep.mubr.msk.bf16.mxu1 %vm5307_vm5, %v5015_v41  ;;  %v4864_v41 = vld [vmem:[%s6071_s1 + $0x128] sm:$0xff]  }
  0xf8   : > { %4448 = vmatprep.mubr.bf16.mxu0 %v6108_v30  ;;  %4514 = vmatpush3.bf16.msra.mxu1 %v4861_v32 }
  0xf9   : > { %4507 = vmatprep.subr.bf16.mxu1 %v4862_v53 }
  0xfc   : > { %4515 = vmatpush3.bf16.msra.mxu1 %v4862_v53 }
  0xfd   : > { %4508 = vmatprep.subr.bf16.mxu1 %v4863_v23 }
  0xfe   : > { %4241 = vmatmul.mubr.msk.bf16.gmra.mrb[8].mxu1 %vm5307_vm5, %v5417_v36  ;;  %v6110_v36 = vmov 0.0|0.0  }
  0xff   : > { %4449 = vmatmul.mubr.bf16.gmra.mrb[24].mxu0 %v6109_v34  ;;  %4244 = vmatprep.mubr.msk.bf16.mxu1 %vm5307_vm5, %v5044_v52  ;;  %v4866_v52 = vld [vmem:[%s6071_s1 + $0x138] sm:$0xff]  }
 0x100   : > { %4452 = vmatprep.mubr.bf16.mxu0 %v5438_v4  ;;  %4516 = vmatpush3.bf16.msra.mxu1 %v4863_v23 }
 0x101   : > { %4509 = vmatprep.subr.bf16.mxu1 %v4864_v41 }
 0x104   : > { %4517 = vmatpush3.bf16.msra.mxu1 %v4864_v41 }
 0x105   : > { %4510 = vmatprep.subr.bf16.mxu1 %v4865_v60 }
 0x106   : > { %4245 = vmatmul.mubr.msk.bf16.gmra.mrb[12].mxu1 %vm5307_vm5, %v5452_v0 }
 0x107   : > { %4453 = vmatmul.mubr.bf16.gmra.mrb[28].mxu0 %v6110_v36  ;;  %4248 = vmatprep.mubr.msk.bf16.mxu1 %vm5307_vm5, %v5478_v22 }
 0x108   : > { %4472 = vmatprep.mubr.msk.bf16.mxu0 %vm5117_vm3, %v5167_v31  ;;  %4518 = vmatpush3.bf16.msra.mxu1 %v4865_v60 }
 0x109   : > { %4511 = vmatprep.subr.bf16.mxu1 %v4866_v52 }
 0x10c   : > { %4519 = vmatpush3.bf16.msra.mxu1 %v4866_v52 }
 0x10e   : > { %4249 = vmatmul.mubr.msk.bf16.gmra.mrb[16].mxu1 %vm5307_vm5, %v5482_v17 }
 0x10f   : > { %4473 = vmatmul.mubr.msk.bf16.vlgmr.msra.gmra.mrb[0].mxu0 %vm5117_vm3, %v5176_v43  ;;  %4252 = vmatprep.mubr.msk.bf16.mxu1 %vm5307_vm5, %v5508_v51 }
 0x110   : > { %4476 = vmatprep.mubr.msk.bf16.mxu0 %vm5117_vm3, %v5213_v61 }
 0x116   : > { %4253 = vmatmul.mubr.msk.bf16.gmra.mrb[20].mxu1 %vm5307_vm5, %v5512_v7 }
 0x117   : > { %4477 = vmatmul.mubr.msk.bf16.gmra.mrb[4].mxu0 %vm5117_vm3, %v5221_v5  ;;  %4256 = vmatprep.mubr.msk.bf16.mxu1 %vm5307_vm5, %v5536_v11 }
 0x118   : > { %4480 = vmatprep.mubr.msk.bf16.mxu0 %vm5117_vm3, %v5264_v33 }
 0x11e   : > { %4257 = vmatmul.mubr.msk.bf16.gmra.mrb[24].mxu1 %vm5307_vm5, %v5540_v21 }
 0x11f   : > { %4481 = vmatmul.mubr.msk.bf16.gmra.mrb[8].mxu0 %vm5117_vm3, %v5271_v44  ;;  %4260 = vmatprep.mubr.msk.bf16.mxu1 %vm5307_vm5, %v5562_v6 }
 0x120   : > { %4484 = vmatprep.mubr.msk.bf16.mxu0 %vm5117_vm3, %v5300_v42 }
 0x126   : > { %4261 = vmatmul.mubr.msk.bf16.gmra.mrb[28].mxu1 %vm5307_vm5, %v5624_v47 }
 0x127   : > { %4485 = vmatmul.mubr.msk.bf16.gmra.mrb[12].mxu0 %vm5117_vm3, %v5313_v26  ;;  %4296 = vmatprep.mubr.bf16.mxu1 %v5160_v27 }
 0x128   : > { %4488 = vmatprep.mubr.msk.bf16.mxu0 %vm5117_vm3, %v5342_v37 }
 0x12e   : > { %4297 = vmatmul.mubr.bf16.vlgmr.msra.gmra.mrb[16].mxu1 %v6104_v13 }
 0x12f   : > { %4489 = vmatmul.mubr.msk.bf16.gmra.mrb[16].mxu0 %vm5117_vm3, %v5348_v25  ;;  %4300 = vmatprep.mubr.bf16.mxu1 %v6105_v56 }
 0x130   : > { %4492 = vmatprep.mubr.msk.bf16.mxu0 %vm5117_vm3, %v5376_v3 }
 0x136   : > { %4301 = vmatmul.mubr.bf16.gmra.mrb[20].mxu1 %v6106_v18 }
 0x137   : > { %4493 = vmatmul.mubr.msk.bf16.gmra.mrb[20].mxu0 %vm5117_vm3, %v5383_v38  ;;  %4304 = vmatprep.mubr.bf16.mxu1 %v6107_v15 }
 0x138   : > { %4496 = vmatprep.mubr.msk.bf16.mxu0 %vm5117_vm3, %v5415_v57 }
 0x13e   : > { %4305 = vmatmul.mubr.bf16.gmra.mrb[24].mxu1 %v6108_v30 }
 0x13f   : > { %4497 = vmatmul.mubr.msk.bf16.gmra.mrb[24].mxu0 %vm5117_vm3, %v5420_v35  ;;  %4308 = vmatprep.mubr.bf16.mxu1 %v6109_v34 }
 0x140   : > { %4500 = vmatprep.mubr.msk.bf16.mxu0 %vm5117_vm3, %v5450_v59 }
 0x146   : > { %4309 = vmatmul.mubr.bf16.gmra.mrb[28].mxu1 %v5438_v4 }
 0x147   : > { %4501 = vmatmul.mubr.msk.bf16.gmra.mrb[28].mxu0 %vm5117_vm3, %v5564_v28 }
 0x1c1   : > { %v4234_v2 = vpop.f32.mrb[0].mxu1 }
 0x1c2   : > { %v1309_v27 = vpop.f32.mrb[1].mxu1 }
 0x1c3   : > { %v4235_v31 = vpop.f32.mrb[2].mxu1 }
 0x1c4   : > { %v1312_v43 = vpop.f32.mrb[3].mxu1 }
 0x1c9   : > { %v4238_v57 = vpop.f32.mrb[4].mxu1 }
 0x1ca   : > { %v1325_v61 = vpop.f32.mrb[5].mxu1 }
 0x1cb   : > { %v4239_v5 = vpop.f32.mrb[6].mxu1 }
 0x1cc   : > { %v1328_v33 = vpop.f32.mrb[7].mxu1 }
 0x1d1   : > { %v4242_v37 = vpop.f32.mrb[8].mxu1 }
 0x1d2   : > { %v1341_v44 = vpop.f32.mrb[9].mxu1 }
 0x1d3   : > { %v4243_v42 = vpop.f32.mrb[10].mxu1 }
 0x1d4   : > { %v1344_v26 = vpop.f32.mrb[11].mxu1 }
 0x1d9   : > { %v4246_v25 = vpop.f32.mrb[12].mxu1 }
 0x1da   : > { %v1357_v3 = vpop.f32.mrb[13].mxu1 }
 0x1db   : > { %v4247_v38 = vpop.f32.mrb[14].mxu1 }
 0x1dc   : > { %v1360_v35 = vpop.f32.mrb[15].mxu1 }
 0x1e2   : > { %v4474_v4 = vpop.f32.mrb[0].mxu0 }
 0x1e3   : > { %v5842_v12 = vadd.f32 %v4474_v4, %v4234_v2  ;;  %v2601_v59 = vpop.f32.mrb[1].mxu0 }
 0x1e4   : > { %v5845_v0 = vadd.f32 %v2601_v59, %v1309_v27  ;;  %v4475_v22 = vpop.f32.mrb[2].mxu0 }
 0x1e5   : > { %v5847_v17 = vadd.f32 %v4475_v22, %v4235_v31  ;;  %v2604_v51 = vpop.f32.mrb[3].mxu0 }
 0x1e6   : > { %v5854_v7 = vadd.f32 %v2604_v51, %v1312_v43 }
 0x1e7   : > { %v3769_v11 = vpack.c.bf16 %v5847_v17, %v5842_v12 }
 0x1e8   : > { %v2760_v21 = vadd.f32 %v5854_v7, %v5845_v0  ;;  %v3764_v6 = vpack.c.bf16 %v5854_v7, %v5845_v0 }
 0x1e9   : > { %3841 = vst [vmem:[%s5852_s6 + $0x8] sm:$0xff] %v3769_v11  }
 0x1ea   : > { %v2761_v28 = vadd.f32 %v5842_v12, %v2760_v21  ;;  %3765 = vst [vmem:[%s5852_s6] sm:$0xff] %v3764_v6   ;;  %v4478_v46 = vpop.f32.mrb[4].mxu0 }
 0x1eb   : > { %v5865_v49 = vadd.f32 %v4478_v46, %v4238_v57  ;;  %v2617_v29 = vpop.f32.mrb[5].mxu0 }
 0x1ec   : > { %v5867_v9 = vadd.f32 %v2617_v29, %v1325_v61  ;;  %v2762_v16 = vadd.f32 %v5847_v17, %v2761_v28  ;;  %v4479_v58 = vpop.f32.mrb[6].mxu0 }
 0x1ed   : > { %v5870_v19 = vadd.f32 %v4479_v58, %v4239_v5  ;;  %v2620_v48 = vpop.f32.mrb[7].mxu0 }
 0x1ee   : > { %v2763_v50 = vadd.f32 %v5867_v9, %v2762_v16  ;;  %v5873_v47 = vadd.f32 %v2620_v48, %v1328_v33 }
 0x1ef   : > { %v3779_v1 = vpack.c.bf16 %v5870_v19, %v5865_v49 }
 0x1f0   : > { %v2764_v20 = vadd.f32 %v5873_v47, %v2763_v50  ;;  %v3774_v8 = vpack.c.bf16 %v5873_v47, %v5867_v9 }
 0x1f1   : > { %3843 = vst [vmem:[%s5852_s6 + $0x18] sm:$0xff] %v3779_v1  }
 0x1f2   : > { %v2765_v10 = vadd.f32 %v5865_v49, %v2764_v20  ;;  %3842 = vst [vmem:[%s5852_s6 + $0x10] sm:$0xff] %v3774_v8   ;;  %v4482_v40 = vpop.f32.mrb[8].mxu0 }
 0x1f3   : > { %v5883_v39 = vadd.f32 %v4482_v40, %v4242_v37  ;;  %v2633_v14 = vpop.f32.mrb[9].mxu0 }
 0x1f4   : > { %v5885_v45 = vadd.f32 %v2633_v14, %v1341_v44  ;;  %v2766_v54 = vadd.f32 %v5870_v19, %v2765_v10  ;;  %v4483_v55 = vpop.f32.mrb[10].mxu0 }
 0x1f5   : > { %v5888_v62 = vadd.f32 %v4483_v55, %v4243_v42  ;;  %v2636_v63 = vpop.f32.mrb[11].mxu0 }
 0x1f6   : > { %v2767_v13 = vadd.f32 %v5885_v45, %v2766_v54  ;;  %v5891_v56 = vadd.f32 %v2636_v63, %v1344_v26 }
 0x1f7   : > { %v3789_v18 = vpack.c.bf16 %v5888_v62, %v5883_v39 }
 0x1f8   : > { %v2768_v24 = vadd.f32 %v5891_v56, %v2767_v13  ;;  %v3784_v32 = vpack.c.bf16 %v5891_v56, %v5885_v45 }
 0x1f9   : > { %3845 = vst [vmem:[%s5852_s6 + $0x28] sm:$0xff] %v3789_v18  }
 0x1fa   : > { %v2769_v15 = vadd.f32 %v5883_v39, %v2768_v24  ;;  %3844 = vst [vmem:[%s5852_s6 + $0x20] sm:$0xff] %v3784_v32   ;;  %v4486_v30 = vpop.f32.mrb[12].mxu0 }
 0x1fb   : > { %v5901_v53 = vadd.f32 %v4486_v30, %v4246_v25  ;;  %v2649_v23 = vpop.f32.mrb[13].mxu0 }
 0x1fc   : > { %v5903_v34 = vadd.f32 %v2649_v23, %v1357_v3  ;;  %v2770_v41 = vadd.f32 %v5888_v62, %v2769_v15  ;;  %v4487_v60 = vpop.f32.mrb[14].mxu0 }
 0x1fd   : > { %v5906_v36 = vadd.f32 %v4487_v60, %v4247_v38  ;;  %v2652_v52 = vpop.f32.mrb[15].mxu0 }
 0x1fe   : > { %v2771_v2 = vadd.f32 %v5903_v34, %v2770_v41  ;;  %v5909_v27 = vadd.f32 %v2652_v52, %v1360_v35 }
 0x1ff   : > { %v3799_v31 = vpack.c.bf16 %v5906_v36, %v5901_v53 }
 0x200   : > { %v2772_v43 = vadd.f32 %v5909_v27, %v2771_v2  ;;  %v3794_v57 = vpack.c.bf16 %v5909_v27, %v5903_v34 }
 0x201   : > { %3847 = vst [vmem:[%s5852_s6 + $0x38] sm:$0xff] %v3799_v31   ;;  %v4298_v61 = vpop.f32.mrb[16].mxu1 }
 0x202   : > { %v2773_v5 = vadd.f32 %v5901_v53, %v2772_v43  ;;  %3846 = vst [vmem:[%s5852_s6 + $0x30] sm:$0xff] %v3794_v57   ;;  %v4490_v33 = vpop.f32.mrb[16].mxu0  ;;  %v1632_v37 = vpop.f32.mrb[17].mxu1 }
 0x203   : > { %v5919_v44 = vadd.f32 %v4490_v33, %v4298_v61  ;;  %v2665_v42 = vpop.f32.mrb[17].mxu0  ;;  %v4299_v26 = vpop.f32.mrb[18].mxu1 }
 0x204   : > { %v5921_v25 = vadd.f32 %v2665_v42, %v1632_v37  ;;  %v2774_v3 = vadd.f32 %v5906_v36, %v2773_v5  ;;  %v4491_v38 = vpop.f32.mrb[18].mxu0  ;;  %v1635_v35 = vpop.f32.mrb[19].mxu1 }
 0x205   : > { %v5924_v4 = vadd.f32 %v4491_v38, %v4299_v26  ;;  %v2668_v59 = vpop.f32.mrb[19].mxu0 }
 0x206   : > { %v2775_v22 = vadd.f32 %v5921_v25, %v2774_v3  ;;  %v5927_v51 = vadd.f32 %v2668_v59, %v1635_v35 }
 0x207   : > { %v3809_v11 = vpack.c.bf16 %v5924_v4, %v5919_v44 }
 0x208   : > { %v2776_v21 = vadd.f32 %v5927_v51, %v2775_v22  ;;  %v3804_v6 = vpack.c.bf16 %v5927_v51, %v5921_v25 }
 0x209   : > { %3849 = vst [vmem:[%s5852_s6 + $0x48] sm:$0xff] %v3809_v11   ;;  %v4302_v28 = vpop.f32.mrb[20].mxu1 }
 0x20a   : > { %v2777_v46 = vadd.f32 %v5919_v44, %v2776_v21  ;;  %3848 = vst [vmem:[%s5852_s6 + $0x40] sm:$0xff] %v3804_v6   ;;  %v4494_v29 = vpop.f32.mrb[20].mxu0  ;;  %v1648_v16 = vpop.f32.mrb[21].mxu1 }
 0x20b   : > { %v5937_v58 = vadd.f32 %v4494_v29, %v4302_v28  ;;  %v2681_v48 = vpop.f32.mrb[21].mxu0  ;;  %v4303_v50 = vpop.f32.mrb[22].mxu1 }
 0x20c   : > { %v5939_v1 = vadd.f32 %v2681_v48, %v1648_v16  ;;  %v2778_v20 = vadd.f32 %v5924_v4, %v2777_v46  ;;  %v4495_v8 = vpop.f32.mrb[22].mxu0  ;;  %v1651_v10 = vpop.f32.mrb[23].mxu1 }
 0x20d   : > { %v5942_v40 = vadd.f32 %v4495_v8, %v4303_v50  ;;  %v2684_v14 = vpop.f32.mrb[23].mxu0 }
 0x20e   : > { %v2779_v54 = vadd.f32 %v5939_v1, %v2778_v20  ;;  %v5945_v55 = vadd.f32 %v2684_v14, %v1651_v10 }
 0x20f   : > { %v3819_v63 = vpack.c.bf16 %v5942_v40, %v5937_v58 }
 0x210   : > { %v2780_v13 = vadd.f32 %v5945_v55, %v2779_v54  ;;  %v3814_v18 = vpack.c.bf16 %v5945_v55, %v5939_v1 }
 0x211   : > { %3851 = vst [vmem:[%s5852_s6 + $0x58] sm:$0xff] %v3819_v63   ;;  %v4306_v24 = vpop.f32.mrb[24].mxu1 }
 0x212   : > { %v2781_v32 = vadd.f32 %v5937_v58, %v2780_v13  ;;  %3850 = vst [vmem:[%s5852_s6 + $0x50] sm:$0xff] %v3814_v18   ;;  %v4498_v15 = vpop.f32.mrb[24].mxu0  ;;  %v1664_v30 = vpop.f32.mrb[25].mxu1 }
 0x213   : > { %v5955_v23 = vadd.f32 %v4498_v15, %v4306_v24  ;;  %v2697_v41 = vpop.f32.mrb[25].mxu0  ;;  %v4307_v60 = vpop.f32.mrb[26].mxu1 }
 0x214   : > { %v5957_v52 = vadd.f32 %v2697_v41, %v1664_v30  ;;  %v2782_v2 = vadd.f32 %v5942_v40, %v2781_v32  ;;  %v4499_v31 = vpop.f32.mrb[26].mxu0  ;;  %v1667_v43 = vpop.f32.mrb[27].mxu1 }
 0x215   : > { %v5960_v57 = vadd.f32 %v4499_v31, %v4307_v60  ;;  %v2700_v61 = vpop.f32.mrb[27].mxu0 }
 0x216   : > { %v2783_v5 = vadd.f32 %v5957_v52, %v2782_v2  ;;  %v5963_v33 = vadd.f32 %v2700_v61, %v1667_v43 }
 0x217   : > { %v3829_v37 = vpack.c.bf16 %v5960_v57, %v5955_v23 }
 0x218   : > { %v2784_v42 = vadd.f32 %v5963_v33, %v2783_v5  ;;  %v3824_v26 = vpack.c.bf16 %v5963_v33, %v5957_v52 }
 0x219   : > { %3853 = vst [vmem:[%s5852_s6 + $0x68] sm:$0xff] %v3829_v37   ;;  %v4310_v3 = vpop.f32.mrb[28].mxu1 }
 0x21a   : > { %v2785_v38 = vadd.f32 %v5955_v23, %v2784_v42  ;;  %3852 = vst [vmem:[%s5852_s6 + $0x60] sm:$0xff] %v3824_v26   ;;  %v4502_v35 = vpop.f32.mrb[28].mxu0  ;;  %v1680_v59 = vpop.f32.mrb[29].mxu1 }
 0x21b   : > { %v5973_v22 = vadd.f32 %v4502_v35, %v4310_v3  ;;  %v2713_v11 = vpop.f32.mrb[29].mxu0  ;;  %v4311_v21 = vpop.f32.mrb[30].mxu1 }
 0x21c   : > { %v5975_v6 = vadd.f32 %v2713_v11, %v1680_v59  ;;  %v2786_v28 = vadd.f32 %v5960_v57, %v2785_v38  ;;  %v4503_v46 = vpop.f32.mrb[30].mxu0  ;;  %v1683_v29 = vpop.f32.mrb[31].mxu1 }
 0x21d   : > { %v5978_v16 = vadd.f32 %v4503_v46, %v4311_v21  ;;  %v2716_v48 = vpop.f32.mrb[31].mxu0 }
 0x21e   : > { %v2787_v50 = vadd.f32 %v5975_v6, %v2786_v28  ;;  %v5981_v20 = vadd.f32 %v2716_v48, %v1683_v29 }
 0x21f   : > { %v3839_v8 = vpack.c.bf16 %v5978_v16, %v5973_v22 }
 0x220   : > { %v2788_v10 = vadd.f32 %v5981_v20, %v2787_v50  ;;  %v3834_v14 = vpack.c.bf16 %v5981_v20, %v5975_v6 }
 0x221   : > { %3855 = vst [vmem:[%s5852_s6 + $0x78] sm:$0xff] %v3839_v8  }
 0x222   : > { %v2789_v54 = vadd.f32 %v5973_v22, %v2788_v10  ;;  %3854 = vst [vmem:[%s5852_s6 + $0x70] sm:$0xff] %v3834_v14  }
 0x224   : > { %v2790_v63 = vadd.f32 %v5978_v16, %v2789_v54 }
 0x226   : > { %v2791_v13 = vrot.slane %v2790_v63, 4 }
 0x228   : > { %v2792_v18 = vadd.f32 %v2791_v13, %v2790_v63 }
 0x22a   : > { %v2793_v24 = vrot.slane %v2792_v18, 2 }
 0x22c   : > { %v2794_v32 = vadd.f32 %v2793_v24, %v2792_v18 }
 0x22e   : > { %v2795_v15 = vrot.slane %v2794_v32, 1 }
 0x230   : > { %v5992_v30 = vadd.f32 %v2795_v15, %v2794_v32 }
 0x232   : > { %v5995_v41 = vmul.f32 0.00390625, %v5992_v30 }
 0x234   : > { %v2798_v60 = vsub.f32 %v5845_v0, %v5995_v41  ;;  %v2799_v2 = vsub.f32 %v5854_v7, %v5995_v41  ;;  %v2800_v31 = vsub.f32 %v5842_v12, %v5995_v41  ;;  %v2801_v5 = vsub.f32 %v5847_v17, %v5995_v41 }
 0x235   : > { %v2802_v37 = vsub.f32 %v5867_v9, %v5995_v41  ;;  %v2803_v3 = vsub.f32 %v5873_v47, %v5995_v41  ;;  %v2804_v7 = vsub.f32 %v5865_v49, %v5995_v41  ;;  %v2805_v59 = vsub.f32 %v5870_v19, %v5995_v41 }
 0x236   : > { %v2830_v43 = vmul.f32 %v2798_v60, %v2798_v60  ;;  %v2831_v61 = vmul.f32 %v2799_v2, %v2799_v2  ;;  %v2832_v42 = vmul.f32 %v2800_v31, %v2800_v31  ;;  %v2833_v0 = vmul.f32 %v2801_v5, %v2801_v5 }
 0x237   : > { %v2834_v35 = vmul.f32 %v2802_v37, %v2802_v37  ;;  %v2835_v11 = vmul.f32 %v2803_v3, %v2803_v3  ;;  %v2806_v9 = vsub.f32 %v5885_v45, %v5995_v41  ;;  %v2836_v21 = vmul.f32 %v2804_v7, %v2804_v7 }
 0x238   : > { %v2862_v26 = vadd.f32 %v2831_v61, %v2830_v43  ;;  %v2807_v47 = vsub.f32 %v5891_v56, %v5995_v41  ;;  %v2837_v46 = vmul.f32 %v2805_v59, %v2805_v59  ;;  %v2808_v49 = vsub.f32 %v5883_v39, %v5995_v41 }
 0x239   : > { %v2838_v48 = vmul.f32 %v2806_v9, %v2806_v9  ;;  %v2809_v19 = vsub.f32 %v5888_v62, %v5995_v41  ;;  %v2810_v45 = vsub.f32 %v5903_v34, %v5995_v41  ;;  %v2811_v56 = vsub.f32 %v5909_v27, %v5995_v41 }
 0x23a   : > { %v2863_v38 = vadd.f32 %v2862_v26, %v2832_v42  ;;  %v2839_v8 = vmul.f32 %v2807_v47, %v2807_v47  ;;  %v2840_v14 = vmul.f32 %v2808_v49, %v2808_v49  ;;  %v2812_v39 = vsub.f32 %v5901_v53, %v5995_v41 }
 0x23b   : > { %v2841_v63 = vmul.f32 %v2809_v19, %v2809_v19  ;;  %v2842_v18 = vmul.f32 %v2810_v45, %v2810_v45  ;;  %v2813_v62 = vsub.f32 %v5906_v36, %v5995_v41  ;;  %v2843_v32 = vmul.f32 %v2811_v56, %v2811_v56 }
 0x23c   : > { %v2864_v12 = vadd.f32 %v2863_v38, %v2833_v0  ;;  %v2814_v34 = vsub.f32 %v5921_v25, %v5995_v41  ;;  %v2844_v60 = vmul.f32 %v2812_v39, %v2812_v39  ;;  %v2815_v27 = vsub.f32 %v5927_v51, %v5995_v41 }
 0x23d   : > { %v2845_v31 = vmul.f32 %v2813_v62, %v2813_v62  ;;  %v2816_v53 = vsub.f32 %v5919_v44, %v5995_v41  ;;  %v2817_v36 = vsub.f32 %v5924_v4, %v5995_v41  ;;  %v2818_v25 = vsub.f32 %v5939_v1, %v5995_v41 }
 0x23e   : > { %v2865_v17 = vadd.f32 %v2864_v12, %v2834_v35  ;;  %v2846_v61 = vmul.f32 %v2814_v34, %v2814_v34  ;;  %v2847_v37 = vmul.f32 %v2815_v27, %v2815_v27  ;;  %v2819_v51 = vsub.f32 %v5945_v55, %v5995_v41 }
 0x23f   : > { %v2848_v26 = vmul.f32 %v2816_v53, %v2816_v53  ;;  %v2849_v0 = vmul.f32 %v2817_v36, %v2817_v36  ;;  %v2820_v44 = vsub.f32 %v5937_v58, %v5995_v41  ;;  %v2850_v7 = vmul.f32 %v2818_v25, %v2818_v25 }
 0x240   : > { %v2866_v28 = vadd.f32 %v2865_v17, %v2835_v11  ;;  %v2821_v4 = vsub.f32 %v5942_v40, %v5995_v41  ;;  %v2851_v12 = vmul.f32 %v2819_v51, %v2819_v51  ;;  %v2822_v1 = vsub.f32 %v5957_v52, %v5995_v41 }
 0x241   : > { %v2852_v11 = vmul.f32 %v2820_v44, %v2820_v44  ;;  %v2823_v55 = vsub.f32 %v5963_v33, %v5995_v41  ;;  %v2824_v58 = vsub.f32 %v5955_v23, %v5995_v41  ;;  %v2825_v40 = vsub.f32 %v5960_v57, %v5995_v41 }
 0x242   : > { %v2867_v29 = vadd.f32 %v2866_v28, %v2836_v21  ;;  %v2853_v9 = vmul.f32 %v2821_v4, %v2821_v4  ;;  %v2854_v28 = vmul.f32 %v2822_v1, %v2822_v1  ;;  %v2826_v52 = vsub.f32 %v5975_v6, %v5995_v41 }
 0x243   : > { %v2856_v49 = vmul.f32 %v2824_v58, %v2824_v58  ;;  %v2827_v33 = vsub.f32 %v5981_v20, %v5995_v41  ;;  %v2828_v23 = vsub.f32 %v5973_v22, %v5995_v41  ;;  %v2829_v57 = vsub.f32 %v5978_v16, %v5995_v41 }
 0x244   : > { %v2868_v50 = vadd.f32 %v2867_v29, %v2837_v46  ;;  %v2855_v46 = vmul.f32 %v2823_v55, %v2823_v55 }
 0x245   : > { %v2859_v45 = vmul.f32 %v2827_v33, %v2827_v33  ;;  %v2861_v56 = vmul.f32 %v2829_v57, %v2829_v57 }
 0x246   : > { %v2869_v10 = vadd.f32 %v2868_v50, %v2838_v48  ;;  %v2857_v50 = vmul.f32 %v2825_v40, %v2825_v40 }
 0x248   : > { %v2870_v54 = vadd.f32 %v2869_v10, %v2839_v8  ;;  %v2858_v8 = vmul.f32 %v2826_v52, %v2826_v52 }
 0x24a   : > { %v2871_v13 = vadd.f32 %v2870_v54, %v2840_v14  ;;  %v2860_v54 = vmul.f32 %v2828_v23, %v2828_v23 }
 0x24c   : > { %v2872_v24 = vadd.f32 %v2871_v13, %v2841_v63 }
 0x24e   : > { %v2873_v15 = vadd.f32 %v2872_v24, %v2842_v18 }
 0x250   : > { %v2874_v2 = vadd.f32 %v2873_v15, %v2843_v32 }
 0x252   : > { %v2875_v43 = vadd.f32 %v2874_v2, %v2844_v60 }
 0x254   : > { %v2876_v5 = vadd.f32 %v2875_v43, %v2845_v31 }
 0x256   : > { %v2877_v42 = vadd.f32 %v2876_v5, %v2846_v61 }
 0x258   : > { %v2878_v3 = vadd.f32 %v2877_v42, %v2847_v37 }
 0x25a   : > { %v2879_v38 = vadd.f32 %v2878_v3, %v2848_v26 }
 0x25c   : > { %v2880_v35 = vadd.f32 %v2879_v38, %v2849_v0 }
 0x25e   : > { %v2881_v59 = vadd.f32 %v2880_v35, %v2850_v7 }
 0x260   : > { %v2882_v17 = vadd.f32 %v2881_v59, %v2851_v12 }
 0x262   : > { %v2883_v21 = vadd.f32 %v2882_v17, %v2852_v11 }
 0x264   : > { %v2884_v47 = vadd.f32 %v2883_v21, %v2853_v9 }
 0x266   : > { %v2885_v29 = vadd.f32 %v2884_v47, %v2854_v28 }
 0x268   : > { %v2886_v48 = vadd.f32 %v2885_v29, %v2855_v46 }
 0x26a   : > { %v2887_v19 = vadd.f32 %v2886_v48, %v2856_v49 }
 0x26c   : > { %v2888_v10 = vadd.f32 %v2887_v19, %v2857_v50 }
 0x26e   : > { %v2889_v14 = vadd.f32 %v2888_v10, %v2858_v8 }
 0x270   : > { %v2890_v6 = vadd.f32 %v2889_v14, %v2859_v45 }
 0x272   : > { %v2891_v63 = vadd.f32 %v2890_v6, %v2860_v54 }
 0x274   : > { %v2892_v13 = vadd.f32 %v2891_v63, %v2861_v56 }
 0x276   : > { %v2893_v39 = vrot.slane %v2892_v13, 4 }
 0x278   : > { %v2894_v20 = vadd.f32 %v2893_v39, %v2892_v13 }
 0x27a   : > { %v2895_v18 = vrot.slane %v2894_v20, 2 }
 0x27c   : > { %v2896_v24 = vadd.f32 %v2895_v18, %v2894_v20 }
 0x27e   : > { %v2897_v62 = vrot.slane %v2896_v24, 1 }
 0x280   : > { %v2898_v22 = vadd.f32 %v2897_v62, %v2896_v24 }
 0x282   : > { %v2899_v16 = vsel %vm248_vm0, %v5992_v30, %v2898_v22 }
 0x283   : > { %2900 = vst [vmem:[%s181_s10] sm:$0x3] %v2899_v16 }
 0x284 PF: > { %s14_s12 = sadd.s32 1, %s4873_s12  }
 0x285   : > { %p11_p4 = scmp.ge.s32.totalorder %s14_s12, 4  }
 0x287   :  { %13 = sbr.rel (!%p11_p4) target bundleno = 1 (0x1), region = 78 }

// kernel: residual_block.4
= control target key start
LH: loop header
LB: loop body
LE: loop exit
PB: predicated region body
PF: predicated region fallthrough
CT: control target
= control target key end

     0   :  { %s5185_s18 = smov 0   ;;  %s6418_s0 = inlined_call_operand.vmem [shape: bf16[2,16,16,128], index: 0, kind: input, shape index: {}]   ;;  %s6419_s1 = inlined_call_operand.vmem [shape: f32[1,128], index: 1, kind: input, shape index: {}]   ;;  %s6420_s2 = inlined_call_operand.vmem [shape: f32[1,128], index: 2, kind: input, shape index: {}]   ;;  %s6421_s3 = inlined_call_operand.vmem [shape: bf16[9,128,128], index: 3, kind: input, shape index: {}]   ;;  %s6422_s4 = inlined_call_operand.vmem [shape: bf16[2,16,16,128], index: 4, kind: output, shape index: {0}]   ;;  %s6423_s5 = inlined_call_operand.vmem [shape: f32[2,2,128], index: 5, kind: output, shape index: {1}]  }
   0x1 LB: > { %s3343_s19 = sadd.s32 4294967295, %s5150_s18   ;;  %p3347_p0 = scmp.ge.s32.totalorder %s5150_s18, 1  ;;  %s5150_s18 = sphi %s5185_s18, %s16_s18  }
   0x2   : > { %p190_p1 = scmp.lt.s32.totalorder %s5150_s18, 3 }
   0x4   : > { %p191_p2 = pnand %p3347_p0, %p190_p1 }
   0x6   : > { %194 = sbr.rel (%p191_p2) target bundleno = 644 (0x284), region = 36 }
   0xd   : > { %v5064_v0 = vld [vmem:[%s6421_s3 + $0x40] sm:$0xff]   ;;  %v6424_v2 = vmov 0.0|0.0   ;;  %v5066_v3 = vld [vmem:[%s6421_s3 + $0x48] sm:$0xff]   ;;  %p222_p3 = scmp.lt.s32.totalorder %s3343_s19, 1  ;;  %v5068_v5 = vld [vmem:[%s6421_s3 + $0x50] sm:$0xff]   ;;  %vm444_vm0 = vcmask 1040384  }
   0xe   : > { %v5065_v1 = vld [vmem:[%s6421_s3 + $0x100] sm:$0xff]   ;;  %4365 = vmatprep.mubr.bf16.mxu1 %v6424_v2  ;;  %4349 = vmatprep.subr.bf16.mxu1 %v5064_v0  ;;  %v5067_v4 = vld [vmem:[%s6421_s3 + $0x108] sm:$0xff]   ;;  %v5069_v6 = vld [vmem:[%s6421_s3 + $0x110] sm:$0xff]   ;;  %vm546_vm1 = vcmask 1046528   ;;  %vm5153_vm2 = vmmov 1  }
   0xf   : > { %4541 = vmatprep.subr.bf16.mxu0 %v5065_v1  ;;  %4350 = vmatpush3.bf16.msra.mxu1 %v5064_v0  ;;  %s6469_s19 = smov (!%p222_p3, %s3343_s19), 1  ;;  %v5070_v7 = vld [vmem:[%s6421_s3 + $0x58] sm:$0xff]   ;;  %v5072_v9 = vld [vmem:[%s6421_s3 + $0x60] sm:$0xff]   ;;  %v5074_v11 = vld [vmem:[%s6421_s3 + $0x68] sm:$0xff]  }
  0x10   : > { %4542 = vmatpush3.bf16.msra.mxu0 %v5065_v1  ;;  %4351 = vmatprep.subr.bf16.mxu1 %v5066_v3  ;;  %v5071_v8 = vld [vmem:[%s6421_s3 + $0x118] sm:$0xff]   ;;  %s3925_s11 = sshll.u32 %s6469_s19, 7  ;;  %v5073_v10 = vld [vmem:[%s6421_s3 + $0x120] sm:$0xff]   ;;  %v5075_v14 = vld [vmem:[%s6421_s3 + $0x128] sm:$0xff]  }
  0x11   : > { %4543 = vmatprep.subr.bf16.mxu0 %v5067_v4  ;;  %s5232_s20 = scalar_lea.vmem %s6418_s0, %s3925_s11  ;;  %v5241_v13 = vld [vmem:[%s6419_s1] ss:$0 sm:$0xff]  ;;  %v5076_v23 = vld [vmem:[%s6421_s3 + $0x70] sm:$0xff]   ;;  %v5078_v37 = vld [vmem:[%s6421_s3 + $0x78] sm:$0xff]  }
  0x12   : > { %v3960_v12 = vld [vmem:[%s5232_s20] sm:$0xff]   ;;  %v4103_v18 = vld [vmem:[%s5232_s20 + $0x8] sm:$0xff]   ;;  %v5077_v24 = vld [vmem:[%s6421_s3 + $0x130] sm:$0xff]  }
  0x13   : > { %4352 = vmatpush3.bf16.msra.mxu1 %v5066_v3  ;;  %v3961_v15 = vunpack.c.l.bf16 %v3960_v12  ;;  %v3962_v16 = vunpack.c.h.bf16 %v3960_v12  ;;  %v5249_v17 = vld [vmem:[%s6420_s2] ss:$0 sm:$0xff]  ;;  %v3965_v21 = vunpack.c.l.bf16 %v4103_v18  ;;  %v3966_v22 = vunpack.c.h.bf16 %v4103_v18  ;;  %v4104_v29 = vld [vmem:[%s5232_s20 + $0x10] sm:$0xff]   ;;  %v4105_v32 = vld [vmem:[%s5232_s20 + $0x18] sm:$0xff]  }
  0x14   : > { %4544 = vmatpush3.bf16.msra.mxu0 %v5067_v4  ;;  %4353 = vmatprep.subr.bf16.mxu1 %v5068_v5  ;;  %v3969_v30 = vunpack.c.l.bf16 %v4104_v29  ;;  %v3970_v31 = vunpack.c.h.bf16 %v4104_v29  ;;  %v3973_v40 = vunpack.c.l.bf16 %v4105_v32  ;;  %v3974_v41 = vunpack.c.h.bf16 %v4105_v32  ;;  %v5079_v42 = vld [vmem:[%s6421_s3 + $0x138] sm:$0xff]   ;;  %v4106_v46 = vld [vmem:[%s5232_s20 + $0x20] sm:$0xff]   ;;  %v4107_v57 = vld [vmem:[%s5232_s20 + $0x28] sm:$0xff]  }
  0x15   : > { %4545 = vmatprep.subr.bf16.mxu0 %v5069_v6  ;;  %v308_v19 = vmul.f32 %v3961_v15, %v5241_v13  ;;  %v309_v20 = vmul.f32 %v3962_v16, %v5241_v13  ;;  %v310_v27 = vmul.f32 %v3965_v21, %v5241_v13  ;;  %v311_v28 = vmul.f32 %v3966_v22, %v5241_v13  ;;  %v5080_v56 = vld [vmem:[%s6421_s3] sm:$0xff]   ;;  %v4108_v1 = vld [vmem:[%s5232_s20 + $0x30] sm:$0xff]   ;;  %v5085_v32 = vld [vmem:[%s6421_s3 + $0x158] sm:$0xff]  }
  0x16   : > { %v312_v38 = vmul.f32 %v3969_v30, %v5241_v13  ;;  %v313_v39 = vmul.f32 %v3970_v31, %v5241_v13  ;;  %v314_v52 = vmul.f32 %v3973_v40, %v5241_v13  ;;  %v315_v53 = vmul.f32 %v3974_v41, %v5241_v13  ;;  %v5081_v58 = vld [vmem:[%s6421_s3 + $0x140] sm:$0xff]   ;;  %v5086_v22 = vld [vmem:[%s6421_s3 + $0x10] sm:$0xff]   ;;  %v4111_v40 = vld [vmem:[%s5232_s20 + $0x48] sm:$0xff]  }
  0x17   : > { %4354 = vmatpush3.bf16.msra.mxu1 %v5068_v5  ;;  %v347_v25 = vadd.f32 %v5249_v17, %v308_v19  ;;  %v348_v26 = vadd.f32 %v5249_v17, %v309_v20  ;;  %v349_v35 = vadd.f32 %v5249_v17, %v310_v27  ;;  %v350_v36 = vadd.f32 %v5249_v17, %v311_v28  ;;  %vm5447_vm3 = vmpackc.low %vm546_vm1, %vm5153_vm2 }
  0x18   : > { %4546 = vmatpush3.bf16.msra.mxu0 %v5069_v6  ;;  %4355 = vmatprep.subr.bf16.mxu1 %v5070_v7  ;;  %v351_v49 = vadd.f32 %v5249_v17, %v312_v38  ;;  %v352_v50 = vadd.f32 %v5249_v17, %v313_v39  ;;  %v3977_v54 = vunpack.c.l.bf16 %v4106_v46  ;;  %v353_v61 = vadd.f32 %v5249_v17, %v314_v52  ;;  %v5089_v38 = vld [vmem:[%s6421_s3 + $0x18] sm:$0xff]   ;;  %v4110_v39 = vld [vmem:[%s5232_s20 + $0x40] sm:$0xff]   ;;  %vm5639_vm4 = vmneg %vm444_vm0 }
  0x19   : > { %4547 = vmatprep.subr.bf16.mxu0 %v5071_v8  ;;  %v5266_v33 = vmax.f32 %v347_v25, 0.0  ;;  %v5268_v34 = vmax.f32 %v348_v26, 0.0  ;;  %v5285_v47 = vmax.f32 %v349_v35, 0.0  ;;  %v5287_v48 = vmax.f32 %v350_v36, 0.0  ;;  %v4109_v25 = vld [vmem:[%s5232_s20 + $0x38] sm:$0xff]   ;;  %v5084_v26 = vld [vmem:[%s6421_s3 + $0x150] sm:$0xff]   ;;  %vm5669_vm5 = vmpackc.low %vm5153_vm2, %vm5639_vm4 }
  0x1a   : > { %v5303_v59 = vmax.f32 %v351_v49, 0.0  ;;  %v5305_v60 = vmax.f32 %v352_v50, 0.0  ;;  %v354_v62 = vadd.f32 %v5249_v17, %v315_v53  ;;  %v3978_v63 = vunpack.c.h.bf16 %v4106_v46  ;;  %v5087_v50 = vld [vmem:[%s6421_s3 + $0x160] sm:$0xff]  }
  0x1b   : > { %4356 = vmatpush3.bf16.msra.mxu1 %v5070_v7  ;;  %v447_v43 = vrot.slane %v5266_v33, 7  ;;  %v448_v44 = vrot.slane %v5268_v34, 7  ;;  %v681_v45 = vpack.c.bf16 %v5268_v34, %v5266_v33  ;;  %v316_v0 = vmul.f32 %v3977_v54, %v5241_v13  ;;  %v5092_v52 = vld [vmem:[%s6421_s3 + $0x20] sm:$0xff]  }
  0x1c   : > { %4548 = vmatpush3.bf16.msra.mxu0 %v5071_v8  ;;  %4357 = vmatprep.subr.bf16.mxu1 %v5072_v9  ;;  %v5313_v3 = vpack.c.bf16 %v5287_v48, %v5285_v47  ;;  %v3981_v4 = vunpack.c.l.bf16 %v4107_v57  ;;  %v317_v5 = vmul.f32 %v3978_v63, %v5241_v13  ;;  %v3982_v7 = vunpack.c.h.bf16 %v4107_v57  ;;  %v5082_v8 = vld [vmem:[%s6421_s3 + $0x148] sm:$0xff]  }
  0x1d   : > { %4549 = vmatprep.subr.bf16.mxu0 %v5073_v10  ;;  %v449_v51 = vsel %vm444_vm0, %v447_v43, %v448_v44  ;;  %4557 = vmatprep.mubr.bf16.mxu0 %v681_v45  ;;  %v355_v6 = vadd.f32 %v5249_v17, %v316_v0  ;;  %v3986_v12 = vunpack.c.h.bf16 %v4108_v1  ;;  %v5329_v15 = vmax.f32 %v354_v62, 0.0  ;;  %v5088_v0 = vld [vmem:[%s6421_s3 + $0x168] sm:$0xff]  }
  0x1e   : > { %v5294_v55 = vpack.c.bf16 %v449_v51, %v447_v43  ;;  %v356_v16 = vadd.f32 %v5249_v17, %v317_v5  ;;  %v318_v18 = vmul.f32 %v3981_v4, %v5241_v13  ;;  %v319_v19 = vmul.f32 %v3982_v7, %v5241_v13  ;;  %v4112_v7 = vld [vmem:[%s5232_s20 + $0x50] sm:$0xff]  }
  0x1f   : > { %4358 = vmatpush3.bf16.msra.mxu1 %v5072_v9  ;;  %v5322_v9 = vpack.c.bf16 %v5305_v60, %v5303_v59  ;;  %v5336_v20 = vmax.f32 %v355_v6, 0.0  ;;  %v3989_v30 = vunpack.c.l.bf16 %v4109_v25  ;;  %v3990_v31 = vunpack.c.h.bf16 %v4109_v25 }
  0x20   : > { %4550 = vmatpush3.bf16.msra.mxu0 %v5073_v10  ;;  %4359 = vmatprep.subr.bf16.mxu1 %v5074_v11  ;;  %6442 = vst [vmem:[#allocation2_spill] sm:$0xff] %v5294_v55  ;;  %v5083_v10 = vld [vmem:[%s6421_s3 + $0x8] sm:$0xff]   ;;  %v5338_v21 = vmax.f32 %v356_v16, 0.0  ;;  %v357_v28 = vadd.f32 %v5249_v17, %v318_v18  ;;  %v358_v29 = vadd.f32 %v5249_v17, %v319_v19  ;;  %v3993_v49 = vunpack.c.l.bf16 %v4110_v39  ;;  %v4113_v16 = vld [vmem:[%s5232_s20 + $0x58] sm:$0xff]   ;;  %v5090_v18 = vld [vmem:[%s6421_s3 + $0x170] sm:$0xff]  }
  0x21   : > { %4551 = vmatprep.subr.bf16.mxu0 %v5075_v14  ;;  %v322_v43 = vmul.f32 %v3989_v30, %v5241_v13  ;;  %v323_v44 = vmul.f32 %v3990_v31, %v5241_v13  ;;  %v3994_v51 = vunpack.c.h.bf16 %v4110_v39  ;;  %v3997_v53 = vunpack.c.l.bf16 %v4111_v40  ;;  %v5091_v31 = vld [vmem:[%s6421_s3 + $0x178] sm:$0xff]  }
  0x22   : > { %v5361_v35 = vpack.c.bf16 %v5338_v21, %v5336_v20  ;;  %v5373_v41 = vmax.f32 %v357_v28, 0.0  ;;  %v3998_v54 = vunpack.c.h.bf16 %v4111_v40  ;;  %v324_v63 = vmul.f32 %v3993_v49, %v5241_v13 }
  0x23   : > { %4360 = vmatpush3.bf16.msra.mxu1 %v5074_v11  ;;  %v3985_v11 = vunpack.c.l.bf16 %v4108_v1  ;;  %v361_v57 = vadd.f32 %v5249_v17, %v322_v43  ;;  %v550_v1 = vrot.slane %v5268_v34, 1  ;;  %v325_v4 = vmul.f32 %v3994_v51, %v5241_v13 }
  0x24   : > { %4552 = vmatpush3.bf16.msra.mxu0 %v5075_v14  ;;  %4361 = vmatprep.subr.bf16.mxu1 %v5076_v23  ;;  %v5327_v14 = vmax.f32 %v353_v61, 0.0  ;;  %v549_v61 = vrot.slane %v5266_v33, 1  ;;  %v552_v33 = vrot.slane %v5285_v47, 1  ;;  %v326_v5 = vmul.f32 %v3997_v53, %v5241_v13  ;;  %v4114_v53 = vld [vmem:[%s5232_s20 + $0x60] sm:$0xff]  }
  0x25   : > { %4553 = vmatprep.subr.bf16.mxu0 %v5077_v24  ;;  %v327_v6 = vmul.f32 %v3998_v54, %v5241_v13  ;;  %v5417_v34 = vmax.f32 %v361_v57, 0.0  ;;  %v555_v28 = vrot.slane %v5303_v59, 1  ;;  %v5098_v54 = vld [vmem:[%s6421_s3 + $0x38] sm:$0xff]  }
  0x26   : > { %v5352_v27 = vpack.c.bf16 %v5329_v15, %v5327_v14  ;;  %v551_v19 = vsel %vm546_vm1, %v549_v61, %v550_v1  ;;  %v365_v25 = vadd.f32 %v5249_v17, %v326_v5 }
  0x27   : > { %4362 = vmatpush3.bf16.msra.mxu1 %v5076_v23  ;;  %v320_v23 = vmul.f32 %v3985_v11, %v5241_v13  ;;  %v553_v11 = vrot.slane %v5287_v48, 1  ;;  %v5451_v40 = vpack.c.bf16 %v550_v1, %v551_v19  ;;  %v4009_v1 = vunpack.c.l.bf16 %v4114_v53 }
  0x28   : > { %4554 = vmatpush3.bf16.msra.mxu0 %v5077_v24  ;;  %4363 = vmatprep.subr.bf16.mxu1 %v5078_v37  ;;  %v321_v24 = vmul.f32 %v3986_v12, %v5241_v13  ;;  %v363_v12 = vadd.f32 %v5249_v17, %v324_v63  ;;  %v5466_v57 = vmax.f32 %v365_v25, 0.0 }
  0x29   : > { %4555 = vmatprep.subr.bf16.mxu0 %v5079_v42  ;;  %v359_v36 = vadd.f32 %v5249_v17, %v320_v23  ;;  %v4001_v23 = vunpack.c.l.bf16 %v4112_v7 }
  0x2a   : > { %v5453_v43 = vmax.f32 %v363_v12, 0.0 }
  0x2b   : > { %4364 = vmatpush3.bf16.msra.mxu1 %v5078_v37  ;;  %v360_v37 = vadd.f32 %v5249_v17, %v321_v24  ;;  %v4002_v24 = vunpack.c.h.bf16 %v4112_v7 }
  0x2c   : > { %4556 = vmatpush3.bf16.msra.mxu0 %v5079_v42  ;;  %4397 = vmatprep.subr.bf16.mxu1 %v5080_v56  ;;  %v5375_v42 = vmax.f32 %v358_v29, 0.0  ;;  %v5096_v29 = vld [vmem:[%s6421_s3 + $0x30] sm:$0xff]  }
  0x2d   : > { %4589 = vmatprep.subr.bf16.mxu0 %v5081_v58  ;;  %v5382_v46 = vmax.f32 %v360_v37, 0.0  ;;  %v4006_v37 = vunpack.c.h.bf16 %v4113_v16  ;;  %v329_v51 = vmul.f32 %v4002_v24, %v5241_v13 }
  0x2e   : > { %4366 = vmatmul.mubr.bf16.vlgmr.msra.gmra.mrb[0].mxu1 %v681_v45  ;;  %v5380_v45 = vmax.f32 %v359_v36, 0.0  ;;  %v4005_v36 = vunpack.c.l.bf16 %v4113_v16  ;;  %v4010_v16 = vunpack.c.h.bf16 %v4114_v53 }
  0x2f   : > { %4558 = vmatmul.mubr.bf16.vlgmr.msra.gmra.mrb[0].mxu0 %v5313_v3  ;;  %4398 = vmatpush3.bf16.msra.mxu1 %v5080_v56  ;;  %v5392_v56 = vpack.c.bf16 %v5375_v42, %v5373_v41  ;;  %v331_v63 = vmul.f32 %v4006_v37, %v5241_v13  ;;  %v368_v7 = vadd.f32 %v5249_v17, %v329_v51 }
  0x30   : > { %4590 = vmatpush3.bf16.msra.mxu0 %v5081_v58  ;;  %4369 = vmatprep.mubr.bf16.mxu1 %v5313_v3  ;;  %v362_v58 = vadd.f32 %v5249_v17, %v323_v44  ;;  %v5399_v62 = vpack.c.bf16 %v5382_v46, %v5380_v45  ;;  %v558_v44 = vrot.slane %v5327_v14, 1  ;;  %v330_v61 = vmul.f32 %v4005_v36, %v5241_v13 }
  0x31   : > { %4591 = vmatprep.subr.bf16.mxu0 %v5082_v8  ;;  %4561 = vmatprep.mubr.bf16.mxu0 %v5322_v9  ;;  %v5509_v37 = vmax.f32 %v368_v7, 0.0  ;;  %v459_v7 = vrot.slane %v5336_v20, 7 }
  0x32   : > { %4399 = vmatprep.subr.bf16.mxu1 %v5083_v10  ;;  %v369_v19 = vadd.f32 %v5249_v17, %v330_v61 }
  0x33   : > { %4400 = vmatpush3.bf16.msra.mxu1 %v5083_v10  ;;  %v5419_v10 = vmax.f32 %v362_v58, 0.0 }
  0x34   : > { %4592 = vmatpush3.bf16.msra.mxu0 %v5082_v8  ;;  %4401 = vmatprep.subr.bf16.mxu1 %v5086_v22  ;;  %v5094_v8 = vld [vmem:[%s6421_s3 + $0x28] sm:$0xff]   ;;  %v5525_v51 = vmax.f32 %v369_v19, 0.0 }
  0x35   : > { %4593 = vmatprep.subr.bf16.mxu0 %v5084_v26  ;;  %v5438_v30 = vpack.c.bf16 %v5419_v10, %v5417_v34 }
  0x36   : > { %4370 = vmatmul.mubr.bf16.gmra.mrb[4].mxu1 %v5322_v9 }
  0x37   : > { %4562 = vmatmul.mubr.bf16.gmra.mrb[4].mxu0 %v5352_v27  ;;  %4373 = vmatprep.mubr.bf16.mxu1 %v5352_v27  ;;  %6443 = vst [vmem:[#allocation3_spill] sm:$0xff] %v5438_v30 }
  0x38   : > { %4594 = vmatpush3.bf16.msra.mxu0 %v5084_v26  ;;  %4565 = vmatprep.mubr.bf16.mxu0 %v5361_v35  ;;  %v366_v26 = vadd.f32 %v5249_v17, %v327_v6 }
  0x39   : > { %4595 = vmatprep.subr.bf16.mxu0 %v5085_v32  ;;  %4402 = vmatpush3.bf16.msra.mxu1 %v5086_v22  ;;  %v364_v22 = vadd.f32 %v5249_v17, %v325_v4  ;;  %v4115_v4 = vld [vmem:[%s5232_s20 + $0x68] sm:$0xff]  }
  0x3a   : > { %4403 = vmatprep.subr.bf16.mxu1 %v5089_v38  ;;  %v5468_v58 = vmax.f32 %v366_v26, 0.0  ;;  %v4014_v24 = vunpack.c.h.bf16 %v4115_v4  ;;  %v561_v26 = vrot.slane %v5336_v20, 1  ;;  %v567_v20 = vrot.slane %v5380_v45, 1 }
  0x3b   : > { %v5456_v49 = vmax.f32 %v364_v22, 0.0  ;;  %v370_v22 = vadd.f32 %v5249_v17, %v331_v63  ;;  %v564_v63 = vrot.slane %v5373_v41, 1 }
  0x3c   : > { %4596 = vmatpush3.bf16.msra.mxu0 %v5085_v32  ;;  %v556_v32 = vrot.slane %v5305_v60, 1 }
  0x3d   : > { %4597 = vmatprep.subr.bf16.mxu0 %v5087_v50  ;;  %4404 = vmatpush3.bf16.msra.mxu1 %v5089_v38  ;;  %v554_v38 = vsel %vm546_vm1, %v552_v33, %v553_v11  ;;  %v5093_v33 = vld [vmem:[%s6421_s3 + $0x180] sm:$0xff]   ;;  %v5527_v53 = vmax.f32 %v370_v22, 0.0  ;;  %v460_v22 = vrot.slane %v5338_v21, 7 }
  0x3e   : > { %4374 = vmatmul.mubr.bf16.gmra.mrb[8].mxu1 %v5361_v35  ;;  %4405 = vmatprep.subr.bf16.mxu1 %v5092_v52  ;;  %v557_v5 = vsel %vm546_vm1, %v555_v28, %v556_v32  ;;  %v562_v28 = vrot.slane %v5338_v21, 1  ;;  %v5099_v21 = vld [vmem:[%s6421_s3 + $0x198] sm:$0xff]  }
  0x3f   : > { %4566 = vmatmul.mubr.bf16.gmra.mrb[8].mxu0 %v5392_v56  ;;  %4377 = vmatprep.mubr.bf16.mxu1 %v5392_v56  ;;  %v5502_v25 = vpack.c.bf16 %v556_v32, %v557_v5  ;;  %v565_v5 = vrot.slane %v5375_v42, 1 }
  0x40   : > { %4598 = vmatpush3.bf16.msra.mxu0 %v5087_v50  ;;  %4569 = vmatprep.mubr.bf16.mxu0 %v5399_v62  ;;  %v328_v50 = vmul.f32 %v4001_v23, %v5241_v13  ;;  %v4013_v23 = vunpack.c.l.bf16 %v4115_v4 }
  0x41   : > { %4599 = vmatprep.subr.bf16.mxu0 %v5088_v0  ;;  %4406 = vmatpush3.bf16.msra.mxu1 %v5092_v52  ;;  %v559_v52 = vrot.slane %v5329_v15, 1 }
  0x42   : > { %4407 = vmatprep.subr.bf16.mxu1 %v5094_v8  ;;  %v367_v6 = vadd.f32 %v5249_v17, %v328_v50  ;;  %v454_v50 = vrot.slane %v5305_v60, 7  ;;  %v563_v60 = vsel %vm546_vm1, %v561_v26, %v562_v28 }
  0x43   : > { %v560_v12 = vsel %vm546_vm1, %v558_v44, %v559_v52  ;;  %v333_v44 = vmul.f32 %v4010_v16, %v5241_v13 }
  0x44   : > { %4600 = vmatpush3.bf16.msra.mxu0 %v5088_v0  ;;  %v5474_v0 = vpack.c.bf16 %v553_v11, %v554_v38  ;;  %v5492_v11 = vpack.c.bf16 %v5468_v58, %v5466_v57  ;;  %v5507_v36 = vmax.f32 %v367_v6, 0.0  ;;  %v5095_v38 = vld [vmem:[%s6421_s3 + $0x188] sm:$0xff]   ;;  %v5516_v32 = vpack.c.bf16 %v559_v52, %v560_v12 }
  0x45   : > { %4601 = vmatprep.subr.bf16.mxu0 %v5090_v18  ;;  %4408 = vmatpush3.bf16.msra.mxu1 %v5094_v8  ;;  %v5488_v8 = vpack.c.bf16 %v5456_v49, %v5453_v43  ;;  %v335_v52 = vmul.f32 %v4014_v24, %v5241_v13  ;;  %v372_v12 = vadd.f32 %v5249_v17, %v333_v44  ;;  %v568_v44 = vrot.slane %v5382_v46, 1 }
  0x46   : > { %4378 = vmatmul.mubr.bf16.gmra.mrb[12].mxu1 %v5399_v62  ;;  %4409 = vmatprep.subr.bf16.mxu1 %v5096_v29  ;;  %6447 = vst [vmem:[#allocation5_spill] sm:$0xff] %v5492_v11  ;;  %v5556_v24 = vpack.c.bf16 %v562_v28, %v563_v60  ;;  %v566_v28 = vsel %vm546_vm1, %v564_v63, %v565_v5 }
  0x47   : > { %4570 = vmatmul.mubr.bf16.gmra.mrb[12].mxu0 %v5438_v30  ;;  %4381 = vmatprep.mubr.bf16.mxu1 %v5438_v30  ;;  %6446 = vst [vmem:[#allocation4_spill] sm:$0xff] %v5488_v8  ;;  %v5575_v60 = vmax.f32 %v372_v12, 0.0 }
  0x48   : > { %4602 = vmatpush3.bf16.msra.mxu0 %v5090_v18  ;;  %4605 = vmatprep.mubr.msk.bf16.mxu0 %vm5447_vm3, %v5451_v40  ;;  %v5498_v18 = vld [vmem:[%s6421_s3 + $0x80] sm:$0xff]  }
  0x49   : > { %4603 = vmatprep.subr.bf16.mxu0 %v5091_v31  ;;  %4410 = vmatpush3.bf16.msra.mxu1 %v5096_v29  ;;  %v332_v29 = vmul.f32 %v4009_v1, %v5241_v13  ;;  %v5097_v1 = vld [vmem:[%s6421_s3 + $0x190] sm:$0xff]   ;;  %v586_v30 = vrot.slane %v5575_v60, 1 }
  0x4a   : > { %4411 = vmatprep.subr.bf16.mxu1 %v5098_v54 }
  0x4b   : > { %v371_v61 = vadd.f32 %v5249_v17, %v332_v29  ;;  %v374_v29 = vadd.f32 %v5249_v17, %v335_v52  ;;  %v465_v52 = vrot.slane %v5380_v45, 7 }
  0x4c   : > { %4604 = vmatpush3.bf16.msra.mxu0 %v5091_v31  ;;  %v453_v31 = vrot.slane %v5303_v59, 7  ;;  %v334_v59 = vmul.f32 %v4013_v23, %v5241_v13  ;;  %v5554_v23 = vpack.c.bf16 %v5527_v53, %v5525_v51 }
  0x4d   : > { %4637 = vmatprep.subr.bf16.mxu0 %v5093_v33  ;;  %4412 = vmatpush3.bf16.msra.mxu1 %v5098_v54  ;;  %v4116_v54 = vld [vmem:[%s5232_s20 + $0x70] sm:$0xff]   ;;  %v5585_v45 = vmax.f32 %v374_v29, 0.0 }
  0x4e   : > { %4382 = vmatmul.mubr.bf16.gmra.mrb[16].mxu1 %v5488_v8  ;;  %4445 = vmatprep.subr.bf16.mxu1 %v5498_v18  ;;  %v455_v4 = vsel %vm444_vm0, %v453_v31, %v454_v50  ;;  %v4017_v16 = vunpack.c.l.bf16 %v4116_v54  ;;  %v4018_v19 = vunpack.c.h.bf16 %v4116_v54  ;;  %6449 = vst [vmem:[#allocation7_spill] sm:$0xff] %v5554_v23  ;;  %v373_v26 = vadd.f32 %v5249_v17, %v334_v59 }
  0x4f   : > { %4606 = vmatmul.mubr.msk.bf16.vlgmr.msra.gmra.mrb[0].mxu0 %vm5447_vm3, %v5474_v0  ;;  %4385 = vmatprep.mubr.bf16.mxu1 %v5492_v11  ;;  %v5547_v6 = vpack.c.bf16 %v455_v4, %v453_v31  ;;  %v4117_v31 = vld [vmem:[%s5232_s20 + $0x78] sm:$0xff]   ;;  %v5561_v50 = vmax.f32 %v371_v61, 0.0  ;;  %v461_v54 = vsel %vm444_vm0, %v459_v7, %v460_v22  ;;  %v569_v22 = vsel %vm546_vm1, %v567_v20, %v568_v44  ;;  %s6200_s20 = scalar_lea.vmem %s6422_s4, %s3925_s11  ;;  %s3352_s11 = sshll.u32 %s6469_s19, 1 }
  0x50   : > { %4638 = vmatpush3.bf16.msra.mxu0 %v5093_v33  ;;  %4609 = vmatprep.mubr.msk.bf16.mxu0 %vm5447_vm3, %v5502_v25  ;;  %v5544_v33 = vpack.c.bf16 %v5509_v37, %v5507_v36  ;;  %v5570_v59 = vpack.c.bf16 %v461_v54, %v459_v7  ;;  %v336_v61 = vmul.f32 %v4017_v16, %v5241_v13  ;;  %v4021_v2 = vunpack.c.l.bf16 %v4117_v31  ;;  %s235_s15 = scalar_lea.vmem %s6423_s5, %s3352_s11 }
  0x51   : > { %4639 = vmatprep.subr.bf16.mxu0 %v5095_v38  ;;  %v337_v4 = vmul.f32 %v4018_v19, %v5241_v13  ;;  %v5583_v63 = vmax.f32 %v373_v26, 0.0  ;;  %v4022_v7 = vunpack.c.h.bf16 %v4117_v31  ;;  %v5594_v19 = vpack.c.bf16 %v565_v5, %v566_v28  ;;  %v5101_v26 = vld [vmem:[%s6421_s3 + $0x1a0] sm:$0xff]  }
  0x52   : > { %6448 = vst [vmem:[#allocation6_spill] sm:$0xff] %v5544_v33  ;;  %v338_v16 = vmul.f32 %v4021_v2, %v5241_v13  ;;  %v5603_v31 = vpack.c.bf16 %v5575_v60, %v5561_v50  ;;  %v570_v20 = vrot.slane %v5417_v34, 1  ;;  %v571_v28 = vrot.slane %v5419_v10, 1 }
  0x53   : > { %v339_v29 = vmul.f32 %v4022_v7, %v5241_v13  ;;  %v376_v54 = vadd.f32 %v5249_v17, %v337_v4  ;;  %v5610_v5 = vpack.c.bf16 %v5585_v45, %v5583_v63  ;;  %v5103_v13 = vld [vmem:[%s6421_s3 + $0x1a8] sm:$0xff]  }
  0x54   : > { %4640 = vmatpush3.bf16.msra.mxu0 %v5095_v38  ;;  %v466_v38 = vrot.slane %v5382_v46, 7  ;;  %6450 = vst [vmem:[#allocation8_spill] sm:$0xff] %v5603_v31  ;;  %v377_v2 = vadd.f32 %v5249_v17, %v338_v16 }
  0x55   : > { %4641 = vmatprep.subr.bf16.mxu0 %v5097_v1  ;;  %6451 = vst [vmem:[#allocation9_spill] sm:$0xff] %v5610_v5 }
  0x56   : > { %4386 = vmatmul.mubr.bf16.gmra.mrb[20].mxu1 %v5544_v33  ;;  %v467_v46 = vsel %vm444_vm0, %v465_v52, %v466_v38  ;;  %v5618_v38 = vpack.c.bf16 %v568_v44, %v569_v22  ;;  %v5621_v4 = vmax.f32 %v377_v2, 0.0  ;;  %v6429_v33 = vmov 0.0   ;;  %v5107_v22 = vld [vmem:[%s6421_s3 + $0x1b8] sm:$0xff]  }
  0x57   : > { %4610 = vmatmul.mubr.msk.bf16.gmra.mrb[4].mxu0 %vm5447_vm3, %v5516_v32  ;;  %4389 = vmatprep.mubr.bf16.mxu1 %v5554_v23  ;;  %v5591_v12 = vpack.c.bf16 %v467_v46, %v465_v52  ;;  %v378_v52 = vadd.f32 %v5249_v17, %v339_v29  ;;  %v574_v46 = vrot.slane %v5456_v49, 1  ;;  %v5629_v23 = vmax.f32 %v376_v54, 0.0  ;;  %v5105_v54 = vld [vmem:[%s6421_s3 + $0x1b0] sm:$0xff]  }
  0x58   : > { %4613 = vmatprep.mubr.msk.bf16.mxu0 %vm5447_vm3, %v5556_v24  ;;  %4642 = vmatpush3.bf16.msra.mxu0 %v5097_v1  ;;  %v375_v1 = vadd.f32 %v5249_v17, %v336_v61  ;;  %v573_v61 = vrot.slane %v5453_v43, 1  ;;  %v445_v17 = vrot.slane %v6429_v33, 7  ;;  %v594_v44 = vrot.slane %v5621_v4, 1 }
  0x59   : > { %4643 = vmatprep.subr.bf16.mxu0 %v5099_v21  ;;  %v5624_v7 = vmax.f32 %v378_v52, 0.0  ;;  %v572_v29 = vsel %vm546_vm1, %v570_v20, %v571_v28  ;;  %v492_v20 = vrot.slane %v5621_v4, 7 }
  0x5a   : > { %v5627_v16 = vmax.f32 %v375_v1, 0.0  ;;  %v575_v1 = vsel %vm546_vm1, %v573_v61, %v574_v46  ;;  %v5656_v33 = vpack.c.bf16 %v445_v17, %v445_v17  ;;  %v576_v61 = vrot.slane %v5466_v57, 1 }
  0x5b   : > { %v493_v11 = vrot.slane %v5624_v7, 7  ;;  %v5673_v17 = vpack.c.bf16 %v574_v46, %v575_v1 }
  0x5c   : > { %4644 = vmatpush3.bf16.msra.mxu0 %v5099_v21  ;;  %v595_v21 = vrot.slane %v5624_v7, 1  ;;  %v5654_v52 = vpack.c.bf16 %v5629_v23, %v5627_v16 }
  0x5d   : > { %4645 = vmatprep.subr.bf16.mxu0 %v5101_v26  ;;  %v494_v8 = vsel %vm444_vm0, %v492_v20, %v493_v11  ;;  %v5701_v11 = vld [vmem:[%s6421_s3 + $0x1c0] sm:$0xff]  }
  0x5e   : > { %4390 = vmatmul.mubr.bf16.gmra.mrb[24].mxu1 %v5603_v31  ;;  %v596_v2 = vsel %vm546_vm1, %v594_v44, %v595_v21  ;;  %6454 = vst [vmem:[#allocation10_spill] sm:$0xff] %v5654_v52  ;;  %v577_v31 = vrot.slane %v5468_v58, 1  ;;  %v5684_v46 = vpack.c.bf16 %v494_v8, %v492_v20  ;;  %v582_v20 = vrot.slane %v5525_v51, 1 }
  0x5f   : > { %4614 = vmatmul.mubr.msk.bf16.gmra.mrb[8].mxu0 %vm5447_vm3, %v5594_v19  ;;  %4393 = vmatprep.mubr.bf16.mxu1 %v5610_v5  ;;  %v5658_v5 = vpack.c.bf16 %v595_v21, %v596_v2  ;;  %v450_v21 = vrot.slane %v5285_v47, 7  ;;  %v580_v2 = vrot.slane %v5509_v37, 1 }
  0x60   : > { %4617 = vmatprep.mubr.msk.bf16.mxu0 %vm5447_vm3, %v5618_v38  ;;  %4646 = vmatpush3.bf16.msra.mxu0 %v5101_v26  ;;  %v5661_v26 = vpack.c.bf16 %v571_v28, %v572_v29  ;;  %v451_v28 = vrot.slane %v5287_v48, 7  ;;  %v579_v29 = vrot.slane %v5507_v36, 1  ;;  %v578_v47 = vsel %vm546_vm1, %v576_v61, %v577_v31 }
  0x61   : > { %4647 = vmatprep.subr.bf16.mxu0 %v5103_v13  ;;  %v583_v61 = vrot.slane %v5527_v53, 1 }
  0x62   : > { %v452_v48 = vsel %vm444_vm0, %v450_v21, %v451_v28  ;;  %v581_v8 = vsel %vm546_vm1, %v579_v29, %v580_v2  ;;  %v585_v29 = vrot.slane %v5561_v50, 1 }
  0x63   : > { %v5705_v1 = vpack.c.bf16 %v452_v48, %v450_v21  ;;  %v5710_v28 = vpack.c.bf16 %v580_v2, %v581_v8  ;;  %v5104_v2 = vld [vmem:[%s6421_s3 + $0x90] sm:$0xff]   ;;  %v588_v48 = vrot.slane %v5583_v63, 1  ;;  %v589_v8 = vrot.slane %v5585_v45, 1 }
  0x64   : > { %4648 = vmatpush3.bf16.msra.mxu0 %v5103_v13  ;;  %v5703_v13 = vpack.c.bf16 %v577_v31, %v578_v47  ;;  %v5102_v31 = vld [vmem:[%s6421_s3 + $0x88] sm:$0xff]   ;;  %v587_v21 = vsel %vm546_vm1, %v585_v29, %v586_v30  ;;  %v591_v29 = vrot.slane %v5627_v16, 1 }
  0x65   : > { %4649 = vmatprep.subr.bf16.mxu0 %v5105_v54  ;;  %v5742_v47 = vpack.c.bf16 %v586_v30, %v587_v21  ;;  %v468_v21 = vrot.slane %v5417_v34, 7 }
  0x66   : > { %4394 = vmatmul.mubr.bf16.gmra.mrb[28].mxu1 %v5654_v52  ;;  %v456_v52 = vrot.slane %v5327_v14, 7  ;;  %v584_v14 = vsel %vm546_vm1, %v582_v20, %v583_v61  ;;  %v462_v20 = vrot.slane %v5373_v41, 7  ;;  %v590_v41 = vsel %vm546_vm1, %v588_v48, %v589_v8  ;;  %v5110_v48 = vld [vmem:[%s6421_s3 + $0xa8] sm:$0xff]  }
  0x67   : > { %4618 = vmatmul.mubr.msk.bf16.gmra.mrb[12].mxu0 %vm5447_vm3, %v5661_v26  ;;  %4413 = vmatprep.mubr.msk.bf16.mxu1 %vm5669_vm5, %v5656_v33 }
  0x68   : > { %4621 = vmatprep.mubr.msk.bf16.mxu0 %vm5447_vm3, %v5673_v17  ;;  %4650 = vmatpush3.bf16.msra.mxu0 %v5105_v54  ;;  %v457_v54 = vrot.slane %v5329_v15, 7 }
  0x69   : > { %4651 = vmatprep.subr.bf16.mxu0 %v5107_v22 }
  0x6a   : > { %v458_v15 = vsel %vm444_vm0, %v456_v52, %v457_v54  ;;  %v463_v54 = vrot.slane %v5375_v42, 7 }
  0x6c   : > { %4652 = vmatpush3.bf16.msra.mxu0 %v5107_v22  ;;  %v5740_v22 = vpack.c.bf16 %v458_v15, %v456_v52  ;;  %v5106_v52 = vld [vmem:[%s6421_s3 + $0x98] sm:$0xff]   ;;  %v464_v42 = vsel %vm444_vm0, %v462_v20, %v463_v54  ;;  %v472_v54 = vrot.slane %v5456_v49, 7 }
  0x6d   : > { %4685 = vmatprep.subr.bf16.mxu0 %v5701_v11 }
  0x6e   : > { %4414 = vmatmul.mubr.msk.bf16.vlgmr.msra.gmra.mrb[0].mxu1 %vm5669_vm5, %v5294_v55  ;;  %v592_v55 = vrot.slane %v5629_v23, 1 }
  0x6f   : > { %4622 = vmatmul.mubr.msk.bf16.gmra.mrb[16].mxu0 %vm5447_vm3, %v5703_v13  ;;  %4446 = vmatpush3.bf16.msra.mxu1 %v5498_v18  ;;  %v5738_v18 = vpack.c.bf16 %v583_v61, %v584_v14  ;;  %v5108_v61 = vld [vmem:[%s6421_s3 + $0xa0] sm:$0xff]   ;;  %v5773_v14 = vpack.c.bf16 %v464_v42, %v462_v20  ;;  %v471_v20 = vrot.slane %v5453_v43, 7  ;;  %v478_v42 = vrot.slane %v5509_v37, 7 }
  0x70   : > { %4417 = vmatprep.mubr.msk.bf16.mxu1 %vm5669_vm5, %v5705_v1  ;;  %4625 = vmatprep.mubr.msk.bf16.mxu0 %vm5447_vm3, %v5710_v28  ;;  %v593_v30 = vsel %vm546_vm1, %v591_v29, %v592_v55  ;;  %v5114_v29 = vld [vmem:[%s6421_s3 + $0xb8] sm:$0xff]  }
  0x71   : > { %4447 = vmatprep.subr.bf16.mxu1 %v5102_v31  ;;  %v5775_v15 = vpack.c.bf16 %v592_v55, %v593_v30  ;;  %v5793_v55 = vpack.c.bf16 %v5624_v7, %v5621_v4  ;;  %v474_v4 = vrot.slane %v5466_v57, 7  ;;  %v475_v7 = vrot.slane %v5468_v58, 7  ;;  %v5828_v57 = vld [vmem:[%s6421_s3 + $0xc0] sm:$0xff]  }
  0x72   : > { %v473_v43 = vsel %vm444_vm0, %v471_v20, %v472_v54  ;;  %v480_v30 = vrot.slane %v5525_v51, 7  ;;  %v5113_v51 = vld [vmem:[%s6421_s3 + $0x1d0] sm:$0xff]  }
  0x73   : > { %4448 = vmatpush3.bf16.msra.mxu1 %v5102_v31  ;;  %v5771_v31 = vpack.c.bf16 %v589_v8, %v590_v41  ;;  %v476_v49 = vsel %vm444_vm0, %v474_v4, %v475_v7  ;;  %v5830_v58 = vpack.c.bf16 %v473_v43, %v471_v20  ;;  %v477_v41 = vrot.slane %v5507_v36, 7  ;;  %v5115_v20 = vld [vmem:[%s6421_s3 + $0x1d8] sm:$0xff]  }
  0x74   : > { %4449 = vmatprep.subr.bf16.mxu1 %v5104_v2  ;;  %v490_v7 = vrot.slane %v5629_v23, 7 }
  0x75   : > { %v479_v36 = vsel %vm444_vm0, %v477_v41, %v478_v42 }
  0x76   : > { %4418 = vmatmul.mubr.msk.bf16.gmra.mrb[4].mxu1 %vm5669_vm5, %v5547_v6 }
  0x77   : > { %4626 = vmatmul.mubr.msk.bf16.gmra.mrb[20].mxu0 %vm5447_vm3, %v5738_v18  ;;  %4421 = vmatprep.mubr.msk.bf16.mxu1 %vm5669_vm5, %v5740_v22 }
  0x78   : > { %4629 = vmatprep.mubr.msk.bf16.mxu0 %vm5447_vm3, %v5742_v47  ;;  %4450 = vmatpush3.bf16.msra.mxu1 %v5104_v2  ;;  %v469_v2 = vrot.slane %v5419_v10, 7  ;;  %v5112_v10 = vld [vmem:[%s6421_s3 + $0xb0] sm:$0xff]  }
  0x79   : > { %4451 = vmatprep.subr.bf16.mxu1 %v5106_v52 }
  0x7a   : > { %v470_v34 = vsel %vm444_vm0, %v468_v21, %v469_v2 }
  0x7b   : > { %v5802_v8 = vpack.c.bf16 %v470_v34, %v468_v21  ;;  %v5111_v21 = vld [vmem:[%s6421_s3 + $0x1c8] sm:$0xff]   ;;  %v484_v34 = vrot.slane %v5575_v60, 7 }
  0x7c   : > { %4452 = vmatpush3.bf16.msra.mxu1 %v5106_v52  ;;  %v5832_v52 = vpack.c.bf16 %v476_v49, %v474_v4  ;;  %v489_v4 = vrot.slane %v5627_v16, 7  ;;  %v6457_v16 = vmov 0.0   ;;  %v5121_v49 = vld [vmem:[%s6421_s3 + $0x1f0] sm:$0xff]  }
  0x7d   : > { %4453 = vmatprep.subr.bf16.mxu1 %v5108_v61  ;;  %v547_v43 = vrot.slane %v6457_v16, 1  ;;  %v5142_v16 = vld [vmem:[%s6421_s3 + $0x130] sm:$0xff]  }
  0x7e   : > { %4422 = vmatmul.mubr.msk.bf16.gmra.mrb[8].mxu1 %vm5669_vm5, %v5570_v59  ;;  %v491_v23 = vsel %vm444_vm0, %v489_v4, %v490_v7  ;;  %v5138_v7 = vld [vmem:[%s6421_s3 + $0x110] sm:$0xff]  }
  0x7f   : > { %4630 = vmatmul.mubr.msk.bf16.gmra.mrb[24].mxu0 %vm5447_vm3, %v5771_v31  ;;  %4425 = vmatprep.mubr.msk.bf16.mxu1 %vm5669_vm5, %v5773_v14  ;;  %v5916_v42 = vpack.c.bf16 %v547_v43, %v547_v43 }
  0x80   : > { %4633 = vmatprep.mubr.msk.bf16.mxu0 %vm5447_vm3, %v5775_v15  ;;  %4454 = vmatpush3.bf16.msra.mxu1 %v5108_v61  ;;  %v481_v61 = vrot.slane %v5527_v53, 7  ;;  %v5860_v53 = vpack.c.bf16 %v479_v36, %v477_v41  ;;  %v5914_v41 = vpack.c.bf16 %v491_v23, %v489_v4  ;;  %v5120_v36 = vld [vmem:[%s6421_s3 + $0xd0] sm:$0xff]   ;;  %v5137_v4 = vld [vmem:[%s6421_s3 + $0x108] sm:$0xff]   ;;  %v5140_v23 = vld [vmem:[%s6421_s3 + $0x120] sm:$0xff]  }
  0x81   : > { %4455 = vmatprep.subr.bf16.mxu1 %v5110_v48 }
  0x82   : > { %v482_v37 = vsel %vm444_vm0, %v480_v30, %v481_v61  ;;  %v5125_v61 = vld [vmem:[%s6421_s3 + $0x200] sm:$0xff]  }
  0x83   : > { %v5862_v2 = vpack.c.bf16 %v482_v37, %v480_v30  ;;  %v5123_v30 = vld [vmem:[%s6421_s3 + $0x1f8] sm:$0xff]   ;;  %v5126_v37 = vld [vmem:[%s6421_s3 + $0xe8] sm:$0xff]  }
  0x84   : > { %4456 = vmatpush3.bf16.msra.mxu1 %v5110_v48  ;;  %v483_v48 = vrot.slane %v5561_v50, 7 }
  0x85   : > { %4457 = vmatprep.subr.bf16.mxu1 %v5112_v10 }
  0x86   : > { %4426 = vmatmul.mubr.msk.bf16.gmra.mrb[12].mxu1 %vm5669_vm5, %v5591_v12  ;;  %v485_v50 = vsel %vm444_vm0, %v483_v48, %v484_v34  ;;  %v5127_v34 = vld [vmem:[%s6421_s3 + $0x208] sm:$0xff]  }
  0x87   : > { %4634 = vmatmul.mubr.msk.bf16.gmra.mrb[28].mxu0 %vm5447_vm3, %v5658_v5  ;;  %4429 = vmatprep.mubr.msk.bf16.mxu1 %vm5669_vm5, %v5802_v8 }
  0x88   : > { %4653 = vmatprep.mubr.msk.bf16.mxu0 %vm5669_vm5, %v5705_v1  ;;  %4458 = vmatpush3.bf16.msra.mxu1 %v5112_v10  ;;  %v487_v10 = vrot.slane %v5585_v45, 7  ;;  %v5888_v45 = vpack.c.bf16 %v485_v50, %v483_v48  ;;  %v5130_v48 = vld [vmem:[%s6421_s3 + $0xf8] sm:$0xff]  }
  0x89   : > { %4459 = vmatprep.subr.bf16.mxu1 %v5114_v29  ;;  %v6461_v50 = vld [vmem:[#allocation5_spill] sm:$0xff] }
  0x8c   : > { %4460 = vmatpush3.bf16.msra.mxu1 %v5114_v29  ;;  %v5119_v29 = vld [vmem:[%s6421_s3 + $0x1e8] sm:$0xff]  }
  0x8d   : > { %4493 = vmatprep.subr.bf16.mxu1 %v5828_v57 }
  0x8e   : > { %4430 = vmatmul.mubr.msk.bf16.gmra.mrb[16].mxu1 %vm5669_vm5, %v5830_v58 }
  0x8f   : > { %4654 = vmatmul.mubr.msk.bf16.vlgmr.msra.gmra.mrb[0].mxu0 %vm5669_vm5, %v5547_v6  ;;  %4433 = vmatprep.mubr.msk.bf16.mxu1 %vm5669_vm5, %v5832_v52 }
  0x90   : > { %4686 = vmatpush3.bf16.msra.mxu0 %v5701_v11  ;;  %4657 = vmatprep.mubr.msk.bf16.mxu0 %vm5669_vm5, %v5740_v22  ;;  %v486_v11 = vrot.slane %v5583_v63, 7  ;;  %v5117_v63 = vld [vmem:[%s6421_s3 + $0x1e0] sm:$0xff]  }
  0x91   : > { %4687 = vmatprep.subr.bf16.mxu0 %v5111_v21 }
  0x92   : > { %v488_v60 = vsel %vm444_vm0, %v486_v11, %v487_v10  ;;  %v5135_v10 = vld [vmem:[%s6421_s3 + $0x238] sm:$0xff]  }
  0x93   : > { %v5890_v54 = vpack.c.bf16 %v488_v60, %v486_v11  ;;  %v5136_v11 = vld [vmem:[%s6421_s3 + $0x100] sm:$0xff]  }
  0x94   : > { %4688 = vmatpush3.bf16.msra.mxu0 %v5111_v21  ;;  %v5118_v21 = vld [vmem:[%s6421_s3 + $0xc8] sm:$0xff]   ;;  %v6462_v60 = vld [vmem:[#allocation6_spill] sm:$0xff] }
  0x95   : > { %4689 = vmatprep.subr.bf16.mxu0 %v5113_v51 }
  0x96   : > { %4434 = vmatmul.mubr.msk.bf16.gmra.mrb[20].mxu1 %vm5669_vm5, %v5860_v53 }
  0x97   : > { %4658 = vmatmul.mubr.msk.bf16.gmra.mrb[4].mxu0 %vm5669_vm5, %v5570_v59  ;;  %4437 = vmatprep.mubr.msk.bf16.mxu1 %vm5669_vm5, %v5862_v2 }
  0x98   : > { %4661 = vmatprep.mubr.msk.bf16.mxu0 %vm5669_vm5, %v5773_v14  ;;  %4690 = vmatpush3.bf16.msra.mxu0 %v5113_v51  ;;  %v5128_v51 = vld [vmem:[%s6421_s3 + $0xf0] sm:$0xff]  }
  0x99   : > { %4691 = vmatprep.subr.bf16.mxu0 %v5115_v20 }
  0x9c   : > { %4692 = vmatpush3.bf16.msra.mxu0 %v5115_v20  ;;  %v6460_v20 = vld [vmem:[#allocation2_spill] sm:$0xff] }
  0x9d   : > { %4693 = vmatprep.subr.bf16.mxu0 %v5117_v63 }
  0x9e   : > { %4438 = vmatmul.mubr.msk.bf16.gmra.mrb[24].mxu1 %vm5669_vm5, %v5888_v45 }
  0x9f   : > { %4662 = vmatmul.mubr.msk.bf16.gmra.mrb[8].mxu0 %vm5669_vm5, %v5591_v12  ;;  %4441 = vmatprep.mubr.msk.bf16.mxu1 %vm5669_vm5, %v5890_v54 }
  0xa0   : > { %4665 = vmatprep.mubr.msk.bf16.mxu0 %vm5669_vm5, %v5802_v8  ;;  %4694 = vmatpush3.bf16.msra.mxu0 %v5117_v63  ;;  %v6463_v63 = vld [vmem:[#allocation7_spill] sm:$0xff] }
  0xa1   : > { %4695 = vmatprep.subr.bf16.mxu0 %v5119_v29 }
  0xa4   : > { %4696 = vmatpush3.bf16.msra.mxu0 %v5119_v29  ;;  %v5139_v29 = vld [vmem:[%s6421_s3 + $0x118] sm:$0xff]  }
  0xa5   : > { %4697 = vmatprep.subr.bf16.mxu0 %v5121_v49 }
  0xa6   : > { %4442 = vmatmul.mubr.msk.bf16.gmra.mrb[28].mxu1 %vm5669_vm5, %v5914_v41 }
  0xa7   : > { %4666 = vmatmul.mubr.msk.bf16.gmra.mrb[12].mxu0 %vm5669_vm5, %v5830_v58  ;;  %4461 = vmatprep.mubr.msk.bf16.mxu1 %vm5447_vm3, %v5916_v42 }
  0xa8   : > { %4669 = vmatprep.mubr.msk.bf16.mxu0 %vm5669_vm5, %v5832_v52  ;;  %4698 = vmatpush3.bf16.msra.mxu0 %v5121_v49 }
  0xa9   : > { %4699 = vmatprep.subr.bf16.mxu0 %v5123_v30 }
  0xac   : > { %4700 = vmatpush3.bf16.msra.mxu0 %v5123_v30 }
  0xad   : > { %4733 = vmatprep.subr.bf16.mxu0 %v5125_v61 }
  0xae   : > { %4462 = vmatmul.mubr.msk.bf16.vlgmr.msra.gmra.mrb[0].mxu1 %vm5447_vm3, %v5451_v40  ;;  %v5122_v40 = vld [vmem:[%s6421_s3 + $0xd8] sm:$0xff]  }
  0xaf   : > { %4670 = vmatmul.mubr.msk.bf16.gmra.mrb[16].mxu0 %vm5669_vm5, %v5860_v53  ;;  %4494 = vmatpush3.bf16.msra.mxu1 %v5828_v57  ;;  %v5124_v57 = vld [vmem:[%s6421_s3 + $0xe0] sm:$0xff]  }
  0xb0   : > { %4465 = vmatprep.mubr.msk.bf16.mxu1 %vm5447_vm3, %v5474_v0  ;;  %4673 = vmatprep.mubr.msk.bf16.mxu0 %vm5669_vm5, %v5862_v2 }
  0xb1   : > { %4495 = vmatprep.subr.bf16.mxu1 %v5118_v21 }
  0xb3   : > { %4496 = vmatpush3.bf16.msra.mxu1 %v5118_v21 }
  0xb4   : > { %4497 = vmatprep.subr.bf16.mxu1 %v5120_v36 }
  0xb6   : > { %4466 = vmatmul.mubr.msk.bf16.gmra.mrb[4].mxu1 %vm5447_vm3, %v5502_v25 }
  0xb7   : > { %4674 = vmatmul.mubr.msk.bf16.gmra.mrb[20].mxu0 %vm5669_vm5, %v5888_v45  ;;  %4469 = vmatprep.mubr.msk.bf16.mxu1 %vm5447_vm3, %v5516_v32 }
  0xb8   : > { %4677 = vmatprep.mubr.msk.bf16.mxu0 %vm5669_vm5, %v5890_v54  ;;  %4498 = vmatpush3.bf16.msra.mxu1 %v5120_v36 }
  0xb9   : > { %4499 = vmatprep.subr.bf16.mxu1 %v5122_v40 }
  0xbc   : > { %4500 = vmatpush3.bf16.msra.mxu1 %v5122_v40 }
  0xbd   : > { %4501 = vmatprep.subr.bf16.mxu1 %v5124_v57 }
  0xbe   : > { %4470 = vmatmul.mubr.msk.bf16.gmra.mrb[8].mxu1 %vm5447_vm3, %v5556_v24 }
  0xbf   : > { %4678 = vmatmul.mubr.msk.bf16.gmra.mrb[24].mxu0 %vm5669_vm5, %v5914_v41  ;;  %4473 = vmatprep.mubr.msk.bf16.mxu1 %vm5447_vm3, %v5594_v19 }
  0xc0   : > { %4681 = vmatprep.mubr.msk.bf16.mxu0 %vm5669_vm5, %v5684_v46  ;;  %4502 = vmatpush3.bf16.msra.mxu1 %v5124_v57 }
  0xc1   : > { %4503 = vmatprep.subr.bf16.mxu1 %v5126_v37 }
  0xc4   : > { %4504 = vmatpush3.bf16.msra.mxu1 %v5126_v37 }
  0xc5   : > { %4505 = vmatprep.subr.bf16.mxu1 %v5128_v51 }
  0xc6   : > { %4474 = vmatmul.mubr.msk.bf16.gmra.mrb[12].mxu1 %vm5447_vm3, %v5618_v38 }
  0xc7   : > { %4682 = vmatmul.mubr.msk.bf16.gmra.mrb[28].mxu0 %vm5669_vm5, %v5656_v33  ;;  %4477 = vmatprep.mubr.msk.bf16.mxu1 %vm5447_vm3, %v5661_v26  ;;  %v5131_v33 = vld [vmem:[%s6421_s3 + $0x218] sm:$0xff]  }
  0xc8   : > { %4701 = vmatprep.mubr.bf16.mxu0 %v5313_v3  ;;  %4506 = vmatpush3.bf16.msra.mxu1 %v5128_v51  ;;  %v5129_v3 = vld [vmem:[%s6421_s3 + $0x210] sm:$0xff]  }
  0xc9   : > { %4507 = vmatprep.subr.bf16.mxu1 %v5130_v48 }
  0xcc   : > { %4508 = vmatpush3.bf16.msra.mxu1 %v5130_v48 }
  0xcd   : > { %4781 = vmatprep.subr.bf16.mxu1 %v5136_v11 }
  0xce   : > { %4478 = vmatmul.mubr.msk.bf16.gmra.mrb[16].mxu1 %vm5447_vm3, %v5673_v17 }
  0xcf   : > { %4702 = vmatmul.mubr.bf16.vlgmr.msra.gmra.mrb[0].mxu0 %v5322_v9  ;;  %4481 = vmatprep.mubr.msk.bf16.mxu1 %vm5447_vm3, %v5703_v13  ;;  %v5132_v9 = vld [vmem:[%s6421_s3 + $0x220] sm:$0xff]  }
  0xd0   : > { %4734 = vmatpush3.bf16.msra.mxu0 %v5125_v61  ;;  %4705 = vmatprep.mubr.bf16.mxu0 %v5352_v27  ;;  %v5133_v27 = vld [vmem:[%s6421_s3 + $0x228] sm:$0xff]  }
  0xd1   : > { %4735 = vmatprep.subr.bf16.mxu0 %v5127_v34 }
  0xd4   : > { %4736 = vmatpush3.bf16.msra.mxu0 %v5127_v34 }
  0xd5   : > { %4737 = vmatprep.subr.bf16.mxu0 %v5129_v3 }
  0xd6   : > { %4482 = vmatmul.mubr.msk.bf16.gmra.mrb[20].mxu1 %vm5447_vm3, %v5710_v28 }
  0xd7   : > { %4706 = vmatmul.mubr.bf16.gmra.mrb[4].mxu0 %v5361_v35  ;;  %4485 = vmatprep.mubr.msk.bf16.mxu1 %vm5447_vm3, %v5738_v18  ;;  %v6458_v35 = vld [vmem:[#allocation3_spill] sm:$0xff] }
  0xd8   : > { %4709 = vmatprep.mubr.bf16.mxu0 %v5392_v56  ;;  %4738 = vmatpush3.bf16.msra.mxu0 %v5129_v3  ;;  %v5134_v56 = vld [vmem:[%s6421_s3 + $0x230] sm:$0xff]  }
  0xd9   : > { %4739 = vmatprep.subr.bf16.mxu0 %v5131_v33 }
  0xdc   : > { %4740 = vmatpush3.bf16.msra.mxu0 %v5131_v33 }
  0xdd   : > { %4741 = vmatprep.subr.bf16.mxu0 %v5132_v9 }
  0xde   : > { %4486 = vmatmul.mubr.msk.bf16.gmra.mrb[24].mxu1 %vm5447_vm3, %v5742_v47 }
  0xdf   : > { %4710 = vmatmul.mubr.bf16.gmra.mrb[8].mxu0 %v5399_v62  ;;  %4489 = vmatprep.mubr.msk.bf16.mxu1 %vm5447_vm3, %v5771_v31  ;;  %v6459_v62 = vld [vmem:[#allocation4_spill] sm:$0xff] }
  0xe0   : > { %4713 = vmatprep.mubr.bf16.mxu0 %v6458_v35  ;;  %4742 = vmatpush3.bf16.msra.mxu0 %v5132_v9 }
  0xe1   : > { %4743 = vmatprep.subr.bf16.mxu0 %v5133_v27 }
  0xe4   : > { %4744 = vmatpush3.bf16.msra.mxu0 %v5133_v27 }
  0xe5   : > { %4745 = vmatprep.subr.bf16.mxu0 %v5134_v56 }
  0xe6   : > { %4490 = vmatmul.mubr.msk.bf16.gmra.mrb[28].mxu1 %vm5447_vm3, %v5775_v15 }
  0xe7   : > { %4714 = vmatmul.mubr.bf16.gmra.mrb[12].mxu0 %v6459_v62  ;;  %4509 = vmatprep.mubr.msk.bf16.mxu1 %vm5669_vm5, %v6460_v20 }
  0xe8   : > { %4717 = vmatprep.mubr.bf16.mxu0 %v6461_v50  ;;  %4746 = vmatpush3.bf16.msra.mxu0 %v5134_v56 }
  0xe9   : > { %4747 = vmatprep.subr.bf16.mxu0 %v5135_v10 }
  0xec   : > { %4748 = vmatpush3.bf16.msra.mxu0 %v5135_v10 }
  0xee   : > { %4510 = vmatmul.mubr.msk.bf16.vlgmr.msra.gmra.mrb[0].mxu1 %vm5669_vm5, %v5705_v1  ;;  %v6464_v1 = vld [vmem:[#allocation8_spill] sm:$0xff] }
  0xef   : > { %4718 = vmatmul.mubr.bf16.gmra.mrb[16].mxu0 %v6462_v60  ;;  %4789 = vmatpush3.bf16.msra.mxu1 %v5136_v11 }
  0xf0   : > { %4513 = vmatprep.mubr.msk.bf16.mxu1 %vm5669_vm5, %v5547_v6  ;;  %4721 = vmatprep.mubr.bf16.mxu0 %v6463_v63  ;;  %v6465_v6 = vld [vmem:[#allocation9_spill] sm:$0xff] }
  0xf1   : > { %4782 = vmatprep.subr.bf16.mxu1 %v5137_v4 }
  0xf3   : > { %4790 = vmatpush3.bf16.msra.mxu1 %v5137_v4 }
  0xf4   : > { %4783 = vmatprep.subr.bf16.mxu1 %v5138_v7 }
  0xf6   : > { %4514 = vmatmul.mubr.msk.bf16.gmra.mrb[4].mxu1 %vm5669_vm5, %v5740_v22  ;;  %v6466_v22 = vld [vmem:[#allocation10_spill] sm:$0xff] }
  0xf7   : > { %4722 = vmatmul.mubr.bf16.gmra.mrb[20].mxu0 %v6464_v1  ;;  %4517 = vmatprep.mubr.msk.bf16.mxu1 %vm5669_vm5, %v5570_v59  ;;  %v5141_v59 = vld [vmem:[%s6421_s3 + $0x128] sm:$0xff]  }
  0xf8   : > { %4725 = vmatprep.mubr.bf16.mxu0 %v6465_v6  ;;  %4791 = vmatpush3.bf16.msra.mxu1 %v5138_v7 }
  0xf9   : > { %4784 = vmatprep.subr.bf16.mxu1 %v5139_v29 }
  0xfc   : > { %4792 = vmatpush3.bf16.msra.mxu1 %v5139_v29 }
  0xfd   : > { %4785 = vmatprep.subr.bf16.mxu1 %v5140_v23 }
  0xfe   : > { %4518 = vmatmul.mubr.msk.bf16.gmra.mrb[8].mxu1 %vm5669_vm5, %v5773_v14  ;;  %v6467_v14 = vmov 0.0|0.0  }
  0xff   : > { %4726 = vmatmul.mubr.bf16.gmra.mrb[24].mxu0 %v6466_v22  ;;  %4521 = vmatprep.mubr.msk.bf16.mxu1 %vm5669_vm5, %v5591_v12  ;;  %v5143_v12 = vld [vmem:[%s6421_s3 + $0x138] sm:$0xff]  }
 0x100   : > { %4729 = vmatprep.mubr.bf16.mxu0 %v5793_v55  ;;  %4793 = vmatpush3.bf16.msra.mxu1 %v5140_v23 }
 0x101   : > { %4786 = vmatprep.subr.bf16.mxu1 %v5141_v59 }
 0x104   : > { %4794 = vmatpush3.bf16.msra.mxu1 %v5141_v59 }
 0x105   : > { %4787 = vmatprep.subr.bf16.mxu1 %v5142_v16 }
 0x106   : > { %4522 = vmatmul.mubr.msk.bf16.gmra.mrb[12].mxu1 %vm5669_vm5, %v5802_v8 }
 0x107   : > { %4730 = vmatmul.mubr.bf16.gmra.mrb[28].mxu0 %v6467_v14  ;;  %4525 = vmatprep.mubr.msk.bf16.mxu1 %vm5669_vm5, %v5830_v58 }
 0x108   : > { %4749 = vmatprep.mubr.msk.bf16.mxu0 %vm5447_vm3, %v5474_v0  ;;  %4795 = vmatpush3.bf16.msra.mxu1 %v5142_v16 }
 0x109   : > { %4788 = vmatprep.subr.bf16.mxu1 %v5143_v12 }
 0x10c   : > { %4796 = vmatpush3.bf16.msra.mxu1 %v5143_v12 }
 0x10e   : > { %4526 = vmatmul.mubr.msk.bf16.gmra.mrb[16].mxu1 %vm5669_vm5, %v5832_v52 }
 0x10f   : > { %4750 = vmatmul.mubr.msk.bf16.vlgmr.msra.gmra.mrb[0].mxu0 %vm5447_vm3, %v5502_v25  ;;  %4529 = vmatprep.mubr.msk.bf16.mxu1 %vm5669_vm5, %v5860_v53 }
 0x110   : > { %4753 = vmatprep.mubr.msk.bf16.mxu0 %vm5447_vm3, %v5516_v32 }
 0x116   : > { %4530 = vmatmul.mubr.msk.bf16.gmra.mrb[20].mxu1 %vm5669_vm5, %v5862_v2 }
 0x117   : > { %4754 = vmatmul.mubr.msk.bf16.gmra.mrb[4].mxu0 %vm5447_vm3, %v5556_v24  ;;  %4533 = vmatprep.mubr.msk.bf16.mxu1 %vm5669_vm5, %v5888_v45 }
 0x118   : > { %4757 = vmatprep.mubr.msk.bf16.mxu0 %vm5447_vm3, %v5594_v19 }
 0x11e   : > { %4534 = vmatmul.mubr.msk.bf16.gmra.mrb[24].mxu1 %vm5669_vm5, %v5890_v54 }
 0x11f   : > { %4758 = vmatmul.mubr.msk.bf16.gmra.mrb[8].mxu0 %vm5447_vm3, %v5618_v38  ;;  %4537 = vmatprep.mubr.msk.bf16.mxu1 %vm5669_vm5, %v5914_v41 }
 0x120   : > { %4761 = vmatprep.mubr.msk.bf16.mxu0 %vm5447_vm3, %v5661_v26 }
 0x126   : > { %4538 = vmatmul.mubr.msk.bf16.gmra.mrb[28].mxu1 %vm5669_vm5, %v5684_v46 }
 0x127   : > { %4762 = vmatmul.mubr.msk.bf16.gmra.mrb[12].mxu0 %vm5447_vm3, %v5673_v17  ;;  %4573 = vmatprep.mubr.bf16.mxu1 %v6459_v62 }
 0x128   : > { %4765 = vmatprep.mubr.msk.bf16.mxu0 %vm5447_vm3, %v5703_v13 }
 0x12e   : > { %4574 = vmatmul.mubr.bf16.vlgmr.msra.gmra.mrb[16].mxu1 %v6461_v50 }
 0x12f   : > { %4766 = vmatmul.mubr.msk.bf16.gmra.mrb[16].mxu0 %vm5447_vm3, %v5710_v28  ;;  %4577 = vmatprep.mubr.bf16.mxu1 %v6462_v60 }
 0x130   : > { %4769 = vmatprep.mubr.msk.bf16.mxu0 %vm5447_vm3, %v5738_v18 }
 0x136   : > { %4578 = vmatmul.mubr.bf16.gmra.mrb[20].mxu1 %v6463_v63 }
 0x137   : > { %4770 = vmatmul.mubr.msk.bf16.gmra.mrb[20].mxu0 %vm5447_vm3, %v5742_v47  ;;  %4581 = vmatprep.mubr.bf16.mxu1 %v6464_v1 }
 0x138   : > { %4773 = vmatprep.mubr.msk.bf16.mxu0 %vm5447_vm3, %v5771_v31 }
 0x13e   : > { %4582 = vmatmul.mubr.bf16.gmra.mrb[24].mxu1 %v6465_v6 }
 0x13f   : > { %4774 = vmatmul.mubr.msk.bf16.gmra.mrb[24].mxu0 %vm5447_vm3, %v5775_v15  ;;  %4585 = vmatprep.mubr.bf16.mxu1 %v6466_v22 }
 0x140   : > { %4777 = vmatprep.mubr.msk.bf16.mxu0 %vm5447_vm3, %v5658_v5 }
 0x146   : > { %4586 = vmatmul.mubr.bf16.gmra.mrb[28].mxu1 %v5793_v55 }
 0x147   : > { %4778 = vmatmul.mubr.msk.bf16.gmra.mrb[28].mxu0 %vm5447_vm3, %v5916_v42 }
 0x1c1   : > { %v4511_v0 = vpop.f32.mrb[0].mxu1 }
 0x1c2   : > { %v1505_v25 = vpop.f32.mrb[1].mxu1 }
 0x1c3   : > { %v4512_v32 = vpop.f32.mrb[2].mxu1 }
 0x1c4   : > { %v1508_v24 = vpop.f32.mrb[3].mxu1 }
 0x1c9   : > { %v4515_v19 = vpop.f32.mrb[4].mxu1 }
 0x1ca   : > { %v1521_v38 = vpop.f32.mrb[5].mxu1 }
 0x1cb   : > { %v4516_v26 = vpop.f32.mrb[6].mxu1 }
 0x1cc   : > { %v1524_v44 = vpop.f32.mrb[7].mxu1 }
 0x1d1   : > { %v4519_v17 = vpop.f32.mrb[8].mxu1 }
 0x1d2   : > { %v1537_v46 = vpop.f32.mrb[9].mxu1 }
 0x1d3   : > { %v4520_v13 = vpop.f32.mrb[10].mxu1 }
 0x1d4   : > { %v1540_v28 = vpop.f32.mrb[11].mxu1 }
 0x1d9   : > { %v4523_v5 = vpop.f32.mrb[12].mxu1 }
 0x1da   : > { %v1553_v18 = vpop.f32.mrb[13].mxu1 }
 0x1db   : > { %v4524_v47 = vpop.f32.mrb[14].mxu1 }
 0x1dc   : > { %v1556_v31 = vpop.f32.mrb[15].mxu1 }
 0x1e2   : > { %v4751_v15 = vpop.f32.mrb[0].mxu0 }
 0x1e3   : > { %v6189_v39 = vadd.f32 %v4751_v15, %v4511_v0  ;;  %v2797_v55 = vpop.f32.mrb[1].mxu0 }
 0x1e4   : > { %v6191_v8 = vadd.f32 %v2797_v55, %v1505_v25  ;;  %v4752_v58 = vpop.f32.mrb[2].mxu0 }
 0x1e5   : > { %v6193_v52 = vadd.f32 %v4752_v58, %v4512_v32  ;;  %v2800_v53 = vpop.f32.mrb[3].mxu0 }
 0x1e6   : > { %v6202_v2 = vadd.f32 %v2800_v53, %v1508_v24 }
 0x1e7   : > { %v4031_v45 = vpack.c.bf16 %v6193_v52, %v6189_v39 }
 0x1e8   : > { %v2956_v54 = vadd.f32 %v6202_v2, %v6191_v8  ;;  %v4026_v43 = vpack.c.bf16 %v6202_v2, %v6191_v8 }
 0x1e9   : > { %4118 = vst [vmem:[%s6200_s20 + $0x8] sm:$0xff] %v4031_v45  }
 0x1ea   : > { %v2957_v49 = vadd.f32 %v6189_v39, %v2956_v54  ;;  %4027 = vst [vmem:[%s6200_s20] sm:$0xff] %v4026_v43   ;;  %v4755_v41 = vpop.f32.mrb[4].mxu0 }
 0x1eb   : > { %v6213_v42 = vadd.f32 %v4755_v41, %v4515_v19  ;;  %v2813_v30 = vpop.f32.mrb[5].mxu0 }
 0x1ec   : > { %v6215_v61 = vadd.f32 %v2813_v30, %v1521_v38  ;;  %v2958_v21 = vadd.f32 %v6193_v52, %v2957_v49  ;;  %v4756_v36 = vpop.f32.mrb[6].mxu0 }
 0x1ed   : > { %v6218_v40 = vadd.f32 %v4756_v36, %v4516_v26  ;;  %v2816_v57 = vpop.f32.mrb[7].mxu0 }
 0x1ee   : > { %v2959_v37 = vadd.f32 %v6215_v61, %v2958_v21  ;;  %v6221_v51 = vadd.f32 %v2816_v57, %v1524_v44 }
 0x1ef   : > { %v4041_v48 = vpack.c.bf16 %v6218_v40, %v6213_v42 }
 0x1f0   : > { %v2960_v34 = vadd.f32 %v6221_v51, %v2959_v37  ;;  %v4036_v11 = vpack.c.bf16 %v6221_v51, %v6215_v61 }
 0x1f1   : > { %4120 = vst [vmem:[%s6200_s20 + $0x18] sm:$0xff] %v4041_v48  }
 0x1f2   : > { %v2961_v3 = vadd.f32 %v6213_v42, %v2960_v34  ;;  %4119 = vst [vmem:[%s6200_s20 + $0x10] sm:$0xff] %v4036_v11   ;;  %v4759_v33 = vpop.f32.mrb[8].mxu0 }
 0x1f3   : > { %v6231_v9 = vadd.f32 %v4759_v33, %v4519_v17  ;;  %v2829_v27 = vpop.f32.mrb[9].mxu0 }
 0x1f4   : > { %v6233_v35 = vadd.f32 %v2829_v27, %v1537_v46  ;;  %v2962_v56 = vadd.f32 %v6218_v40, %v2961_v3  ;;  %v4760_v10 = vpop.f32.mrb[10].mxu0 }
 0x1f5   : > { %v6236_v62 = vadd.f32 %v4760_v10, %v4520_v13  ;;  %v2832_v20 = vpop.f32.mrb[11].mxu0 }
 0x1f6   : > { %v2963_v50 = vadd.f32 %v6233_v35, %v2962_v56  ;;  %v6239_v60 = vadd.f32 %v2832_v20, %v1540_v28 }
 0x1f7   : > { %v4051_v63 = vpack.c.bf16 %v6236_v62, %v6231_v9 }
 0x1f8   : > { %v2964_v4 = vadd.f32 %v6239_v60, %v2963_v50  ;;  %v4046_v7 = vpack.c.bf16 %v6239_v60, %v6233_v35 }
 0x1f9   : > { %4122 = vst [vmem:[%s6200_s20 + $0x28] sm:$0xff] %v4051_v63  }
 0x1fa   : > { %v2965_v1 = vadd.f32 %v6231_v9, %v2964_v4  ;;  %4121 = vst [vmem:[%s6200_s20 + $0x20] sm:$0xff] %v4046_v7   ;;  %v4763_v6 = vpop.f32.mrb[12].mxu0 }
 0x1fb   : > { %v6249_v29 = vadd.f32 %v4763_v6, %v4523_v5  ;;  %v2845_v23 = vpop.f32.mrb[13].mxu0 }
 0x1fc   : > { %v6251_v22 = vadd.f32 %v2845_v23, %v1553_v18  ;;  %v2966_v59 = vadd.f32 %v6236_v62, %v2965_v1  ;;  %v4764_v16 = vpop.f32.mrb[14].mxu0 }
 0x1fd   : > { %v6254_v14 = vadd.f32 %v4764_v16, %v4524_v47  ;;  %v2848_v12 = vpop.f32.mrb[15].mxu0 }
 0x1fe   : > { %v2967_v0 = vadd.f32 %v6251_v22, %v2966_v59  ;;  %v6257_v25 = vadd.f32 %v2848_v12, %v1556_v31 }
 0x1ff   : > { %v4061_v32 = vpack.c.bf16 %v6254_v14, %v6249_v29 }
 0x200   : > { %v2968_v24 = vadd.f32 %v6257_v25, %v2967_v0  ;;  %v4056_v19 = vpack.c.bf16 %v6257_v25, %v6251_v22 }
 0x201   : > { %4124 = vst [vmem:[%s6200_s20 + $0x38] sm:$0xff] %v4061_v32   ;;  %v4575_v38 = vpop.f32.mrb[16].mxu1 }
 0x202   : > { %v2969_v26 = vadd.f32 %v6249_v29, %v2968_v24  ;;  %4123 = vst [vmem:[%s6200_s20 + $0x30] sm:$0xff] %v4056_v19   ;;  %v4767_v44 = vpop.f32.mrb[16].mxu0  ;;  %v1828_v17 = vpop.f32.mrb[17].mxu1 }
 0x203   : > { %v6267_v46 = vadd.f32 %v4767_v44, %v4575_v38  ;;  %v2861_v13 = vpop.f32.mrb[17].mxu0  ;;  %v4576_v28 = vpop.f32.mrb[18].mxu1 }
 0x204   : > { %v6269_v5 = vadd.f32 %v2861_v13, %v1828_v17  ;;  %v2970_v18 = vadd.f32 %v6254_v14, %v2969_v26  ;;  %v4768_v47 = vpop.f32.mrb[18].mxu0  ;;  %v1831_v31 = vpop.f32.mrb[19].mxu1 }
 0x205   : > { %v6272_v15 = vadd.f32 %v4768_v47, %v4576_v28  ;;  %v2864_v55 = vpop.f32.mrb[19].mxu0 }
 0x206   : > { %v2971_v58 = vadd.f32 %v6269_v5, %v2970_v18  ;;  %v6275_v53 = vadd.f32 %v2864_v55, %v1831_v31 }
 0x207   : > { %v4071_v45 = vpack.c.bf16 %v6272_v15, %v6267_v46 }
 0x208   : > { %v2972_v54 = vadd.f32 %v6275_v53, %v2971_v58  ;;  %v4066_v43 = vpack.c.bf16 %v6275_v53, %v6269_v5 }
 0x209   : > { %4126 = vst [vmem:[%s6200_s20 + $0x48] sm:$0xff] %v4071_v45   ;;  %v4579_v49 = vpop.f32.mrb[20].mxu1 }
 0x20a   : > { %v2973_v41 = vadd.f32 %v6267_v46, %v2972_v54  ;;  %4125 = vst [vmem:[%s6200_s20 + $0x40] sm:$0xff] %v4066_v43   ;;  %v4771_v30 = vpop.f32.mrb[20].mxu0  ;;  %v1844_v21 = vpop.f32.mrb[21].mxu1 }
 0x20b   : > { %v6285_v36 = vadd.f32 %v4771_v30, %v4579_v49  ;;  %v2877_v57 = vpop.f32.mrb[21].mxu0  ;;  %v4580_v37 = vpop.f32.mrb[22].mxu1 }
 0x20c   : > { %v6287_v48 = vadd.f32 %v2877_v57, %v1844_v21  ;;  %v2974_v34 = vadd.f32 %v6272_v15, %v2973_v41  ;;  %v4772_v11 = vpop.f32.mrb[22].mxu0  ;;  %v1847_v3 = vpop.f32.mrb[23].mxu1 }
 0x20d   : > { %v6290_v33 = vadd.f32 %v4772_v11, %v4580_v37  ;;  %v2880_v27 = vpop.f32.mrb[23].mxu0 }
 0x20e   : > { %v2975_v56 = vadd.f32 %v6287_v48, %v2974_v34  ;;  %v6293_v10 = vadd.f32 %v2880_v27, %v1847_v3 }
 0x20f   : > { %v4081_v20 = vpack.c.bf16 %v6290_v33, %v6285_v36 }
 0x210   : > { %v2976_v50 = vadd.f32 %v6293_v10, %v2975_v56  ;;  %v4076_v63 = vpack.c.bf16 %v6293_v10, %v6287_v48 }
 0x211   : > { %4128 = vst [vmem:[%s6200_s20 + $0x58] sm:$0xff] %v4081_v20   ;;  %v4583_v4 = vpop.f32.mrb[24].mxu1 }
 0x212   : > { %v2977_v7 = vadd.f32 %v6285_v36, %v2976_v50  ;;  %4127 = vst [vmem:[%s6200_s20 + $0x50] sm:$0xff] %v4076_v63   ;;  %v4775_v1 = vpop.f32.mrb[24].mxu0  ;;  %v1860_v6 = vpop.f32.mrb[25].mxu1 }
 0x213   : > { %v6303_v23 = vadd.f32 %v4775_v1, %v4583_v4  ;;  %v2893_v59 = vpop.f32.mrb[25].mxu0  ;;  %v4584_v16 = vpop.f32.mrb[26].mxu1 }
 0x214   : > { %v6305_v12 = vadd.f32 %v2893_v59, %v1860_v6  ;;  %v2978_v0 = vadd.f32 %v6290_v33, %v2977_v7  ;;  %v4776_v32 = vpop.f32.mrb[26].mxu0  ;;  %v1863_v24 = vpop.f32.mrb[27].mxu1 }
 0x215   : > { %v6308_v19 = vadd.f32 %v4776_v32, %v4584_v16  ;;  %v2896_v38 = vpop.f32.mrb[27].mxu0 }
 0x216   : > { %v2979_v26 = vadd.f32 %v6305_v12, %v2978_v0  ;;  %v6311_v44 = vadd.f32 %v2896_v38, %v1863_v24 }
 0x217   : > { %v4091_v17 = vpack.c.bf16 %v6308_v19, %v6303_v23 }
 0x218   : > { %v2980_v13 = vadd.f32 %v6311_v44, %v2979_v26  ;;  %v4086_v28 = vpack.c.bf16 %v6311_v44, %v6305_v12 }
 0x219   : > { %4130 = vst [vmem:[%s6200_s20 + $0x68] sm:$0xff] %v4091_v17   ;;  %v4587_v18 = vpop.f32.mrb[28].mxu1 }
 0x21a   : > { %v2981_v47 = vadd.f32 %v6303_v23, %v2980_v13  ;;  %4129 = vst [vmem:[%s6200_s20 + $0x60] sm:$0xff] %v4086_v28   ;;  %v4779_v31 = vpop.f32.mrb[28].mxu0  ;;  %v1876_v55 = vpop.f32.mrb[29].mxu1 }
 0x21b   : > { %v6321_v58 = vadd.f32 %v4779_v31, %v4587_v18  ;;  %v2909_v45 = vpop.f32.mrb[29].mxu0  ;;  %v4588_v54 = vpop.f32.mrb[30].mxu1 }
 0x21c   : > { %v6323_v43 = vadd.f32 %v2909_v45, %v1876_v55  ;;  %v2982_v49 = vadd.f32 %v6308_v19, %v2981_v47  ;;  %v4780_v41 = vpop.f32.mrb[30].mxu0  ;;  %v1879_v30 = vpop.f32.mrb[31].mxu1 }
 0x21d   : > { %v6326_v21 = vadd.f32 %v4780_v41, %v4588_v54  ;;  %v2912_v57 = vpop.f32.mrb[31].mxu0 }
 0x21e   : > { %v2983_v37 = vadd.f32 %v6323_v43, %v2982_v49  ;;  %v6329_v34 = vadd.f32 %v2912_v57, %v1879_v30 }
 0x21f   : > { %v4101_v11 = vpack.c.bf16 %v6326_v21, %v6321_v58 }
 0x220   : > { %v2984_v3 = vadd.f32 %v6329_v34, %v2983_v37  ;;  %v4096_v27 = vpack.c.bf16 %v6329_v34, %v6323_v43 }
 0x221   : > { %4132 = vst [vmem:[%s6200_s20 + $0x78] sm:$0xff] %v4101_v11  }
 0x222   : > { %v2985_v56 = vadd.f32 %v6321_v58, %v2984_v3  ;;  %4131 = vst [vmem:[%s6200_s20 + $0x70] sm:$0xff] %v4096_v27  }
 0x224   : > { %v2986_v20 = vadd.f32 %v6326_v21, %v2985_v56 }
 0x226   : > { %v2987_v50 = vrot.slane %v2986_v20, 4 }
 0x228   : > { %v2988_v63 = vadd.f32 %v2987_v50, %v2986_v20 }
 0x22a   : > { %v2989_v4 = vrot.slane %v2988_v63, 2 }
 0x22c   : > { %v2990_v7 = vadd.f32 %v2989_v4, %v2988_v63 }
 0x22e   : > { %v2991_v1 = vrot.slane %v2990_v7, 1 }
 0x230   : > { %v6340_v6 = vadd.f32 %v2991_v1, %v2990_v7 }
 0x232   : > { %v6343_v59 = vmul.f32 0.00390625, %v6340_v6 }
 0x234   : > { %v2994_v16 = vsub.f32 %v6191_v8, %v6343_v59  ;;  %v2995_v0 = vsub.f32 %v6202_v2, %v6343_v59  ;;  %v2996_v32 = vsub.f32 %v6189_v39, %v6343_v59  ;;  %v2997_v26 = vsub.f32 %v6193_v52, %v6343_v59 }
 0x235   : > { %v2998_v17 = vsub.f32 %v6215_v61, %v6343_v59  ;;  %v2999_v18 = vsub.f32 %v6221_v51, %v6343_v59  ;;  %v3000_v2 = vsub.f32 %v6213_v42, %v6343_v59  ;;  %v3001_v55 = vsub.f32 %v6218_v40, %v6343_v59 }
 0x236   : > { %v3026_v24 = vmul.f32 %v2994_v16, %v2994_v16  ;;  %v3027_v38 = vmul.f32 %v2995_v0, %v2995_v0  ;;  %v3028_v13 = vmul.f32 %v2996_v32, %v2996_v32  ;;  %v3029_v8 = vmul.f32 %v2997_v26, %v2997_v26 }
 0x237   : > { %v3030_v31 = vmul.f32 %v2998_v17, %v2998_v17  ;;  %v3031_v45 = vmul.f32 %v2999_v18, %v2999_v18  ;;  %v3002_v61 = vsub.f32 %v6233_v35, %v6343_v59  ;;  %v3032_v54 = vmul.f32 %v3000_v2, %v3000_v2 }
 0x238   : > { %v3058_v28 = vadd.f32 %v3027_v38, %v3026_v24  ;;  %v3003_v51 = vsub.f32 %v6239_v60, %v6343_v59  ;;  %v3033_v41 = vmul.f32 %v3001_v55, %v3001_v55  ;;  %v3004_v42 = vsub.f32 %v6231_v9, %v6343_v59 }
 0x239   : > { %v3034_v57 = vmul.f32 %v3002_v61, %v3002_v61  ;;  %v3005_v40 = vsub.f32 %v6236_v62, %v6343_v59  ;;  %v3006_v35 = vsub.f32 %v6251_v22, %v6343_v59  ;;  %v3007_v60 = vsub.f32 %v6257_v25, %v6343_v59 }
 0x23a   : > { %v3059_v47 = vadd.f32 %v3058_v28, %v3028_v13  ;;  %v3035_v11 = vmul.f32 %v3003_v51, %v3003_v51  ;;  %v3036_v27 = vmul.f32 %v3004_v42, %v3004_v42  ;;  %v3008_v9 = vsub.f32 %v6249_v29, %v6343_v59 }
 0x23b   : > { %v3037_v20 = vmul.f32 %v3005_v40, %v3005_v40  ;;  %v3038_v63 = vmul.f32 %v3006_v35, %v3006_v35  ;;  %v3009_v62 = vsub.f32 %v6254_v14, %v6343_v59  ;;  %v3039_v7 = vmul.f32 %v3007_v60, %v3007_v60 }
 0x23c   : > { %v3060_v39 = vadd.f32 %v3059_v47, %v3029_v8  ;;  %v3010_v22 = vsub.f32 %v6269_v5, %v6343_v59  ;;  %v3040_v16 = vmul.f32 %v3008_v9, %v3008_v9  ;;  %v3011_v25 = vsub.f32 %v6275_v53, %v6343_v59 }
 0x23d   : > { %v3041_v32 = vmul.f32 %v3009_v62, %v3009_v62  ;;  %v3012_v29 = vsub.f32 %v6267_v46, %v6343_v59  ;;  %v3013_v14 = vsub.f32 %v6272_v15, %v6343_v59  ;;  %v3014_v5 = vsub.f32 %v6287_v48, %v6343_v59 }
 0x23e   : > { %v3061_v52 = vadd.f32 %v3060_v39, %v3030_v31  ;;  %v3042_v38 = vmul.f32 %v3010_v22, %v3010_v22  ;;  %v3043_v17 = vmul.f32 %v3011_v25, %v3011_v25  ;;  %v3015_v53 = vsub.f32 %v6293_v10, %v6343_v59 }
 0x23f   : > { %v3044_v28 = vmul.f32 %v3012_v29, %v3012_v29  ;;  %v3045_v8 = vmul.f32 %v3013_v14, %v3013_v14  ;;  %v3016_v46 = vsub.f32 %v6285_v36, %v6343_v59  ;;  %v3046_v2 = vmul.f32 %v3014_v5, %v3014_v5 }
 0x240   : > { %v3062_v49 = vadd.f32 %v3061_v52, %v3031_v45  ;;  %v3017_v15 = vsub.f32 %v6290_v33, %v6343_v59  ;;  %v3047_v39 = vmul.f32 %v3015_v53, %v3015_v53  ;;  %v3018_v48 = vsub.f32 %v6305_v12, %v6343_v59 }
 0x241   : > { %v3048_v45 = vmul.f32 %v3016_v46, %v3016_v46  ;;  %v3019_v10 = vsub.f32 %v6311_v44, %v6343_v59  ;;  %v3020_v36 = vsub.f32 %v6303_v23, %v6343_v59  ;;  %v3021_v33 = vsub.f32 %v6308_v19, %v6343_v59 }
 0x242   : > { %v3063_v30 = vadd.f32 %v3062_v49, %v3032_v54  ;;  %v3049_v61 = vmul.f32 %v3017_v15, %v3017_v15  ;;  %v3050_v49 = vmul.f32 %v3018_v48, %v3018_v48  ;;  %v3022_v12 = vsub.f32 %v6323_v43, %v6343_v59 }
 0x243   : > { %v3052_v42 = vmul.f32 %v3020_v36, %v3020_v36  ;;  %v3023_v44 = vsub.f32 %v6329_v34, %v6343_v59  ;;  %v3024_v23 = vsub.f32 %v6321_v58, %v6343_v59  ;;  %v3025_v19 = vsub.f32 %v6326_v21, %v6343_v59 }
 0x244   : > { %v3064_v37 = vadd.f32 %v3063_v30, %v3033_v41  ;;  %v3051_v41 = vmul.f32 %v3019_v10, %v3019_v10 }
 0x245   : > { %v3055_v35 = vmul.f32 %v3023_v44, %v3023_v44  ;;  %v3057_v60 = vmul.f32 %v3025_v19, %v3025_v19 }
 0x246   : > { %v3065_v3 = vadd.f32 %v3064_v37, %v3034_v57  ;;  %v3053_v37 = vmul.f32 %v3021_v33, %v3021_v33 }
 0x248   : > { %v3066_v56 = vadd.f32 %v3065_v3, %v3035_v11  ;;  %v3054_v11 = vmul.f32 %v3022_v12, %v3022_v12 }
 0x24a   : > { %v3067_v50 = vadd.f32 %v3066_v56, %v3036_v27  ;;  %v3056_v56 = vmul.f32 %v3024_v23, %v3024_v23 }
 0x24c   : > { %v3068_v4 = vadd.f32 %v3067_v50, %v3037_v20 }
 0x24e   : > { %v3069_v1 = vadd.f32 %v3068_v4, %v3038_v63 }
 0x250   : > { %v3070_v0 = vadd.f32 %v3069_v1, %v3039_v7 }
 0x252   : > { %v3071_v24 = vadd.f32 %v3070_v0, %v3040_v16 }
 0x254   : > { %v3072_v26 = vadd.f32 %v3071_v24, %v3041_v32 }
 0x256   : > { %v3073_v13 = vadd.f32 %v3072_v26, %v3042_v38 }
 0x258   : > { %v3074_v18 = vadd.f32 %v3073_v13, %v3043_v17 }
 0x25a   : > { %v3075_v47 = vadd.f32 %v3074_v18, %v3044_v28 }
 0x25c   : > { %v3076_v31 = vadd.f32 %v3075_v47, %v3045_v8 }
 0x25e   : > { %v3077_v55 = vadd.f32 %v3076_v31, %v3046_v2 }
 0x260   : > { %v3078_v52 = vadd.f32 %v3077_v55, %v3047_v39 }
 0x262   : > { %v3079_v54 = vadd.f32 %v3078_v52, %v3048_v45 }
 0x264   : > { %v3080_v51 = vadd.f32 %v3079_v54, %v3049_v61 }
 0x266   : > { %v3081_v30 = vadd.f32 %v3080_v51, %v3050_v49 }
 0x268   : > { %v3082_v57 = vadd.f32 %v3081_v30, %v3051_v41 }
 0x26a   : > { %v3083_v40 = vadd.f32 %v3082_v57, %v3052_v42 }
 0x26c   : > { %v3084_v3 = vadd.f32 %v3083_v40, %v3053_v37 }
 0x26e   : > { %v3085_v27 = vadd.f32 %v3084_v3, %v3054_v11 }
 0x270   : > { %v3086_v43 = vadd.f32 %v3085_v27, %v3055_v35 }
 0x272   : > { %v3087_v20 = vadd.f32 %v3086_v43, %v3056_v56 }
 0x274   : > { %v3088_v50 = vadd.f32 %v3087_v20, %v3057_v60 }
 0x276   : > { %v3089_v9 = vrot.slane %v3088_v50, 4 }
 0x278   : > { %v3090_v34 = vadd.f32 %v3089_v9, %v3088_v50 }
 0x27a   : > { %v3091_v63 = vrot.slane %v3090_v34, 2 }
 0x27c   : > { %v3092_v4 = vadd.f32 %v3091_v63, %v3090_v34 }
 0x27e   : > { %v3093_v62 = vrot.slane %v3092_v4, 1 }
 0x280   : > { %v3094_v58 = vadd.f32 %v3093_v62, %v3092_v4 }
 0x282   : > { %v3095_v21 = vsel %vm444_vm0, %v6340_v6, %v3094_v58 }
 0x283   : > { %3096 = vst [vmem:[%s235_s15] sm:$0x3] %v3095_v21 }
 0x284 PF: > { %s16_s18 = sadd.s32 1, %s5150_s18  }
 0x285   : > { %p13_p4 = scmp.ge.s32.totalorder %s16_s18, 4  }
 0x287   :  { %15 = sbr.rel (!%p13_p4) target bundleno = 1 (0x1), region = 86 }

</bundles_post_ra>
